<compile_context>
chip_gen: v5e
topology: v5e:2x2
jax: 0.10.0
libtpu: 0.0.40
codegen_flags: <defaults>
</compile_context>

<pallas_src>
import functools

import jax
import jax.numpy as jnp
from jax.experimental import pallas as pl
from jax.experimental.pallas import tpu as pltpu

BN_EPS = 1e-5
LANE = 128
HIGHEST = jax.lax.Precision.HIGHEST


def _conv1_bn_stats_kernel(xc_ref, w1_ref, h_ref, ssum_ref, ssq_ref):
    """conv1 (one im2col matmul, no bias) + per-image BN partial stats.

    The conv1 bias is omitted on purpose: training-mode BatchNorm subtracts
    the batch mean, so a per-channel bias cancels exactly and never needs to
    be materialized.

    xc_ref  : (1, H*W, 9*Cin) bf16   wrapper-built 3x3 im2col of the input
    w1_ref  : (9*Cin, C1p)    bf16   flattened conv1 weights (C1 padded to 128)
    h_ref   : (1, H*W, C1p)   f32    conv1 output (pre-BN, bias-free)
    ssum_ref: (1, 1, C1p)     f32    per-image sum over H*W
    ssq_ref : (1, 1, C1p)     f32    per-image sum of squares over H*W
    """
    hw = xc_ref.shape[1]
    k = xc_ref.shape[2]
    c = w1_ref.shape[1]

    patch = xc_ref[...].reshape(hw, k)                       # (H*W, 27) bf16
    acc = jnp.dot(patch, w1_ref[...],
                  preferred_element_type=jnp.float32)        # single MXU matmul

    h_ref[...] = acc.reshape(1, hw, c)
    # BN batch statistics accumulated while acc is hot (no extra pass later).
    ssum_ref[...] = jnp.sum(acc, axis=0, keepdims=True).reshape(1, 1, c)
    ssq_ref[...] = jnp.sum(acc * acc, axis=0, keepdims=True).reshape(1, 1, c)


def _bn_relu_conv2_kernel(H, W, h_ref, scale_ref, shift_ref, w2_ref, b2_ref,
                          o_ref, pad_ref):
    """BN(scale/shift) + ReLU + conv2 (as one im2col matmul).

    h_ref    : (1, H*W, C1p) f32
    scale_ref: (1, C1p) f32   gamma * rsqrt(var + eps)
    shift_ref: (1, C1p) f32   beta - mean * scale   (conv1 bias folded away)
    w2_ref   : (9*C1p, C2m)  bf16   C2m = 128 MXU output columns
    b2_ref   : (1, C2out)    f32    C2out = 8 stored channels (real 2 padded)
    o_ref    : (1, H*W, C2out) f32  narrow store -> 16x less HBM writeback
    pad_ref  : (H+2, W+2, C1p) f32 VMEM scratch (haloed activation)
    """
    hw = h_ref.shape[1]
    c1 = h_ref.shape[2]
    c2 = o_ref.shape[2]

    # BatchNorm affine (stats pre-folded) + ReLU, single pass over the tile.
    a = h_ref[...].reshape(hw, c1)
    a = jnp.maximum(a * scale_ref[...] + shift_ref[...], 0.0)

    # Write activation into the haloed scratch; zero ONLY the 1-pixel halo.
    zrow = jnp.zeros((1, W + 2, c1), jnp.float32)
    zcol = jnp.zeros((H, 1, c1), jnp.float32)
    pad_ref[0:1, :, :] = zrow
    pad_ref[H + 1:H + 2, :, :] = zrow
    pad_ref[1:H + 1, 0:1, :] = zcol
    pad_ref[1:H + 1, W + 1:W + 2, :] = zcol
    pad_ref[1:H + 1, 1:W + 1, :] = a.reshape(H, W, c1)

    # 9-tap im2col: each tap is 128 channels -> lane-aligned concatenation,
    # then a single K = 9*128 bf16 MXU matmul with f32 accumulation.
    taps = [
        pad_ref[dy:dy + H, dx:dx + W, :].reshape(hw, c1).astype(jnp.bfloat16)
        for dy in range(3) for dx in range(3)
    ]
    patch = jnp.concatenate(taps, axis=-1)                   # (H*W, 9*C1p)
    out = jnp.dot(patch, w2_ref[...],
                  preferred_element_type=jnp.float32)        # (H*W, 128) f32
    # Keep only the lanes that are actually stored: slicing the leading lanes
    # of the result vregs is free (no cross-lane movement), the bias add and
    # the store then touch 8 lanes instead of 128.
    out = out[:, :c2] + b2_ref[...]
    o_ref[...] = out.reshape(1, hw, c2)


def tnet_forward(x_nchw, params):
    """x_nchw: (N, 3, H, W) float32 -> (N, 2, H, W) float32."""
    w1, b1, gamma, beta, w2, b2 = params                     # w1/w2 in HWIO
    del b1  # exactly cancelled by training-mode BatchNorm (mean subtraction)
    N, Cin, H, W = x_nchw.shape
    C1 = w1.shape[-1]
    C2 = w2.shape[-1]
    C1p = LANE                       # hidden channels padded to a full vreg
    C2m = LANE                       # MXU output columns for conv2
    C2out = 8                        # channels actually stored (real C2=2)
    HW = H * W
    K1 = 9 * Cin
    K2 = 9 * C1p

    # NHWC + wrapper-side 3x3 im2col of the tiny Cin=3 input: the kernel then
    # does one K=27 matmul instead of 9 K=3 MXU pushes.
    x_nhwc = jnp.transpose(x_nchw, (0, 2, 3, 1)).astype(jnp.float32)
    x_pad = jnp.pad(x_nhwc, ((0, 0), (1, 1), (1, 1), (0, 0)))
    x_cols = jnp.concatenate(
        [x_pad[:, dy:dy + H, dx:dx + W, :] for dy in range(3) for dx in range(3)],
        axis=-1).reshape(N, HW, K1).astype(jnp.bfloat16)

    w1_flat = jnp.pad(w1.reshape(K1, C1),
                      ((0, 0), (0, C1p - C1))).astype(jnp.bfloat16)

    # ---- call 1: conv1 (bias-free) + per-image BN partial statistics ----
    h, ssum, ssq = pl.pallas_call(
        _conv1_bn_stats_kernel,
        grid=(N,),
        in_specs=[
            pl.BlockSpec((1, HW, K1), lambda n: (n, 0, 0)),
            pl.BlockSpec((K1, C1p), lambda n: (0, 0)),
        ],
        out_specs=(
            pl.BlockSpec((1, HW, C1p), lambda n: (n, 0, 0)),
            pl.BlockSpec((1, 1, C1p), lambda n: (n, 0, 0)),
            pl.BlockSpec((1, 1, C1p), lambda n: (n, 0, 0)),
        ),
        out_shape=(
            jax.ShapeDtypeStruct((N, HW, C1p), jnp.float32),
            jax.ShapeDtypeStruct((N, 1, C1p), jnp.float32),
            jax.ShapeDtypeStruct((N, 1, C1p), jnp.float32),
        ),
        compiler_params=pltpu.CompilerParams(
            dimension_semantics=("parallel",)),
    )(x_cols, w1_flat)

    # ---- finalize BN batch stats (training mode, biased variance) ----
    # Stats are of the bias-free conv1 output; since BN subtracts the mean,
    # the result is identical to normalizing (conv1 + bias).
    cnt = float(N * HW)
    mean = jnp.sum(ssum[:, 0, :], axis=0) / cnt
    var = jnp.maximum(jnp.sum(ssq[:, 0, :], axis=0) / cnt - mean * mean, 0.0)
    gamma_p = jnp.pad(gamma, (0, C1p - C1), constant_values=1.0)
    beta_p = jnp.pad(beta, (0, C1p - C1))
    inv = jax.lax.rsqrt(var + BN_EPS)
    scale = (gamma_p * inv).astype(jnp.float32).reshape(1, C1p)
    shift = (beta_p - mean * gamma_p * inv).astype(jnp.float32).reshape(1, C1p)
    # TODO(synk): PyTorch BatchNorm2d in training mode also updates
    # running_mean / running_var; only the forward output is reproduced here.

    w2_flat = jnp.pad(w2.reshape(9, C1, C2),
                      ((0, 0), (0, C1p - C1), (0, C2m - C2)))
    w2_flat = w2_flat.reshape(K2, C2m).astype(jnp.bfloat16)
    b2_p = jnp.pad(b2, (0, C2out - C2)).reshape(1, C2out).astype(jnp.float32)

    # ---- call 2: BN + ReLU + conv2 ----
    out_p = pl.pallas_call(
        functools.partial(_bn_relu_conv2_kernel, H, W),
        grid=(N,),
        in_specs=[
            pl.BlockSpec((1, HW, C1p), lambda n: (n, 0, 0)),
            pl.BlockSpec((1, C1p), lambda n: (0, 0)),
            pl.BlockSpec((1, C1p), lambda n: (0, 0)),
            pl.BlockSpec((K2, C2m), lambda n: (0, 0)),
            pl.BlockSpec((1, C2out), lambda n: (0, 0)),
        ],
        out_specs=pl.BlockSpec((1, HW, C2out), lambda n: (n, 0, 0)),
        out_shape=jax.ShapeDtypeStruct((N, HW, C2out), jnp.float32),
        scratch_shapes=[pltpu.VMEM((H + 2, W + 2, C1p), jnp.float32)],
        compiler_params=pltpu.CompilerParams(
            dimension_semantics=("parallel",)),
    )(h, scale, shift, w2_flat, b2_p)

    out_nhwc = out_p.reshape(N, H, W, C2out)[..., :C2]
    return jnp.transpose(out_nhwc, (0, 3, 1, 2))


def init_params(key):
    """Deterministic synthetic params matching TNet's __init__ shapes (HWIO)."""
    k1, k2, k3, k4, k5, k6 = jax.random.split(key, 6)
    w1 = 0.1 * jax.random.normal(k1, (3, 3, 3, 64), jnp.float32)    # conv1
    b1 = 0.05 * jax.random.normal(k2, (64,), jnp.float32)
    gamma = 1.0 + 0.1 * jax.random.normal(k3, (64,), jnp.float32)   # bn.weight
    beta = 0.1 * jax.random.normal(k4, (64,), jnp.float32)          # bn.bias
    w2 = 0.1 * jax.random.normal(k5, (3, 3, 64, 2), jnp.float32)    # conv2
    b2 = 0.05 * jax.random.normal(k6, (2,), jnp.float32)
    return (w1, b1, gamma, beta, w2, b2)


def tnet_reference(x_nchw, params):
    """Pure-JAX reference (mirrors PyTorch training-mode forward)."""
    w1, b1, gamma, beta, w2, b2 = params
    x = jnp.transpose(x_nchw, (0, 2, 3, 1))
    dn = jax.lax.conv_dimension_numbers(x.shape, w1.shape,
                                        ("NHWC", "HWIO", "NHWC"))
    y = jax.lax.conv_general_dilated(x, w1, (1, 1), "SAME",
                                     dimension_numbers=dn,
                                     precision=HIGHEST) + b1
    mean = jnp.mean(y, axis=(0, 1, 2), keepdims=True)
    var = jnp.mean((y - mean) ** 2, axis=(0, 1, 2), keepdims=True)
    y = (y - mean) * jax.lax.rsqrt(var + BN_EPS) * gamma + beta
    y = jnp.maximum(y, 0.0)
    dn2 = jax.lax.conv_dimension_numbers(y.shape, w2.shape,
                                         ("NHWC", "HWIO", "NHWC"))
    y = jax.lax.conv_general_dilated(y, w2, (1, 1), "SAME",
                                     dimension_numbers=dn2,
                                     precision=HIGHEST) + b2
    return jnp.transpose(y, (0, 3, 1, 2))


if __name__ == "__main__":
    key = jax.random.PRNGKey(0)
    kx, kp = jax.random.split(key)

    # small deterministic input: batch=2, channels=3 (required by conv1), 16x16
    x = jax.random.normal(kx, (2, 3, 16, 16), jnp.float32)
    params = init_params(kp)

    out = jax.block_until_ready(jax.jit(tnet_forward)(x, params))
    assert out.shape == (2, 2, 16, 16), out.shape

    ref = jax.block_until_ready(tnet_reference(x, params))
    max_err = float(jnp.max(jnp.abs(out - ref)))
    # bf16 MXU operands with f32 accumulation -> slightly looser tolerance.
    assert jnp.allclose(out, ref, atol=2e-2, rtol=2e-2), max_err

    print("KERNEL_OK")
</pallas_src>

<mosaic_0001>
module attributes {stable_mosaic.version = 11 : i64} {
  func.func @_conv1_bn_stats_kernel(%arg0: i32, %arg1: memref<1x256x27xbf16, #tpu.memory_space<vmem>>, %arg2: memref<27x128xbf16, #tpu.memory_space<vmem>>, %arg3: memref<1x256x128xf32, #tpu.memory_space<vmem>>, %arg4: memref<1x1x128xf32, #tpu.memory_space<vmem>>, %arg5: memref<1x1x128xf32, #tpu.memory_space<vmem>>) attributes {dimension_semantics = [#tpu.dimension_semantics<parallel>], iteration_bounds = array<i64: 2>, scalar_prefetch = 0 : i64, scratch_operands = 0 : i64, tpu.core_type = #tpu.core_type<tc>, window_params = [{transform_indices = @transform_0, window_bounds = array<i64: 1, 256, 27>}, {pipeline_mode = #tpu.pipeline_mode<synchronous>, transform_indices = @transform_1, window_bounds = array<i64: 27, 128>}, {transform_indices = @transform_2, window_bounds = array<i64: 1, 256, 128>}, {transform_indices = @transform_3, window_bounds = array<i64: 1, 1, 128>}, {transform_indices = @transform_4, window_bounds = array<i64: 1, 1, 128>}]} {
    %c0 = arith.constant 0 : index
    %c0_0 = arith.constant 0 : index
    %c0_1 = arith.constant 0 : index
    %0 = vector.load %arg1[%c0, %c0_0, %c0_1] : memref<1x256x27xbf16, #tpu.memory_space<vmem>>, vector<1x256x27xbf16>
    %1 = vector.shape_cast %0 : vector<1x256x27xbf16> to vector<256x27xbf16>
    %c0_2 = arith.constant 0 : index
    %c0_3 = arith.constant 0 : index
    %2 = vector.load %arg2[%c0_2, %c0_3] : memref<27x128xbf16, #tpu.memory_space<vmem>>, vector<27x128xbf16>
    %cst = arith.constant dense<0.000000e+00> : vector<256x128xf32>
    %3 = tpu.matmul %1, %2, %cst {dimension_numbers = #tpu.dot_dimension_numbers<[1], [0], [0], [1], [0, 0, 1, 1], [], []>} : vector<256x27xbf16>, vector<27x128xbf16>, vector<256x128xf32> -> vector<256x128xf32>
    %4 = vector.shape_cast %3 : vector<256x128xf32> to vector<1x256x128xf32>
    %c0_4 = arith.constant 0 : index
    %c0_5 = arith.constant 0 : index
    %c0_6 = arith.constant 0 : index
    %5 = vector.load %arg3[%c0_4, %c0_5, %c0_6] : memref<1x256x128xf32, #tpu.memory_space<vmem>>, vector<1x256x128xf32>
    tpu.vector_store %arg3[%c0_4, %c0_5, %c0_6], %4 {strides = array<i32>} : memref<1x256x128xf32, #tpu.memory_space<vmem>>, vector<1x256x128xf32>,
    %cst_7 = arith.constant dense<0.000000e+00> : vector<128xf32>
    %6 = vector.multi_reduction <add>, %3, %cst_7 [0] : vector<256x128xf32> to vector<128xf32>
    %7 = vector.shape_cast %6 : vector<128xf32> to vector<1x128xf32>
    %8 = vector.shape_cast %7 : vector<1x128xf32> to vector<1x1x128xf32>
    %c0_8 = arith.constant 0 : index
    %c0_9 = arith.constant 0 : index
    %c0_10 = arith.constant 0 : index
    %9 = vector.load %arg4[%c0_8, %c0_9, %c0_10] : memref<1x1x128xf32, #tpu.memory_space<vmem>>, vector<1x1x128xf32>
    tpu.vector_store %arg4[%c0_8, %c0_9, %c0_10], %8 {strides = array<i32>} : memref<1x1x128xf32, #tpu.memory_space<vmem>>, vector<1x1x128xf32>,
    %10 = arith.mulf %3, %3 : vector<256x128xf32>
    %cst_11 = arith.constant dense<0.000000e+00> : vector<128xf32>
    %11 = vector.multi_reduction <add>, %10, %cst_11 [0] : vector<256x128xf32> to vector<128xf32>
    %12 = vector.shape_cast %11 : vector<128xf32> to vector<1x128xf32>
    %13 = vector.shape_cast %12 : vector<1x128xf32> to vector<1x1x128xf32>
    %c0_12 = arith.constant 0 : index
    %c0_13 = arith.constant 0 : index
    %c0_14 = arith.constant 0 : index
    %14 = vector.load %arg5[%c0_12, %c0_13, %c0_14] : memref<1x1x128xf32, #tpu.memory_space<vmem>>, vector<1x1x128xf32>
    tpu.vector_store %arg5[%c0_12, %c0_13, %c0_14], %13 {strides = array<i32>} : memref<1x1x128xf32, #tpu.memory_space<vmem>>, vector<1x1x128xf32>,
    return
  }
  func.func @transform_0(%arg0: i32) -> (i32, i32, i32) {
    %c0_i32 = arith.constant 0 : i32
    %c0_i32_0 = arith.constant 0 : i32
    %c0_i32_1 = arith.constant 0 : i32
    return %arg0, %c0_i32, %c0_i32_0 : i32, i32, i32
  }
  func.func @transform_1(%arg0: i32) -> (i32, i32) {
    %c0_i32 = arith.constant 0 : i32
    %c0_i32_0 = arith.constant 0 : i32
    %c0_i32_1 = arith.constant 0 : i32
    return %c0_i32, %c0_i32_0 : i32, i32
  }
  func.func @transform_2(%arg0: i32) -> (i32, i32, i32) {
    %c0_i32 = arith.constant 0 : i32
    %c0_i32_0 = arith.constant 0 : i32
    %c0_i32_1 = arith.constant 0 : i32
    return %arg0, %c0_i32, %c0_i32_0 : i32, i32, i32
  }
  func.func @transform_3(%arg0: i32) -> (i32, i32, i32) {
    %c0_i32 = arith.constant 0 : i32
    %c0_i32_0 = arith.constant 0 : i32
    %c0_i32_1 = arith.constant 0 : i32
    return %arg0, %c0_i32, %c0_i32_0 : i32, i32, i32
  }
  func.func @transform_4(%arg0: i32) -> (i32, i32, i32) {
    %c0_i32 = arith.constant 0 : i32
    %c0_i32_0 = arith.constant 0 : i32
    %c0_i32_1 = arith.constant 0 : i32
    return %arg0, %c0_i32, %c0_i32_0 : i32, i32, i32
  }
}

module attributes {stable_mosaic.version = 11 : i64} {
  func.func @_bn_relu_conv2_kernel(%arg0: i32, %arg1: memref<1x256x128xf32, #tpu.memory_space<vmem>>, %arg2: memref<1x128xf32, #tpu.memory_space<vmem>>, %arg3: memref<1x128xf32, #tpu.memory_space<vmem>>, %arg4: memref<1152x128xbf16, #tpu.memory_space<vmem>>, %arg5: memref<1x8xf32, #tpu.memory_space<vmem>>, %arg6: memref<1x256x8xf32, #tpu.memory_space<vmem>>, %arg7: memref<18x18x128xf32, #tpu.memory_space<vmem>>) attributes {dimension_semantics = [#tpu.dimension_semantics<parallel>], iteration_bounds = array<i64: 2>, scalar_prefetch = 0 : i64, scratch_operands = 1 : i64, tpu.core_type = #tpu.core_type<tc>, window_params = [{transform_indices = @transform_0, window_bounds = array<i64: 1, 256, 128>}, {pipeline_mode = #tpu.pipeline_mode<synchronous>, transform_indices = @transform_1, window_bounds = array<i64: 1, 128>}, {pipeline_mode = #tpu.pipeline_mode<synchronous>, transform_indices = @transform_2, window_bounds = array<i64: 1, 128>}, {pipeline_mode = #tpu.pipeline_mode<synchronous>, transform_indices = @transform_3, window_bounds = array<i64: 1152, 128>}, {pipeline_mode = #tpu.pipeline_mode<synchronous>, transform_indices = @transform_4, window_bounds = array<i64: 1, 8>}, {transform_indices = @transform_5, window_bounds = array<i64: 1, 256, 8>}]} {
    %c0 = arith.constant 0 : index
    %c0_0 = arith.constant 0 : index
    %c0_1 = arith.constant 0 : index
    %0 = vector.load %arg1[%c0, %c0_0, %c0_1] : memref<1x256x128xf32, #tpu.memory_space<vmem>>, vector<1x256x128xf32>
    %1 = vector.shape_cast %0 : vector<1x256x128xf32> to vector<256x128xf32>
    %c0_2 = arith.constant 0 : index
    %c0_3 = arith.constant 0 : index
    %2 = vector.load %arg2[%c0_2, %c0_3] : memref<1x128xf32, #tpu.memory_space<vmem>>, vector<1x128xf32>
    %3 = vector.broadcast %2 : vector<1x128xf32> to vector<256x128xf32>
    %4 = arith.mulf %1, %3 : vector<256x128xf32>
    %c0_4 = arith.constant 0 : index
    %c0_5 = arith.constant 0 : index
    %5 = vector.load %arg3[%c0_4, %c0_5] : memref<1x128xf32, #tpu.memory_space<vmem>>, vector<1x128xf32>
    %6 = vector.broadcast %5 : vector<1x128xf32> to vector<256x128xf32>
    %7 = arith.addf %4, %6 : vector<256x128xf32>
    %cst = arith.constant 0.000000e+00 : f32
    %8 = vector.broadcast %cst : f32 to vector<256x128xf32>
    %9 = arith.maximumf %7, %8 : vector<256x128xf32>
    %cst_6 = arith.constant 0.000000e+00 : f32
    %10 = vector.broadcast %cst_6 : f32 to vector<1x18x128xf32>
    %cst_7 = arith.constant 0.000000e+00 : f32
    %11 = vector.broadcast %cst_7 : f32 to vector<16x1x128xf32>
    %c0_8 = arith.constant 0 : index
    %c0_9 = arith.constant 0 : index
    %c0_10 = arith.constant 0 : index
    %12 = vector.load %arg7[%c0_8, %c0_9, %c0_10] : memref<18x18x128xf32, #tpu.memory_space<vmem>>, vector<1x18x128xf32>
    tpu.vector_store %arg7[%c0_8, %c0_9, %c0_10], %10 {strides = array<i32>} : memref<18x18x128xf32, #tpu.memory_space<vmem>>, vector<1x18x128xf32>,
    %c17 = arith.constant 17 : index
    %c0_11 = arith.constant 0 : index
    %c0_12 = arith.constant 0 : index
    %13 = vector.load %arg7[%c17, %c0_11, %c0_12] : memref<18x18x128xf32, #tpu.memory_space<vmem>>, vector<1x18x128xf32>
    tpu.vector_store %arg7[%c17, %c0_11, %c0_12], %10 {strides = array<i32>} : memref<18x18x128xf32, #tpu.memory_space<vmem>>, vector<1x18x128xf32>,
    %c1 = arith.constant 1 : index
    %c0_13 = arith.constant 0 : index
    %c0_14 = arith.constant 0 : index
    %14 = vector.load %arg7[%c1, %c0_13, %c0_14] : memref<18x18x128xf32, #tpu.memory_space<vmem>>, vector<16x1x128xf32>
    tpu.vector_store %arg7[%c1, %c0_13, %c0_14], %11 {strides = array<i32>} : memref<18x18x128xf32, #tpu.memory_space<vmem>>, vector<16x1x128xf32>,
    %c1_15 = arith.constant 1 : index
    %c17_16 = arith.constant 17 : index
    %c0_17 = arith.constant 0 : index
    %15 = vector.load %arg7[%c1_15, %c17_16, %c0_17] : memref<18x18x128xf32, #tpu.memory_space<vmem>>, vector<16x1x128xf32>
    tpu.vector_store %arg7[%c1_15, %c17_16, %c0_17], %11 {strides = array<i32>} : memref<18x18x128xf32, #tpu.memory_space<vmem>>, vector<16x1x128xf32>,
    %16 = vector.shape_cast %9 : vector<256x128xf32> to vector<16x16x128xf32>
    %c1_18 = arith.constant 1 : index
    %c1_19 = arith.constant 1 : index
    %c0_20 = arith.constant 0 : index
    %17 = vector.load %arg7[%c1_18, %c1_19, %c0_20] : memref<18x18x128xf32, #tpu.memory_space<vmem>>, vector<16x16x128xf32>
    tpu.vector_store %arg7[%c1_18, %c1_19, %c0_20], %16 {strides = array<i32>} : memref<18x18x128xf32, #tpu.memory_space<vmem>>, vector<16x16x128xf32>,
    %c0_21 = arith.constant 0 : index
    %c0_22 = arith.constant 0 : index
    %c0_23 = arith.constant 0 : index
    %18 = vector.load %arg7[%c0_21, %c0_22, %c0_23] : memref<18x18x128xf32, #tpu.memory_space<vmem>>, vector<16x16x128xf32>
    %19 = vector.shape_cast %18 : vector<16x16x128xf32> to vector<256x128xf32>
    %20 = arith.truncf %19 : vector<256x128xf32> to vector<256x128xbf16>
    %c0_24 = arith.constant 0 : index
    %c1_25 = arith.constant 1 : index
    %c0_26 = arith.constant 0 : index
    %21 = vector.load %arg7[%c0_24, %c1_25, %c0_26] : memref<18x18x128xf32, #tpu.memory_space<vmem>>, vector<16x16x128xf32>
    %22 = vector.shape_cast %21 : vector<16x16x128xf32> to vector<256x128xf32>
    %23 = arith.truncf %22 : vector<256x128xf32> to vector<256x128xbf16>
    %c0_27 = arith.constant 0 : index
    %c2 = arith.constant 2 : index
    %c0_28 = arith.constant 0 : index
    %24 = vector.load %arg7[%c0_27, %c2, %c0_28] : memref<18x18x128xf32, #tpu.memory_space<vmem>>, vector<16x16x128xf32>
    %25 = vector.shape_cast %24 : vector<16x16x128xf32> to vector<256x128xf32>
    %26 = arith.truncf %25 : vector<256x128xf32> to vector<256x128xbf16>
    %c1_29 = arith.constant 1 : index
    %c0_30 = arith.constant 0 : index
    %c0_31 = arith.constant 0 : index
    %27 = vector.load %arg7[%c1_29, %c0_30, %c0_31] : memref<18x18x128xf32, #tpu.memory_space<vmem>>, vector<16x16x128xf32>
    %28 = vector.shape_cast %27 : vector<16x16x128xf32> to vector<256x128xf32>
    %29 = arith.truncf %28 : vector<256x128xf32> to vector<256x128xbf16>
    %c1_32 = arith.constant 1 : index
    %c1_33 = arith.constant 1 : index
    %c0_34 = arith.constant 0 : index
    %30 = vector.load %arg7[%c1_32, %c1_33, %c0_34] : memref<18x18x128xf32, #tpu.memory_space<vmem>>, vector<16x16x128xf32>
    %31 = vector.shape_cast %30 : vector<16x16x128xf32> to vector<256x128xf32>
    %32 = arith.truncf %31 : vector<256x128xf32> to vector<256x128xbf16>
    %c1_35 = arith.constant 1 : index
    %c2_36 = arith.constant 2 : index
    %c0_37 = arith.constant 0 : index
    %33 = vector.load %arg7[%c1_35, %c2_36, %c0_37] : memref<18x18x128xf32, #tpu.memory_space<vmem>>, vector<16x16x128xf32>
    %34 = vector.shape_cast %33 : vector<16x16x128xf32> to vector<256x128xf32>
    %35 = arith.truncf %34 : vector<256x128xf32> to vector<256x128xbf16>
    %c2_38 = arith.constant 2 : index
    %c0_39 = arith.constant 0 : index
    %c0_40 = arith.constant 0 : index
    %36 = vector.load %arg7[%c2_38, %c0_39, %c0_40] : memref<18x18x128xf32, #tpu.memory_space<vmem>>, vector<16x16x128xf32>
    %37 = vector.shape_cast %36 : vector<16x16x128xf32> to vector<256x128xf32>
    %38 = arith.truncf %37 : vector<256x128xf32> to vector<256x128xbf16>
    %c2_41 = arith.constant 2 : index
    %c1_42 = arith.constant 1 : index
    %c0_43 = arith.constant 0 : index
    %39 = vector.load %arg7[%c2_41, %c1_42, %c0_43] : memref<18x18x128xf32, #tpu.memory_space<vmem>>, vector<16x16x128xf32>
    %40 = vector.shape_cast %39 : vector<16x16x128xf32> to vector<256x128xf32>
    %41 = arith.truncf %40 : vector<256x128xf32> to vector<256x128xbf16>
    %c2_44 = arith.constant 2 : index
    %c2_45 = arith.constant 2 : index
    %c0_46 = arith.constant 0 : index
    %42 = vector.load %arg7[%c2_44, %c2_45, %c0_46] : memref<18x18x128xf32, #tpu.memory_space<vmem>>, vector<16x16x128xf32>
    %43 = vector.shape_cast %42 : vector<16x16x128xf32> to vector<256x128xf32>
    %44 = arith.truncf %43 : vector<256x128xf32> to vector<256x128xbf16>
    %45 = tpu.concatenate %20, %23, %26, %29, %32, %35, %38, %41, %44 in 1 : vector<256x128xbf16>, vector<256x128xbf16>, vector<256x128xbf16>, vector<256x128xbf16>, vector<256x128xbf16>, vector<256x128xbf16>, vector<256x128xbf16>, vector<256x128xbf16>, vector<256x128xbf16> -> vector<256x1152xbf16>
    %c0_47 = arith.constant 0 : index
    %c0_48 = arith.constant 0 : index
    %46 = vector.load %arg4[%c0_47, %c0_48] : memref<1152x128xbf16, #tpu.memory_space<vmem>>, vector<1152x128xbf16>
    %cst_49 = arith.constant dense<0.000000e+00> : vector<256x128xf32>
    %47 = tpu.matmul %45, %46, %cst_49 {dimension_numbers = #tpu.dot_dimension_numbers<[1], [0], [0], [1], [0, 0, 1, 1], [], []>} : vector<256x1152xbf16>, vector<1152x128xbf16>, vector<256x128xf32> -> vector<256x128xf32>
    %48 = vector.extract_strided_slice %47 {offsets = [0, 0], sizes = [256, 8], strides = [1, 1]} : vector<256x128xf32> to vector<256x8xf32>
    %c0_50 = arith.constant 0 : index
    %c0_51 = arith.constant 0 : index
    %49 = vector.load %arg5[%c0_50, %c0_51] : memref<1x8xf32, #tpu.memory_space<vmem>>, vector<1x8xf32>
    %50 = vector.broadcast %49 : vector<1x8xf32> to vector<256x8xf32>
    %51 = arith.addf %48, %50 : vector<256x8xf32>
    %52 = vector.shape_cast %51 : vector<256x8xf32> to vector<1x256x8xf32>
    %c0_52 = arith.constant 0 : index
    %c0_53 = arith.constant 0 : index
    %c0_54 = arith.constant 0 : index
    %53 = vector.load %arg6[%c0_52, %c0_53, %c0_54] : memref<1x256x8xf32, #tpu.memory_space<vmem>>, vector<1x256x8xf32>
    tpu.vector_store %arg6[%c0_52, %c0_53, %c0_54], %52 {strides = array<i32>} : memref<1x256x8xf32, #tpu.memory_space<vmem>>, vector<1x256x8xf32>,
    return
  }
  func.func @transform_0(%arg0: i32) -> (i32, i32, i32) {
    %c0_i32 = arith.constant 0 : i32
    %c0_i32_0 = arith.constant 0 : i32
    %c0_i32_1 = arith.constant 0 : i32
    return %arg0, %c0_i32, %c0_i32_0 : i32, i32, i32
  }
  func.func @transform_1(%arg0: i32) -> (i32, i32) {
    %c0_i32 = arith.constant 0 : i32
    %c0_i32_0 = arith.constant 0 : i32
    %c0_i32_1 = arith.constant 0 : i32
    return %c0_i32, %c0_i32_0 : i32, i32
  }
  func.func @transform_2(%arg0: i32) -> (i32, i32) {
    %c0_i32 = arith.constant 0 : i32
    %c0_i32_0 = arith.constant 0 : i32
    %c0_i32_1 = arith.constant 0 : i32
    return %c0_i32, %c0_i32_0 : i32, i32
  }
  func.func @transform_3(%arg0: i32) -> (i32, i32) {
    %c0_i32 = arith.constant 0 : i32
    %c0_i32_0 = arith.constant 0 : i32
    %c0_i32_1 = arith.constant 0 : i32
    return %c0_i32, %c0_i32_0 : i32, i32
  }
  func.func @transform_4(%arg0: i32) -> (i32, i32) {
    %c0_i32 = arith.constant 0 : i32
    %c0_i32_0 = arith.constant 0 : i32
    %c0_i32_1 = arith.constant 0 : i32
    return %c0_i32, %c0_i32_0 : i32, i32
  }
  func.func @transform_5(%arg0: i32) -> (i32, i32, i32) {
    %c0_i32 = arith.constant 0 : i32
    %c0_i32_0 = arith.constant 0 : i32
    %c0_i32_1 = arith.constant 0 : i32
    return %arg0, %c0_i32, %c0_i32_0 : i32, i32, i32
  }
}

</mosaic_0001>

<bundles_post_ra>
// kernel: tnet_forward.2
= control target key start
LH: loop header
LB: loop body
LE: loop exit
PB: predicated region body
PF: predicated region fallthrough
CT: control target
= control target key end

     0   :  { %s901_s15 = smov 0   ;;  %s1121_s0 = inlined_call_operand.vmem [shape: bf16[2,256,27], index: 0, kind: input, shape index: {}]   ;;  %s1122_s1 = inlined_call_operand.vmem [shape: bf16[27,128], index: 1, kind: input, shape index: {}]   ;;  %s1123_s2 = inlined_call_operand.vmem [shape: f32[2,256,128], index: 2, kind: output, shape index: {0}]   ;;  %s1124_s3 = inlined_call_operand.vmem [shape: f32[2,1,128], index: 3, kind: output, shape index: {1}]   ;;  %s1125_s4 = inlined_call_operand.vmem [shape: f32[2,1,128], index: 4, kind: output, shape index: {2}]  }
   0x1 LB: > { %s733_s16 = sadd.s32 4294967295, %s873_s15   ;;  %p737_p0 = scmp.ge.s32.totalorder %s873_s15, 1  ;;  %s873_s15 = sphi %s901_s15, %s15_s15  }
   0x2   : > { %p167_p1 = scmp.lt.s32.totalorder %s873_s15, 3 }
   0x4   : > { %p168_p2 = pnand %p737_p0, %p167_p1 }
   0x5   : > { %p199_p3 = scmp.lt.s32.totalorder (!%p168_p2), %s733_s16, 1 }
   0x6   : > { %171 = sbr.rel (%p168_p2) target bundleno = 271 (0x10f), region = 28 }
   0xb   : > { %v812_v0 = vld [vmem:[%s1122_s1 + $0x8] sm:$0xf]  ;;  %v851_v1 = vld [vmem:[%s1122_s1 + $0x8] sm:$0x30]  ;;  %vm392_vm0 = vcmask 1044480   ;;  %vm393_vm1 = vcmask 1045504  }
   0xc   : > { %v813_v2 = vor.u32 %v851_v1, %v812_v0  ;;  %v875_v3 = vmov 65535   ;;  %s1127_s16 = smov (!%p199_p3, %s733_s16), 1  ;;  %v850_v7 = vld [vmem:[%s1122_s1] sm:$0xff]  ;;  %vm343_vm2 = vcmask 220160  }
   0xd   : > { %v394_v4 = vsel %vm392_vm0, 4294967295, %v875_v3  ;;  %s832_s21 = sshll.u32 %s1127_s16, 7  ;;  %s833_s27 = sshll.u32 %s1127_s16, 8 }
   0xe   : > { %v395_v5 = vsel %vm393_vm1, %v394_v4, 0  ;;  %s924_s26 = scalar_lea.vmem %s1121_s0, %s832_s21  ;;  %s962_s30 = scalar_lea.vmem %s1123_s2, %s833_s27 }
   0xf   : > { %v397_v6 = vand.u32 %v813_v2, %v395_v5  ;;  %v834_v8 = vld [vmem:[%s924_s26] sm:$0xff]  ;;  %v835_v12 = vld [vmem:[%s924_s26 + $0x8] sm:$0xff]  ;;  %v836_v16 = vld [vmem:[%s924_s26 + $0x10] sm:$0xff]  ;;  %s211_s7 = scalar_lea.vmem %s1124_s3, %s1127_s16  ;;  %s214_s10 = scalar_lea.vmem %s1125_s4, %s1127_s16 }
  0x10   : > { %v838_v9 = vld [vmem:[%s924_s26 + $0x20] sm:$0xff]  ;;  %v839_v13 = vld [vmem:[%s924_s26 + $0x28] sm:$0xff]  ;;  %v840_v17 = vld [vmem:[%s924_s26 + $0x30] sm:$0xff] }
  0x11   : > { %405 = vmatpush.bf16.msra.mxu0 %v397_v6  ;;  %852 = vmatpush.bf16.msra.mxu1 %v397_v6  ;;  %v842_v10 = vld [vmem:[%s924_s26 + $0x40] sm:$0xff]  ;;  %v843_v14 = vld [vmem:[%s924_s26 + $0x48] sm:$0xff]  ;;  %v844_v18 = vld [vmem:[%s924_s26 + $0x50] sm:$0xff] }
  0x12   : > { %853 = vmatpush.bf16.msra.mxu2 %v397_v6  ;;  %854 = vmatpush.bf16.msra.mxu3 %v397_v6  ;;  %v846_v11 = vld [vmem:[%s924_s26 + $0x60] sm:$0xff]  ;;  %v847_v15 = vld [vmem:[%s924_s26 + $0x68] sm:$0xff]  ;;  %v848_v19 = vld [vmem:[%s924_s26 + $0x70] sm:$0xff] }
  0x13   : > { %v837_v20 = vld [vmem:[%s924_s26 + $0x18] sm:$0xff] }
  0x14   : > { %v841_v21 = vld [vmem:[%s924_s26 + $0x38] sm:$0xff] }
  0x15   : > { %406 = vmatpush.bf16.msra.mxu0 %v850_v7  ;;  %855 = vmatpush.bf16.msra.mxu1 %v850_v7  ;;  %v845_v22 = vld [vmem:[%s924_s26 + $0x58] sm:$0xff] }
  0x16   : > { %856 = vmatpush.bf16.msra.mxu2 %v850_v7  ;;  %857 = vmatpush.bf16.msra.mxu3 %v850_v7  ;;  %v849_v23 = vld [vmem:[%s924_s26 + $0x78] sm:$0xff] }
  0x18   : > { %814 = vmatmul.msk.bf16.vlgmr.msra.gmra.mxu0 %vm343_vm2, %v834_v8  ;;  %818 = vmatmul.msk.bf16.vlgmr.msra.gmra.mxu1 %vm343_vm2, %v838_v9 }
  0x19   : > { %822 = vmatmul.msk.bf16.vlgmr.msra.gmra.mxu2 %vm343_vm2, %v842_v10  ;;  %826 = vmatmul.msk.bf16.vlgmr.msra.gmra.mxu3 %vm343_vm2, %v846_v11 }
  0x28   : > { %815 = vmatmul.msk.bf16.gmra.mxu0 %vm343_vm2, %v835_v12  ;;  %819 = vmatmul.msk.bf16.gmra.mxu1 %vm343_vm2, %v839_v13 }
  0x29   : > { %823 = vmatmul.msk.bf16.gmra.mxu2 %vm343_vm2, %v843_v14  ;;  %827 = vmatmul.msk.bf16.gmra.mxu3 %vm343_vm2, %v847_v15 }
  0x38   : > { %816 = vmatmul.msk.bf16.gmra.mxu0 %vm343_vm2, %v836_v16  ;;  %820 = vmatmul.msk.bf16.gmra.mxu1 %vm343_vm2, %v840_v17 }
  0x39   : > { %824 = vmatmul.msk.bf16.gmra.mxu2 %vm343_vm2, %v844_v18  ;;  %828 = vmatmul.msk.bf16.gmra.mxu3 %vm343_vm2, %v848_v19 }
  0x48   : > { %817 = vmatmul.msk.bf16.gmra.mxu0 %vm343_vm2, %v837_v20  ;;  %821 = vmatmul.msk.bf16.gmra.mxu1 %vm343_vm2, %v841_v21 }
  0x49   : > { %825 = vmatmul.msk.bf16.gmra.mxu2 %vm343_vm2, %v845_v22  ;;  %829 = vmatmul.msk.bf16.gmra.mxu3 %vm343_vm2, %v849_v23 }
  0x95   : > { %v408_v24 = vpop.f32.mrf.mxu0  ;;  %v964_v25 = vpop.f32.mrf.mxu1 }
  0x96   : > { %488 = vst [vmem:[%s962_s30] sm:$0xff] %v408_v24  ;;  %v558_v47 = vmul.f32 %v408_v24, %v408_v24  ;;  %v566_v11 = vmul.f32 %v964_v25, %v964_v25 }
  0x97   : > { %496 = vst [vmem:[%s962_s30 + $0x40] sm:$0xff] %v964_v25 }
  0x9c   : > { %v969_v26 = vpop.f32.mrf.mxu2  ;;  %v976_v29 = vpop.f32.mrf.mxu3 }
  0x9d   : > { %v410_v27 = vpop.f32.mrf.mxu0  ;;  %v971_v28 = vpop.f32.mrf.mxu1  ;;  %504 = vst [vmem:[%s962_s30 + $0x80] sm:$0xff] %v969_v26 }
  0x9e   : > { %489 = vst [vmem:[%s962_s30 + $0x8] sm:$0xff] %v410_v27  ;;  %v559_v46 = vmul.f32 %v410_v27, %v410_v27  ;;  %v520_v48 = vadd.f32 %v410_v27, %v408_v24  ;;  %v567_v14 = vmul.f32 %v971_v28, %v971_v28 }
  0x9f   : > { %497 = vst [vmem:[%s962_s30 + $0x48] sm:$0xff] %v971_v28 }
  0xa0   : > { %512 = vst [vmem:[%s962_s30 + $0xc0] sm:$0xff] %v976_v29  ;;  %v590_v50 = vadd.f32 %v559_v46, %v558_v47 }
  0xa4   : > { %v982_v30 = vpop.f32.mrf.mxu2  ;;  %v989_v33 = vpop.f32.mrf.mxu3 }
  0xa5   : > { %v413_v31 = vpop.f32.mrf.mxu0  ;;  %v984_v32 = vpop.f32.mrf.mxu1  ;;  %505 = vst [vmem:[%s962_s30 + $0x88] sm:$0xff] %v982_v30 }
  0xa6   : > { %490 = vst [vmem:[%s962_s30 + $0x10] sm:$0xff] %v413_v31  ;;  %v560_v49 = vmul.f32 %v413_v31, %v413_v31  ;;  %v521_v51 = vadd.f32 %v520_v48, %v413_v31  ;;  %v568_v17 = vmul.f32 %v984_v32, %v984_v32 }
  0xa7   : > { %498 = vst [vmem:[%s962_s30 + $0x50] sm:$0xff] %v984_v32 }
  0xa8   : > { %513 = vst [vmem:[%s962_s30 + $0xc8] sm:$0xff] %v989_v33  ;;  %v591_v56 = vadd.f32 %v590_v50, %v560_v49  ;;  %v574_v49 = vmul.f32 %v969_v26, %v969_v26 }
  0xac   : > { %v995_v34 = vpop.f32.mrf.mxu2  ;;  %v1002_v37 = vpop.f32.mrf.mxu3 }
  0xad   : > { %v415_v35 = vpop.f32.mrf.mxu0  ;;  %v997_v36 = vpop.f32.mrf.mxu1  ;;  %506 = vst [vmem:[%s962_s30 + $0x90] sm:$0xff] %v995_v34 }
  0xae   : > { %491 = vst [vmem:[%s962_s30 + $0x18] sm:$0xff] %v415_v35  ;;  %v561_v52 = vmul.f32 %v415_v35, %v415_v35  ;;  %v522_v57 = vadd.f32 %v521_v51, %v415_v35  ;;  %v569_v21 = vmul.f32 %v997_v36, %v997_v36 }
  0xaf   : > { %499 = vst [vmem:[%s962_s30 + $0x58] sm:$0xff] %v997_v36 }
  0xb0   : > { %514 = vst [vmem:[%s962_s30 + $0xd0] sm:$0xff] %v1002_v37  ;;  %v592_v60 = vadd.f32 %v591_v56, %v561_v52 }
  0xb4   : > { %v1008_v38 = vpop.f32.mrf.mxu2  ;;  %v1015_v41 = vpop.f32.mrf.mxu3 }
  0xb5   : > { %v418_v39 = vpop.f32.mrf.mxu0  ;;  %v1010_v40 = vpop.f32.mrf.mxu1  ;;  %507 = vst [vmem:[%s962_s30 + $0x98] sm:$0xff] %v1008_v38 }
  0xb6   : > { %492 = vst [vmem:[%s962_s30 + $0x20] sm:$0xff] %v418_v39  ;;  %v562_v58 = vmul.f32 %v418_v39, %v418_v39  ;;  %v523_v61 = vadd.f32 %v522_v57, %v418_v39  ;;  %v577_v57 = vmul.f32 %v1008_v38, %v1008_v38 }
  0xb7   : > { %500 = vst [vmem:[%s962_s30 + $0x60] sm:$0xff] %v1010_v40 }
  0xb8   : > { %515 = vst [vmem:[%s962_s30 + $0xd8] sm:$0xff] %v1015_v41  ;;  %v593_v63 = vadd.f32 %v592_v60, %v562_v58 }
  0xbc   : > { %v1021_v42 = vpop.f32.mrf.mxu2  ;;  %v1028_v45 = vpop.f32.mrf.mxu3 }
  0xbd   : > { %v420_v43 = vpop.f32.mrf.mxu0  ;;  %v1023_v44 = vpop.f32.mrf.mxu1  ;;  %508 = vst [vmem:[%s962_s30 + $0xa0] sm:$0xff] %v1021_v42 }
  0xbe   : > { %493 = vst [vmem:[%s962_s30 + $0x28] sm:$0xff] %v420_v43  ;;  %v563_v62 = vmul.f32 %v420_v43, %v420_v43  ;;  %v524_v0 = vadd.f32 %v523_v61, %v420_v43  ;;  %v571_v31 = vmul.f32 %v1023_v44, %v1023_v44 }
  0xbf   : > { %501 = vst [vmem:[%s962_s30 + $0x68] sm:$0xff] %v1023_v44 }
  0xc0   : > { %516 = vst [vmem:[%s962_s30 + $0xe0] sm:$0xff] %v1028_v45  ;;  %v594_v2 = vadd.f32 %v593_v63, %v563_v62 }
  0xc4   : > { %v1034_v53 = vpop.f32.mrf.mxu2  ;;  %v1039_v59 = vpop.f32.mrf.mxu3 }
  0xc5   : > { %v423_v54 = vpop.f32.mrf.mxu0  ;;  %v443_v55 = vpop.f32.mrf.mxu1  ;;  %509 = vst [vmem:[%s962_s30 + $0xa8] sm:$0xff] %v1034_v53  ;;  %v579_v63 = vmul.f32 %v1034_v53, %v1034_v53 }
  0xc6   : > { %494 = vst [vmem:[%s962_s30 + $0x30] sm:$0xff] %v423_v54  ;;  %v564_v1 = vmul.f32 %v423_v54, %v423_v54  ;;  %v525_v3 = vadd.f32 %v524_v0, %v423_v54  ;;  %v572_v43 = vmul.f32 %v443_v55, %v443_v55 }
  0xc7   : > { %502 = vst [vmem:[%s962_s30 + $0x70] sm:$0xff] %v443_v55 }
  0xc8   : > { %517 = vst [vmem:[%s962_s30 + $0xe8] sm:$0xff] %v1039_v59  ;;  %v595_v7 = vadd.f32 %v594_v2, %v564_v1 }
  0xcc   : > { %v463_v4 = vpop.f32.mrf.mxu2  ;;  %v1046_v10 = vpop.f32.mrf.mxu3 }
  0xcd   : > { %v425_v5 = vpop.f32.mrf.mxu0  ;;  %v445_v6 = vpop.f32.mrf.mxu1  ;;  %510 = vst [vmem:[%s962_s30 + $0xb0] sm:$0xff] %v463_v4  ;;  %v580_v2 = vmul.f32 %v463_v4, %v463_v4 }
  0xce   : > { %495 = vst [vmem:[%s962_s30 + $0x38] sm:$0xff] %v425_v5  ;;  %v526_v8 = vadd.f32 %v525_v3, %v425_v5  ;;  %v565_v9 = vmul.f32 %v425_v5, %v425_v5 }
  0xcf   : > { %503 = vst [vmem:[%s962_s30 + $0x78] sm:$0xff] %v445_v6 }
  0xd0   : > { %v527_v12 = vadd.f32 %v526_v8, %v964_v25  ;;  %v596_v13 = vadd.f32 %v595_v7, %v565_v9  ;;  %518 = vst [vmem:[%s962_s30 + $0xf0] sm:$0xff] %v1046_v10  ;;  %v570_v25 = vmul.f32 %v1010_v40, %v1010_v40 }
  0xd2   : > { %v528_v15 = vadd.f32 %v527_v12, %v971_v28  ;;  %v597_v16 = vadd.f32 %v596_v13, %v566_v11  ;;  %v585_v13 = vmul.f32 %v1015_v41, %v1015_v41 }
  0xd4   : > { %v529_v18 = vadd.f32 %v528_v15, %v984_v32  ;;  %v598_v19 = vadd.f32 %v597_v16, %v567_v14  ;;  %v465_v20 = vpop.f32.mrf.mxu2  ;;  %v485_v24 = vpop.f32.mrf.mxu3 }
  0xd5   : > { %511 = vst [vmem:[%s962_s30 + $0xb8] sm:$0xff] %v465_v20 }
  0xd6   : > { %v599_v22 = vadd.f32 %v598_v19, %v568_v17  ;;  %v530_v23 = vadd.f32 %v529_v18, %v997_v36  ;;  %519 = vst [vmem:[%s962_s30 + $0xf8] sm:$0xff] %v485_v24  ;;  %v573_v36 = vmul.f32 %v445_v6, %v445_v6  ;;  %v587_v18 = vmul.f32 %v1039_v59, %v1039_v59 }
  0xd8   : > { %v531_v27 = vadd.f32 %v530_v23, %v1010_v40  ;;  %v600_v28 = vadd.f32 %v599_v22, %v569_v21  ;;  %v575_v40 = vmul.f32 %v982_v30, %v982_v30  ;;  %v588_v21 = vmul.f32 %v1046_v10, %v1046_v10 }
  0xd9   : > { %v589_v23 = vmul.f32 %v485_v24, %v485_v24 }
  0xda   : > { %v532_v32 = vadd.f32 %v531_v27, %v1023_v44  ;;  %v601_v35 = vadd.f32 %v600_v28, %v570_v25  ;;  %v576_v44 = vmul.f32 %v995_v34, %v995_v34 }
  0xdc   : > { %v533_v39 = vadd.f32 %v532_v32, %v443_v55  ;;  %v602_v46 = vadd.f32 %v601_v35, %v571_v31 }
  0xde   : > { %v603_v47 = vadd.f32 %v602_v46, %v572_v43  ;;  %v534_v48 = vadd.f32 %v533_v39, %v445_v6  ;;  %v581_v6 = vmul.f32 %v465_v20, %v465_v20 }
  0xe0   : > { %v535_v50 = vadd.f32 %v534_v48, %v969_v26  ;;  %v604_v51 = vadd.f32 %v603_v47, %v573_v36  ;;  %v578_v26 = vmul.f32 %v1021_v42, %v1021_v42 }
  0xe2   : > { %v536_v52 = vadd.f32 %v535_v50, %v982_v30  ;;  %v605_v54 = vadd.f32 %v604_v51, %v574_v49 }
  0xe4   : > { %v537_v55 = vadd.f32 %v536_v52, %v995_v34  ;;  %v606_v56 = vadd.f32 %v605_v54, %v575_v40 }
  0xe6   : > { %v607_v58 = vadd.f32 %v606_v56, %v576_v44  ;;  %v538_v60 = vadd.f32 %v537_v55, %v1008_v38  ;;  %v582_v38 = vmul.f32 %v976_v29, %v976_v29 }
  0xe8   : > { %v539_v61 = vadd.f32 %v538_v60, %v1021_v42  ;;  %v608_v62 = vadd.f32 %v607_v58, %v577_v57  ;;  %v583_v42 = vmul.f32 %v989_v33, %v989_v33 }
  0xea   : > { %v540_v30 = vadd.f32 %v539_v61, %v1034_v53  ;;  %v609_v0 = vadd.f32 %v608_v62, %v578_v26  ;;  %v584_v53 = vmul.f32 %v1002_v37, %v1002_v37 }
  0xec   : > { %v610_v34 = vadd.f32 %v609_v0, %v579_v63  ;;  %v541_v1 = vadd.f32 %v540_v30, %v463_v4 }
  0xee   : > { %v611_v3 = vadd.f32 %v610_v34, %v580_v2  ;;  %v542_v5 = vadd.f32 %v541_v1, %v465_v20 }
  0xf0   : > { %v543_v7 = vadd.f32 %v542_v5, %v976_v29  ;;  %v612_v8 = vadd.f32 %v611_v3, %v581_v6  ;;  %v586_v29 = vmul.f32 %v1028_v45, %v1028_v45 }
  0xf2   : > { %v544_v9 = vadd.f32 %v543_v7, %v989_v33  ;;  %v613_v11 = vadd.f32 %v612_v8, %v582_v38 }
  0xf4   : > { %v545_v4 = vadd.f32 %v544_v9, %v1002_v37  ;;  %v614_v12 = vadd.f32 %v613_v11, %v583_v42 }
  0xf6   : > { %v615_v14 = vadd.f32 %v614_v12, %v584_v53  ;;  %v546_v15 = vadd.f32 %v545_v4, %v1015_v41 }
  0xf8   : > { %v547_v16 = vadd.f32 %v546_v15, %v1028_v45  ;;  %v616_v17 = vadd.f32 %v615_v14, %v585_v13 }
  0xfa   : > { %v548_v33 = vadd.f32 %v547_v16, %v1039_v59  ;;  %v617_v19 = vadd.f32 %v616_v17, %v586_v29 }
  0xfc   : > { %v618_v37 = vadd.f32 %v617_v19, %v587_v18  ;;  %v549_v20 = vadd.f32 %v548_v33, %v1046_v10 }
  0xfe   : > { %v619_v41 = vadd.f32 %v618_v37, %v588_v21  ;;  %v550_v22 = vadd.f32 %v549_v20, %v485_v24 }
 0x100   : > { %v551_v25 = vrot.slane %v550_v22, 4  ;;  %v620_v45 = vadd.f32 %v619_v41, %v589_v23 }
 0x102   : > { %v552_v27 = vadd.f32 %v551_v25, %v550_v22  ;;  %v621_v28 = vrot.slane %v620_v45, 4 }
 0x104   : > { %v553_v31 = vrot.slane %v552_v27, 2  ;;  %v622_v32 = vadd.f32 %v621_v28, %v620_v45 }
 0x106   : > { %v554_v35 = vadd.f32 %v553_v31, %v552_v27  ;;  %v623_v59 = vrot.slane %v622_v32, 2 }
 0x108   : > { %v555_v39 = vrot.slane %v554_v35, 1  ;;  %v624_v43 = vadd.f32 %v623_v59, %v622_v32 }
 0x10a   : > { %v556_v46 = vadd.f32 %v555_v39, %v554_v35  ;;  %v625_v10 = vrot.slane %v624_v43, 1 }
 0x10c   : > { %557 = vst [vmem:[%s211_s7] sm:$0x1] %v556_v46  ;;  %v626_v24 = vadd.f32 %v625_v10, %v624_v43 }
 0x10e   : > { %627 = vst [vmem:[%s214_s10] sm:$0x1] %v626_v24 }
 0x10f PF: > { %s15_s15 = sadd.s32 1, %s873_s15  }
 0x110   : > { %p12_p4 = scmp.ge.s32.totalorder %s15_s15, 4  }
 0x112   :  { %14 = sbr.rel (!%p12_p4) target bundleno = 1 (0x1), region = 82 }

// kernel: tnet_forward.3
= control target key start
LH: loop header
LB: loop body
LE: loop exit
PB: predicated region body
PF: predicated region fallthrough
CT: control target
= control target key end

     0   :  { %s3827_s18 = smov 0   ;;  %s4607_s0 = inlined_call_operand.vmem [shape: f32[2,256,128], index: 0, kind: input, shape index: {}]   ;;  %s4608_s1 = inlined_call_operand.vmem [shape: f32[1,128], index: 1, kind: input, shape index: {}]   ;;  %s4609_s2 = inlined_call_operand.vmem [shape: f32[1,128], index: 2, kind: input, shape index: {}]   ;;  %s4610_s3 = inlined_call_operand.vmem [shape: bf16[1152,128], index: 3, kind: input, shape index: {}]   ;;  %s4611_s4 = inlined_call_operand.vmem [shape: f32[1,8], index: 4, kind: input, shape index: {}]   ;;  %s4612_s5 = inlined_call_operand.vmem [shape: f32[2,256,8], index: 5, kind: output, shape index: {}]  }
   0x1 LB: > { %s3375_s19 = sadd.s32 4294967295, %s3793_s18   ;;  %p3379_p0 = scmp.ge.s32.totalorder %s3793_s18, 1  ;;  %s3793_s18 = sphi %s3827_s18, %s15_s18  }
   0x2   : > { %p187_p1 = scmp.lt.s32.totalorder %s3793_s18, 3 }
   0x4   : > { %p188_p2 = pnand %p3379_p0, %p187_p1 }
   0x5   : > { %p215_p3 = scmp.lt.s32.totalorder (!%p188_p2), %s3375_s19, 1 }
   0x6   : > { %191 = sbr.rel (%p188_p2) target bundleno = 776 (0x308), region = 40 }
   0xb   : > { %v3683_v0 = vld [vmem:[%s4610_s3 + $0x38] sm:$0xff]  ;;  %v3795_v1 = vmov 0.0   ;;  %v3682_v2 = vld [vmem:[%s4610_s3 + $0x30] sm:$0xff]  ;;  %s4614_s19 = smov (!%p215_p3, %s3375_s19), 1  ;;  %v3848_v3 = vld [vmem:[%s4608_s1] ss:$0 sm:$0xff] }
   0xc   : > { %372 = vst [vmem:[#allocation2 + $0x60] sm:$0x1] %v3795_v1  ;;  %3748 = vmatpush.bf16.msra.mxu1 %v3683_v0  ;;  %3749 = vmatpush.bf16.msra.mxu2 %v3683_v0  ;;  %s3674_s26 = sshll.u32 %s4614_s19, 8  ;;  %v3862_v4 = vld [vmem:[%s4609_s2] ss:$0 sm:$0xff]  ;;  %v3681_v5 = vld [vmem:[%s4610_s3 + $0x28] sm:$0xff] }
   0xd   : > { %361 = vst [vmem:[#allocation2] sm:$0xff] %v3795_v1  ;;  %3750 = vmatpush.bf16.msra.mxu3 %v3683_v0  ;;  %2450 = vmatpush.bf16.msra.mxu0 %v3683_v0  ;;  %s3857_s29 = scalar_lea.vmem %s4607_s0, %s3674_s26  ;;  %v3680_v12 = vld [vmem:[%s4610_s3 + $0x20] sm:$0xff]  ;;  %v3679_v15 = vld [vmem:[%s4610_s3 + $0x18] sm:$0xff]  ;;  %v3678_v16 = vld [vmem:[%s4610_s3 + $0x10] sm:$0xff]  ;;  %v3796_v25 = vmov 0.0|0.0   ;;  %s4475_s7 = scalar_lea.vmem %s4612_s5, %s3674_s26  ;;  %vm3287_vm0 = vcmask 64512  }
   0xe   : > { %362 = vst [vmem:[#allocation2 + $0x8] sm:$0xff] %v3795_v1  ;;  %v231_v6 = vld [vmem:[%s3857_s29 + $0x30] sm:$0xff]  ;;  %v232_v7 = vld [vmem:[%s3857_s29 + $0x38] sm:$0xff]  ;;  %v3677_v20 = vld [vmem:[%s4610_s3 + $0x8] sm:$0xff]  ;;  %v1042_v26 = vunpack.c.l.b16 %v3796_v25 }
   0xf   : > { %363 = vst [vmem:[#allocation2 + $0x10] sm:$0x3] %v3795_v1  ;;  %v267_v8 = vmul.f32 %v3848_v3, %v231_v6  ;;  %v268_v9 = vmul.f32 %v3848_v3, %v232_v7  ;;  %v3676_v24 = vld [vmem:[%s4610_s3] sm:$0xff]  ;;  %v239_v27 = vld [vmem:[%s3857_s29 + $0x70] sm:$0xff]  ;;  %v240_v28 = vld [vmem:[%s3857_s29 + $0x78] sm:$0xff] }
  0x10   : > { %3751 = vmatpush.bf16.msra.mxu1 %v3682_v2  ;;  %3752 = vmatpush.bf16.msra.mxu2 %v3682_v2  ;;  %365 = vst [vmem:[#allocation2 + $0x198] sm:$0xff] %v3795_v1  ;;  %v3699_v29 = vld [vmem:[%s4610_s3 + $0xb8] sm:$0xff]  ;;  %v247_v32 = vld [vmem:[%s3857_s29 + $0xb0] sm:$0xff]  ;;  %v275_v34 = vmul.f32 %v3848_v3, %v239_v27  ;;  %v1074_v36 = vpack.c.b16 %v1042_v26, %v1042_v26  ;;  %v233_v39 = vld [vmem:[%s3857_s29 + $0x40] sm:$0xff] }
  0x11   : > { %3753 = vmatpush.bf16.msra.mxu3 %v3682_v2  ;;  %2451 = vmatpush.bf16.msra.mxu0 %v3682_v2  ;;  %366 = vst [vmem:[#allocation2 + $0x1a0] sm:$0xff] %v3795_v1  ;;  %v303_v10 = vadd.f32 %v3862_v4, %v267_v8  ;;  %v304_v11 = vadd.f32 %v3862_v4, %v268_v9  ;;  %v3707_v30 = vld [vmem:[%s4610_s3 + $0xf8] sm:$0xff]  ;;  %v3698_v41 = vld [vmem:[%s4610_s3 + $0xb0] sm:$0xff]  ;;  %v234_v43 = vld [vmem:[%s3857_s29 + $0x48] sm:$0xff] }
  0x12   : > { %367 = vst [vmem:[#allocation2 + $0x1a8] sm:$0x3] %v3795_v1  ;;  %v3715_v33 = vld [vmem:[%s4610_s3 + $0x138] sm:$0xff]  ;;  %v276_v38 = vmul.f32 %v3848_v3, %v240_v28  ;;  %v283_v40 = vmul.f32 %v3848_v3, %v247_v32  ;;  %v3706_v42 = vld [vmem:[%s4610_s3 + $0xf0] sm:$0xff]  ;;  %v241_v45 = vld [vmem:[%s3857_s29 + $0x80] sm:$0xff]  ;;  %v311_v46 = vadd.f32 %v3862_v4, %v275_v34  ;;  %v269_v48 = vmul.f32 %v3848_v3, %v233_v39 }
  0x13   : > { %369 = vst [vmem:[#allocation2 + $0x18] sm:$0x1] %v3795_v1  ;;  %v335_v13 = vmax.f32 %v303_v10, 0.0  ;;  %v336_v14 = vmax.f32 %v304_v11, 0.0  ;;  %v248_v35 = vld [vmem:[%s3857_s29 + $0xb8] sm:$0xff]  ;;  %v3690_v47 = vld [vmem:[%s4610_s3 + $0x70] sm:$0xff]  ;;  %v270_v51 = vmul.f32 %v3848_v3, %v234_v43  ;;  %v277_v54 = vmul.f32 %v3848_v3, %v241_v45 }
  0x14   : > { %3754 = vmatpush.bf16.msra.mxu1 %v3681_v5  ;;  %3755 = vmatpush.bf16.msra.mxu2 %v3681_v5  ;;  %370 = vst [vmem:[#allocation2 + $0x30] sm:$0x1] %v3795_v1  ;;  %v3691_v37 = vld [vmem:[%s4610_s3 + $0x78] sm:$0xff]  ;;  %v284_v44 = vmul.f32 %v3848_v3, %v248_v35  ;;  %v242_v49 = vld [vmem:[%s3857_s29 + $0x88] sm:$0xff]  ;;  %v312_v50 = vadd.f32 %v3862_v4, %v276_v38  ;;  %v249_v52 = vld [vmem:[%s3857_s29 + $0xc0] sm:$0xff]  ;;  %v343_v60 = vmax.f32 %v311_v46, 0.0 }
  0x15   : > { %3756 = vmatpush.bf16.msra.mxu3 %v3681_v5  ;;  %2452 = vmatpush.bf16.msra.mxu0 %v3681_v5  ;;  %371 = vst [vmem:[#allocation2 + $0x48] sm:$0x1] %v3795_v1  ;;  %v319_v53 = vadd.f32 %v3862_v4, %v283_v40  ;;  %v250_v55 = vld [vmem:[%s3857_s29 + $0xc8] sm:$0xff]  ;;  %v278_v57 = vmul.f32 %v3848_v3, %v242_v49  ;;  %v225_v58 = vld [vmem:[%s3857_s29] sm:$0xff]  ;;  %v235_v5 = vld [vmem:[%s3857_s29 + $0x50] sm:$0xff] }
  0x16   : > { %373 = vst [vmem:[#allocation2 + $0x78] sm:$0x1] %v3795_v1  ;;  %v320_v56 = vadd.f32 %v3862_v4, %v284_v44  ;;  %v226_v59 = vld [vmem:[%s3857_s29 + $0x8] sm:$0xff]  ;;  %v305_v61 = vadd.f32 %v3862_v4, %v269_v48  ;;  %v285_v62 = vmul.f32 %v3848_v3, %v249_v52  ;;  %v344_v63 = vmax.f32 %v312_v50, 0.0  ;;  %v236_v10 = vld [vmem:[%s3857_s29 + $0x58] sm:$0xff]  ;;  %v3704_v32 = vld [vmem:[%s4610_s3 + $0xe0] sm:$0xff] }
  0x17   : > { %407 = vst [vmem:[#allocation2 + $0x61] sm:$0xff] %v335_v13  ;;  %v306_v0 = vadd.f32 %v3862_v4, %v270_v51  ;;  %v286_v2 = vmul.f32 %v3848_v3, %v250_v55  ;;  %v351_v6 = vmax.f32 %v319_v53, 0.0  ;;  %v313_v7 = vadd.f32 %v3862_v4, %v277_v54  ;;  %v243_v13 = vld [vmem:[%s3857_s29 + $0x90] sm:$0xff]  ;;  %v3689_v28 = vld [vmem:[%s4610_s3 + $0x68] sm:$0xff]  ;;  %v3688_v38 = vld [vmem:[%s4610_s3 + $0x60] sm:$0xff] }
  0x18   : > { %3757 = vmatpush.bf16.msra.mxu1 %v3680_v12  ;;  %3758 = vmatpush.bf16.msra.mxu2 %v3680_v12  ;;  %408 = vst [vmem:[#allocation2 + $0x69] sm:$0xff] %v336_v14  ;;  %v261_v8 = vmul.f32 %v3848_v3, %v225_v58  ;;  %v262_v9 = vmul.f32 %v3848_v3, %v226_v59  ;;  %v352_v11 = vmax.f32 %v320_v56, 0.0  ;;  %v3979_v14 = vmax.f32 %v305_v61, 0.0  ;;  %v227_v35 = vld [vmem:[%s3857_s29 + $0x10] sm:$0xff] }
  0x19   : > { %3759 = vmatpush.bf16.msra.mxu3 %v3680_v12  ;;  %2453 = vmatpush.bf16.msra.mxu0 %v3680_v12  ;;  %374 = vst [vmem:[#allocation2 + $0x90] sm:$0x1] %v3795_v1  ;;  %v314_v12 = vadd.f32 %v3862_v4, %v278_v57  ;;  %v345_v25 = vmax.f32 %v313_v7, 0.0 }
  0x1a   : > { %375 = vst [vmem:[#allocation2 + $0xa8] sm:$0x1] %v3795_v1  ;;  %v297_v26 = vadd.f32 %v3862_v4, %v261_v8  ;;  %v298_v27 = vadd.f32 %v3862_v4, %v262_v9 }
  0x1b   : > { %376 = vst [vmem:[#allocation2 + $0xc0] sm:$0x1] %v3795_v1 }
  0x1c   : > { %3760 = vmatpush.bf16.msra.mxu1 %v3679_v15  ;;  %3761 = vmatpush.bf16.msra.mxu2 %v3679_v15  ;;  %377 = vst [vmem:[#allocation2 + $0xd8] sm:$0x1] %v3795_v1  ;;  %v4026_v44 = vmax.f32 %v297_v26, 0.0  ;;  %v4028_v45 = vmax.f32 %v298_v27, 0.0 }
  0x1d   : > { %3762 = vmatpush.bf16.msra.mxu3 %v3679_v15  ;;  %2454 = vmatpush.bf16.msra.mxu0 %v3679_v15  ;;  %378 = vst [vmem:[#allocation2 + $0xf0] sm:$0x1] %v3795_v1  ;;  %v321_v15 = vadd.f32 %v3862_v4, %v285_v62 }
  0x1e   : > { %v441_v17 = vld [vmem:[#allocation2 + $0x60] sm:$0xff]  ;;  %379 = vst [vmem:[#allocation2 + $0x108] sm:$0x1] %v3795_v1 }
  0x1f   : > { %v442_v18 = vld [vmem:[#allocation2 + $0x68] sm:$0xff]  ;;  %v473_v19 = vpack.c.bf16 %v441_v17, %v441_v17  ;;  %380 = vst [vmem:[#allocation2 + $0x120] sm:$0x1] %v3795_v1  ;;  %v244_v17 = vld [vmem:[%s3857_s29 + $0x98] sm:$0xff] }
  0x20   : > { %3763 = vmatpush.bf16.msra.mxu1 %v3678_v16  ;;  %3764 = vmatpush.bf16.msra.mxu2 %v3678_v16  ;;  %v474_v21 = vpack.c.bf16 %v442_v18, %v442_v18  ;;  %381 = vst [vmem:[#allocation2 + $0x138] sm:$0x1] %v3795_v1  ;;  %v251_v18 = vld [vmem:[%s3857_s29 + $0xd0] sm:$0xff] }
  0x21   : > { %3765 = vmatpush.bf16.msra.mxu3 %v3678_v16  ;;  %2455 = vmatpush.bf16.msra.mxu0 %v3678_v16  ;;  %382 = vst [vmem:[#allocation2 + $0x150] sm:$0x1] %v3795_v1  ;;  %v1050_v22 = vunpack.c.l.b16 %v473_v19  ;;  %v271_v16 = vmul.f32 %v3848_v3, %v235_v5  ;;  %v252_v19 = vld [vmem:[%s3857_s29 + $0xd8] sm:$0xff]  ;;  %v287_v34 = vmul.f32 %v3848_v3, %v251_v18 }
  0x22   : > { %383 = vst [vmem:[#allocation2 + $0x168] sm:$0x1] %v3795_v1  ;;  %v1051_v23 = vunpack.c.l.b16 %v474_v21  ;;  %v322_v21 = vadd.f32 %v3862_v4, %v286_v2  ;;  %v288_v40 = vmul.f32 %v3848_v3, %v252_v19 }
  0x23   : > { %384 = vst [vmem:[#allocation2 + $0x180] sm:$0x1] %v3795_v1  ;;  %v307_v39 = vadd.f32 %v3862_v4, %v271_v16  ;;  %v323_v50 = vadd.f32 %v3862_v4, %v287_v34 }
  0x24   : > { %3766 = vmatpush.bf16.msra.mxu1 %v3677_v20  ;;  %3767 = vmatpush.bf16.msra.mxu2 %v3677_v20  ;;  %385 = vst [vmem:[#allocation2 + $0x29] sm:$0x1] %v3795_v1  ;;  %v1078_v31 = vpack.c.b16 %v1051_v23, %v1050_v22  ;;  %v3705_v22 = vld [vmem:[%s4610_s3 + $0xe8] sm:$0xff]  ;;  %v3714_v23 = vld [vmem:[%s4610_s3 + $0x130] sm:$0xff]  ;;  %v324_v55 = vadd.f32 %v3862_v4, %v288_v40  ;;  %v3695_v40 = vld [vmem:[%s4610_s3 + $0x98] sm:$0xff] }
  0x25   : > { %3768 = vmatpush.bf16.msra.mxu3 %v3677_v20  ;;  %2456 = vmatpush.bf16.msra.mxu0 %v3677_v20  ;;  %386 = vst [vmem:[#allocation2 + $0x41] sm:$0x1] %v3795_v1  ;;  %v3986_v20 = vmax.f32 %v306_v0, 0.0  ;;  %v4035_v54 = vmax.f32 %v307_v39, 0.0 }
  0x26   : > { %387 = vst [vmem:[#allocation2 + $0x59] sm:$0x1] %v3795_v1 }
  0x27   : > { %388 = vst [vmem:[#allocation2 + $0x71] sm:$0x1] %v3795_v1 }
  0x28   : > { %3769 = vmatpush.bf16.msra.mxu1 %v3676_v24  ;;  %3770 = vmatpush.bf16.msra.mxu2 %v3676_v24  ;;  %389 = vst [vmem:[#allocation2 + $0x89] sm:$0x1] %v3795_v1 }
  0x29   : > { %3771 = vmatpush.bf16.msra.mxu3 %v3676_v24  ;;  %2457 = vmatpush.bf16.msra.mxu0 %v3676_v24  ;;  %390 = vst [vmem:[#allocation2 + $0xa1] sm:$0x1] %v3795_v1  ;;  %v272_v24 = vmul.f32 %v3848_v3, %v236_v10 }
  0x2a   : > { %391 = vst [vmem:[#allocation2 + $0xb9] sm:$0x1] %v3795_v1 }
  0x2b   : > { %2478 = vmatmul.bf16.vlgmr.msra.gmra.mxu1 %v1078_v31  ;;  %392 = vst [vmem:[#allocation2 + $0xd1] sm:$0x1] %v3795_v1  ;;  %v3696_v31 = vld [vmem:[%s4610_s3 + $0xa0] sm:$0xff]  ;;  %v308_v43 = vadd.f32 %v3862_v4, %v272_v24 }
  0x2c   : > { %2628 = vmatpush.bf16.msrb.mxu2 %v3699_v29  ;;  %393 = vst [vmem:[#allocation2 + $0xe9] sm:$0x1] %v3795_v1  ;;  %2458 = vmatmul.bf16.vlgmr.msra.gmra.mxu0 %v1074_v36  ;;  %v279_v29 = vmul.f32 %v3848_v3, %v243_v13  ;;  %v353_v36 = vmax.f32 %v321_v15, 0.0  ;;  %v237_v13 = vld [vmem:[%s3857_s29 + $0x60] sm:$0xff]  ;;  %v238_v15 = vld [vmem:[%s3857_s29 + $0x68] sm:$0xff] }
  0x2d   : > { %2717 = vmatpush.bf16.msrb.mxu3 %v3707_v30  ;;  %2806 = vmatpush.bf16.msrb.mxu0 %v3715_v33  ;;  %394 = vst [vmem:[#allocation2 + $0x101] sm:$0x1] %v3795_v1  ;;  %v346_v30 = vmax.f32 %v314_v12, 0.0  ;;  %v280_v33 = vmul.f32 %v3848_v3, %v244_v17  ;;  %v4038_v58 = vmax.f32 %v308_v43, 0.0  ;;  %v356_v12 = vmax.f32 %v324_v55, 0.0  ;;  %v3694_v55 = vld [vmem:[%s4610_s3 + $0x90] sm:$0xff] }
  0x2e   : > { %2539 = vmatpush.bf16.msrb.mxu1 %v3691_v37  ;;  %395 = vst [vmem:[#allocation2 + $0x119] sm:$0x1] %v3795_v1  ;;  %v3713_v37 = vld [vmem:[%s4610_s3 + $0x128] sm:$0xff]  ;;  %v315_v46 = vadd.f32 %v3862_v4, %v279_v29  ;;  %v273_v19 = vmul.f32 %v3848_v3, %v237_v13 }
  0x2f   : > { %396 = vst [vmem:[#allocation2 + $0x131] sm:$0x1] %v3795_v1  ;;  %v316_v49 = vadd.f32 %v3862_v4, %v280_v33 }
  0x30   : > { %2629 = vmatpush.bf16.msrb.mxu2 %v3698_v41  ;;  %397 = vst [vmem:[#allocation2 + $0x149] sm:$0x1] %v3795_v1  ;;  %v228_v41 = vld [vmem:[%s3857_s29 + $0x18] sm:$0xff]  ;;  %v347_v62 = vmax.f32 %v315_v46, 0.0 }
  0x31   : > { %2718 = vmatpush.bf16.msrb.mxu3 %v3706_v42  ;;  %398 = vst [vmem:[#allocation2 + $0x161] sm:$0x1] %v3795_v1  ;;  %2807 = vmatpush.bf16.msrb.mxu0 %v3714_v23  ;;  %v354_v42 = vmax.f32 %v322_v21, 0.0  ;;  %v264_v51 = vmul.f32 %v3848_v3, %v228_v41  ;;  %v245_v21 = vld [vmem:[%s3857_s29 + $0xa0] sm:$0xff]  ;;  %v3703_v41 = vld [vmem:[%s4610_s3 + $0xd8] sm:$0xff] }
  0x32   : > { %2540 = vmatpush.bf16.msrb.mxu1 %v3690_v47  ;;  %399 = vst [vmem:[#allocation2 + $0x179] sm:$0x1] %v3795_v1  ;;  %v263_v47 = vmul.f32 %v3848_v3, %v227_v35  ;;  %v281_v26 = vmul.f32 %v3848_v3, %v245_v21 }
  0x33   : > { %400 = vst [vmem:[#allocation2 + $0x191] sm:$0x1] %v3795_v1  ;;  %v3697_v1 = vld [vmem:[%s4610_s3 + $0xa8] sm:$0xff]  ;;  %v300_v7 = vadd.f32 %v3862_v4, %v264_v51 }
  0x34   : > { %415 = vst [vmem:[#allocation2 + $0xc1] sm:$0xff] %v343_v60  ;;  %2630 = vmatpush.bf16.msrb.mxu2 %v3697_v1  ;;  %v246_v1 = vld [vmem:[%s3857_s29 + $0xa8] sm:$0xff]  ;;  %v317_v51 = vadd.f32 %v3862_v4, %v281_v26 }
  0x35   : > { %416 = vst [vmem:[#allocation2 + $0xc9] sm:$0xff] %v344_v63  ;;  %2719 = vmatpush.bf16.msrb.mxu3 %v3705_v22  ;;  %2808 = vmatpush.bf16.msrb.mxu0 %v3713_v37  ;;  %v299_v63 = vadd.f32 %v3862_v4, %v263_v47  ;;  %v282_v35 = vmul.f32 %v3848_v3, %v246_v1 }
  0x36   : > { %423 = vst [vmem:[#allocation2 + $0x121] sm:$0xff] %v351_v6  ;;  %2541 = vmatpush.bf16.msrb.mxu1 %v3689_v28  ;;  %v348_v6 = vmax.f32 %v316_v49, 0.0  ;;  %v3687_v49 = vld [vmem:[%s4610_s3 + $0x58] sm:$0xff] }
  0x37   : > { %424 = vst [vmem:[#allocation2 + $0x129] sm:$0xff] %v352_v11  ;;  %v355_v11 = vmax.f32 %v323_v50, 0.0  ;;  %v4051_v24 = vmax.f32 %v299_v63, 0.0  ;;  %v349_v63 = vmax.f32 %v317_v51, 0.0 }
  0x38   : > { %409 = vst [vmem:[#allocation2 + $0x79] sm:$0xff] %v3979_v14  ;;  %2631 = vmatpush.bf16.msrb.mxu2 %v3696_v31  ;;  %v309_v31 = vadd.f32 %v3862_v4, %v273_v19  ;;  %v230_v19 = vld [vmem:[%s3857_s29 + $0x28] sm:$0xff] }
  0x39   : > { %410 = vst [vmem:[#allocation2 + $0x81] sm:$0xff] %v3986_v20  ;;  %2720 = vmatpush.bf16.msrb.mxu3 %v3704_v32 }
  0x3a   : > { %417 = vst [vmem:[#allocation2 + $0xd9] sm:$0xff] %v345_v25  ;;  %2542 = vmatpush.bf16.msrb.mxu1 %v3688_v38  ;;  %v274_v25 = vmul.f32 %v3848_v3, %v238_v15 }
  0x3b   : > { %v449_v48 = vld [vmem:[#allocation2 + $0xc0] sm:$0xff]  ;;  %418 = vst [vmem:[#allocation2 + $0xe1] sm:$0xff] %v346_v30  ;;  %v4055_v30 = vmax.f32 %v300_v7, 0.0 }
  0x3c   : > { %v450_v52 = vld [vmem:[#allocation2 + $0xc8] sm:$0xff]  ;;  %v481_v53 = vpack.c.bf16 %v449_v48, %v449_v48  ;;  %425 = vst [vmem:[#allocation2 + $0x139] sm:$0xff] %v353_v36  ;;  %v310_v34 = vadd.f32 %v3862_v4, %v274_v25  ;;  %v253_v36 = vld [vmem:[%s3857_s29 + $0xe0] sm:$0xff]  ;;  %2632 = vmatpush.bf16.msrb.mxu2 %v3695_v40 }
  0x3d   : > { %v482_v56 = vpack.c.bf16 %v450_v52, %v450_v52  ;;  %v457_v57 = vld [vmem:[#allocation2 + $0x120] sm:$0xff]  ;;  %426 = vst [vmem:[#allocation2 + $0x141] sm:$0xff] %v354_v42  ;;  %v4069_v42 = vmax.f32 %v309_v31, 0.0  ;;  %2721 = vmatpush.bf16.msrb.mxu3 %v3703_v41  ;;  %v289_v7 = vmul.f32 %v3848_v3, %v253_v36 }
  0x3e   : > { %v1058_v59 = vunpack.c.l.b16 %v481_v53  ;;  %v458_v60 = vld [vmem:[#allocation2 + $0x128] sm:$0xff]  ;;  %v489_v61 = vpack.c.bf16 %v457_v57, %v457_v57  ;;  %401 = vst [vmem:[#allocation2 + $0x19] sm:$0xff] %v4026_v44  ;;  %v3712_v48 = vld [vmem:[%s4610_s3 + $0x120] sm:$0xff]  ;;  %v4078_v50 = vmax.f32 %v310_v34, 0.0  ;;  %2543 = vmatpush.bf16.msrb.mxu1 %v3687_v49  ;;  %v3710_v49 = vld [vmem:[%s4610_s3 + $0x110] sm:$0xff] }
  0x3f   : > { %v1059_v0 = vunpack.c.l.b16 %v482_v56  ;;  %v490_v2 = vpack.c.bf16 %v458_v60, %v458_v60  ;;  %v443_v5 = vld [vmem:[#allocation2 + $0x78] sm:$0xff]  ;;  %402 = vst [vmem:[#allocation2 + $0x21] sm:$0xff] %v4028_v45  ;;  %v254_v56 = vld [vmem:[%s3857_s29 + $0xe8] sm:$0xff]  ;;  %2809 = vmatpush.bf16.msrb.mxu0 %v3712_v48  ;;  %v3702_v60 = vld [vmem:[%s4610_s3 + $0xd0] sm:$0xff] }
  0x40   : > { %v1066_v8 = vunpack.c.l.b16 %v489_v61  ;;  %v444_v9 = vld [vmem:[#allocation2 + $0x80] sm:$0xff]  ;;  %v475_v10 = vpack.c.bf16 %v443_v5, %v443_v5  ;;  %411 = vst [vmem:[#allocation2 + $0x91] sm:$0xff] %v4035_v54  ;;  %v3711_v61 = vld [vmem:[%s4610_s3 + $0x118] sm:$0xff]  ;;  %2633 = vmatpush.bf16.msrb.mxu2 %v3694_v55  ;;  %v3693_v48 = vld [vmem:[%s4610_s3 + $0x88] sm:$0xff] }
  0x41   : > { %v1082_v16 = vpack.c.b16 %v1059_v0, %v1058_v59  ;;  %v1067_v17 = vunpack.c.l.b16 %v490_v2  ;;  %v476_v18 = vpack.c.bf16 %v444_v9, %v444_v9  ;;  %412 = vst [vmem:[#allocation2 + $0x99] sm:$0xff] %v4038_v58  ;;  %v451_v23 = vld [vmem:[#allocation2 + $0xd8] sm:$0xff]  ;;  %2722 = vmatpush.bf16.msrb.mxu3 %v3702_v60 }
  0x42   : > { %v1052_v22 = vunpack.c.l.b16 %v475_v10  ;;  %419 = vst [vmem:[#allocation2 + $0xf1] sm:$0xff] %v347_v62  ;;  %v452_v29 = vld [vmem:[#allocation2 + $0xe0] sm:$0xff]  ;;  %v483_v38 = vpack.c.bf16 %v451_v23, %v451_v23  ;;  %v318_v62 = vadd.f32 %v3862_v4, %v282_v35 }
  0x43   : > { %2498 = vmatmul.bf16.vlgmr.msra.gmra.mxu2 %v1082_v16  ;;  %v1086_v27 = vpack.c.b16 %v1067_v17, %v1066_v8  ;;  %v1053_v28 = vunpack.c.l.b16 %v476_v18  ;;  %420 = vst [vmem:[#allocation2 + $0xf9] sm:$0xff] %v348_v6  ;;  %v459_v32 = vld [vmem:[#allocation2 + $0x138] sm:$0xff]  ;;  %v484_v43 = vpack.c.bf16 %v452_v29, %v452_v29  ;;  %v3686_v6 = vld [vmem:[%s4610_s3 + $0x50] sm:$0xff]  ;;  %v325_v16 = vadd.f32 %v3862_v4, %v289_v7  ;;  %v229_v17 = vld [vmem:[%s3857_s29 + $0x20] sm:$0xff] }
  0x44   : > { %v460_v33 = vld [vmem:[#allocation2 + $0x140] sm:$0xff]  ;;  %427 = vst [vmem:[#allocation2 + $0x151] sm:$0xff] %v355_v11  ;;  %v491_v0 = vpack.c.bf16 %v459_v32, %v459_v32  ;;  %v1060_v8 = vunpack.c.l.b16 %v483_v38  ;;  %v350_v10 = vmax.f32 %v318_v62, 0.0  ;;  %v290_v11 = vmul.f32 %v3848_v3, %v254_v56  ;;  %2810 = vmatpush.bf16.msrb.mxu0 %v3711_v61  ;;  %2544 = vmatpush.bf16.msrb.mxu1 %v3686_v6  ;;  %v3709_v62 = vld [vmem:[%s4610_s3 + $0x108] sm:$0xff] }
  0x45   : > { %2518 = vmatmul.bf16.vlgmr.msra.gmra.mxu3 %v1086_v27  ;;  %v4061_v37 = vpack.c.b16 %v1053_v28, %v1052_v22  ;;  %v435_v39 = vld [vmem:[#allocation2 + $0x18] sm:$0xff]  ;;  %428 = vst [vmem:[#allocation2 + $0x159] sm:$0xff] %v356_v12  ;;  %v492_v2 = vpack.c.bf16 %v460_v33, %v460_v33  ;;  %v1061_v9 = vunpack.c.l.b16 %v484_v43  ;;  %v357_v22 = vmax.f32 %v325_v16, 0.0  ;;  %2634 = vmatpush.bf16.msrb.mxu2 %v3693_v48  ;;  %v3700_v61 = vld [vmem:[%s4610_s3 + $0xc0] sm:$0xff] }
  0x46   : > { %v436_v46 = vld [vmem:[#allocation2 + $0x20] sm:$0xff]  ;;  %v467_v47 = vpack.c.bf16 %v435_v39, %v435_v39  ;;  %403 = vst [vmem:[#allocation2 + $0x31] sm:$0xff] %v4051_v24  ;;  %v326_v18 = vadd.f32 %v3862_v4, %v290_v11  ;;  %v1068_v21 = vunpack.c.l.b16 %v491_v0  ;;  %v265_v27 = vmul.f32 %v3848_v3, %v229_v17 }
  0x47   : > { %2483 = vmatmul.bf16.gmra.mxu1 %v4061_v37  ;;  %v468_v52 = vpack.c.bf16 %v436_v46, %v436_v46  ;;  %v445_v53 = vld [vmem:[#allocation2 + $0x90] sm:$0xff]  ;;  %404 = vst [vmem:[#allocation2 + $0x39] sm:$0xff] %v4055_v30  ;;  %v1069_v1 = vunpack.c.l.b16 %v492_v2  ;;  %v1083_v28 = vpack.c.b16 %v1061_v9, %v1060_v8  ;;  %v266_v32 = vmul.f32 %v3848_v3, %v230_v19 }
  0x48   : > { %v1044_v57 = vunpack.c.l.b16 %v467_v47  ;;  %v446_v59 = vld [vmem:[#allocation2 + $0x98] sm:$0xff]  ;;  %413 = vst [vmem:[#allocation2 + $0xa9] sm:$0xff] %v4069_v42  ;;  %v477_v13 = vpack.c.bf16 %v445_v53, %v445_v53  ;;  %v358_v26 = vmax.f32 %v326_v18, 0.0  ;;  %v301_v33 = vadd.f32 %v3862_v4, %v265_v27  ;;  %v3685_v53 = vld [vmem:[%s4610_s3 + $0x48] sm:$0xff]  ;;  %2811 = vmatpush.bf16.msrb.mxu0 %v3710_v49 }
  0x49   : > { %v1045_v5 = vunpack.c.l.b16 %v468_v52  ;;  %414 = vst [vmem:[#allocation2 + $0xb1] sm:$0xff] %v4078_v50  ;;  %v478_v15 = vpack.c.bf16 %v446_v59, %v446_v59  ;;  %v1087_v34 = vpack.c.b16 %v1069_v1, %v1068_v21  ;;  %v302_v38 = vadd.f32 %v3862_v4, %v266_v32  ;;  %v453_v43 = vld [vmem:[#allocation2 + $0xf0] sm:$0xff]  ;;  %v3701_v4 = vld [vmem:[%s4610_s3 + $0xc8] sm:$0xff]  ;;  %v3692_v59 = vld [vmem:[%s4610_s3 + $0x80] sm:$0xff]  ;;  %2545 = vmatpush.bf16.msrb.mxu1 %v3685_v53 }
  0x4a   : > { %421 = vst [vmem:[#allocation2 + $0x109] sm:$0xff] %v349_v63  ;;  %v1054_v29 = vunpack.c.l.b16 %v477_v13  ;;  %v4112_v39 = vmax.f32 %v301_v33, 0.0  ;;  %v454_v46 = vld [vmem:[#allocation2 + $0xf8] sm:$0xff]  ;;  %v485_v55 = vpack.c.bf16 %v453_v43, %v453_v43  ;;  %2723 = vmatpush.bf16.msrb.mxu3 %v3701_v4  ;;  %2635 = vmatpush.bf16.msrb.mxu2 %v3692_v59 }
  0x4b   : > { %v4101_v12 = vpack.c.b16 %v1045_v5, %v1044_v57  ;;  %422 = vst [vmem:[#allocation2 + $0x111] sm:$0xff] %v350_v10  ;;  %v1055_v31 = vunpack.c.l.b16 %v478_v15  ;;  %v4116_v41 = vmax.f32 %v302_v38, 0.0  ;;  %v461_v51 = vld [vmem:[#allocation2 + $0x150] sm:$0xff]  ;;  %v486_v56 = vpack.c.bf16 %v454_v46, %v454_v46  ;;  %v3684_v5 = vld [vmem:[%s4610_s3 + $0x40] sm:$0xff]  ;;  %v3731_v32 = vld [vmem:[%s4610_s3 + $0x1b8] sm:$0xff] }
  0x4c   : > { %429 = vst [vmem:[#allocation2 + $0x169] sm:$0xff] %v357_v22  ;;  %v462_v52 = vld [vmem:[#allocation2 + $0x158] sm:$0xff]  ;;  %v493_v63 = vpack.c.bf16 %v461_v51, %v461_v51  ;;  %v1062_v6 = vunpack.c.l.b16 %v485_v55  ;;  %2812 = vmatpush.bf16.msrb.mxu0 %v3709_v62  ;;  %v3708_v10 = vld [vmem:[%s4610_s3 + $0x100] sm:$0xff]  ;;  %v722_v62 = vpack.c.bf16 %v4028_v45, %v4028_v45 }
  0x4d   : > { %2463 = vmatmul.bf16.gmra.mxu0 %v4101_v12  ;;  %v437_v23 = vld [vmem:[#allocation2 + $0x30] sm:$0xff]  ;;  %430 = vst [vmem:[#allocation2 + $0x171] sm:$0xff] %v358_v26  ;;  %v4114_v40 = vpack.c.b16 %v1055_v31, %v1054_v29  ;;  %v494_v0 = vpack.c.bf16 %v462_v52, %v462_v52  ;;  %v1063_v7 = vunpack.c.l.b16 %v486_v56  ;;  %2546 = vmatpush.bf16.msrb.mxu1 %v3684_v5  ;;  %v3739_v33 = vld [vmem:[%s4610_s3 + $0x1f8] sm:$0xff] }
  0x4e   : > { %v438_v25 = vld [vmem:[#allocation2 + $0x38] sm:$0xff]  ;;  %v469_v35 = vpack.c.bf16 %v437_v23, %v437_v23  ;;  %405 = vst [vmem:[#allocation2 + $0x49] sm:$0xff] %v4112_v39  ;;  %2724 = vmatpush.bf16.msrb.mxu3 %v3700_v61  ;;  %v1070_v11 = vunpack.c.l.b16 %v493_v63  ;;  %2984 = vmatpush.bf16.msra.mxu2 %v3731_v32  ;;  %v721_v61 = vpack.c.bf16 %v4026_v44, %v4026_v44 }
  0x4f   : > { %v470_v36 = vpack.c.bf16 %v438_v25, %v438_v25  ;;  %406 = vst [vmem:[#allocation2 + $0x51] sm:$0xff] %v4116_v41  ;;  %v447_v57 = vld [vmem:[#allocation2 + $0xa8] sm:$0xff]  ;;  %v1071_v13 = vunpack.c.l.b16 %v494_v0  ;;  %v1084_v17 = vpack.c.b16 %v1063_v7, %v1062_v6  ;;  %v723_v63 = vpack.c.bf16 %v4051_v24, %v4051_v24 }
  0x50   : > { %v1046_v3 = vunpack.c.l.b16 %v469_v35  ;;  %v448_v60 = vld [vmem:[#allocation2 + $0xb0] sm:$0xff]  ;;  %v479_v8 = vpack.c.bf16 %v447_v57, %v447_v57  ;;  %2813 = vmatpush.bf16.msrb.mxu0 %v3708_v10  ;;  %v3747_v35 = vld [vmem:[%s4610_s3 + $0x238] sm:$0xff]  ;;  %v724_v0 = vpack.c.bf16 %v4055_v30, %v4055_v30  ;;  %v1426_v10 = vunpack.c.l.b16 %v721_v61 }
  0x51   : > { %v1047_v47 = vunpack.c.l.b16 %v470_v36  ;;  %v480_v9 = vpack.c.bf16 %v448_v60, %v448_v60  ;;  %v1088_v21 = vpack.c.b16 %v1071_v13, %v1070_v11  ;;  %v455_v25 = vld [vmem:[#allocation2 + $0x108] sm:$0xff]  ;;  %v1428_v6 = vunpack.c.l.b16 %v723_v63 }
  0x52   : > { %v1056_v18 = vunpack.c.l.b16 %v479_v8  ;;  %v456_v26 = vld [vmem:[#allocation2 + $0x110] sm:$0xff]  ;;  %v487_v36 = vpack.c.bf16 %v455_v25, %v455_v25  ;;  %3073 = vmatpush.bf16.msra.mxu3 %v3739_v33  ;;  %v1429_v7 = vunpack.c.l.b16 %v724_v0  ;;  %v561_v8 = vld [vmem:[#allocation2 + $0x2] sm:$0xff]  ;;  %v1427_v11 = vunpack.c.l.b16 %v722_v62 }
  0x53   : > { %2503 = vmatmul.bf16.gmra.mxu2 %v1083_v28  ;;  %v4142_v2 = vpack.c.b16 %v1047_v47, %v1046_v3  ;;  %v1057_v19 = vunpack.c.l.b16 %v480_v9  ;;  %v463_v27 = vld [vmem:[#allocation2 + $0x168] sm:$0xff]  ;;  %v488_v38 = vpack.c.bf16 %v456_v26, %v456_v26  ;;  %v593_v44 = vpack.c.bf16 %v561_v8, %v561_v8  ;;  %v3730_v25 = vld [vmem:[%s4610_s3 + $0x1b0] sm:$0xff] }
  0x54   : > { %v464_v28 = vld [vmem:[#allocation2 + $0x170] sm:$0xff]  ;;  %v495_v43 = vpack.c.bf16 %v463_v27, %v463_v27  ;;  %v497_v3 = vld [vmem:[#allocation2 + $0x1] sm:$0xff]  ;;  %3162 = vmatpush.bf16.msra.mxu0 %v3747_v35  ;;  %v1064_v4 = vunpack.c.l.b16 %v487_v36  ;;  %v1459_v13 = vpack.c.b16 %v1429_v7, %v1428_v6  ;;  %v1458_v45 = vpack.c.b16 %v1427_v11, %v1426_v10  ;;  %2985 = vmatpush.bf16.msra.mxu2 %v3730_v25 }
  0x55   : > { %2523 = vmatmul.bf16.gmra.mxu3 %v1087_v34  ;;  %v439_v15 = vld [vmem:[#allocation2 + $0x48] sm:$0xff]  ;;  %v4151_v23 = vpack.c.b16 %v1057_v19, %v1056_v18  ;;  %v3723_v34 = vld [vmem:[%s4610_s3 + $0x178] sm:$0xff]  ;;  %v496_v46 = vpack.c.bf16 %v464_v28, %v464_v28  ;;  %v1065_v49 = vunpack.c.l.b16 %v488_v38  ;;  %v529_v51 = vpack.c.bf16 %v497_v3, %v497_v3  ;;  %v3738_v27 = vld [vmem:[%s4610_s3 + $0x1f0] sm:$0xff] }
  0x56   : > { %v440_v16 = vld [vmem:[#allocation2 + $0x50] sm:$0xff]  ;;  %v471_v1 = vpack.c.bf16 %v439_v15, %v439_v15  ;;  %2895 = vmatpush.bf16.msra.mxu1 %v3723_v34  ;;  %v1072_v53 = vunpack.c.l.b16 %v495_v43  ;;  %v725_v30 = vpack.c.bf16 %v4112_v39, %v4112_v39  ;;  %v726_v18 = vpack.c.bf16 %v4116_v41, %v4116_v41  ;;  %3074 = vmatpush.bf16.msra.mxu3 %v3738_v27  ;;  %v566_v34 = vld [vmem:[#allocation2 + $0x3a] sm:$0xff]  ;;  %v3745_v62 = vld [vmem:[%s4610_s3 + $0x228] sm:$0xff] }
  0x57   : > { %2488 = vmatmul.bf16.gmra.mxu1 %v4114_v40  ;;  %v472_v22 = vpack.c.bf16 %v440_v16, %v440_v16  ;;  %v498_v47 = vld [vmem:[#allocation2 + $0x9] sm:$0xff]  ;;  %v1073_v55 = vunpack.c.l.b16 %v496_v46  ;;  %v1085_v56 = vpack.c.b16 %v1065_v49, %v1064_v4  ;;  %v1138_v57 = vunpack.c.l.b16 %v529_v51  ;;  %v565_v33 = vld [vmem:[#allocation2 + $0x32] sm:$0xff]  ;;  %v695_v46 = vld [vmem:[#allocation2 + $0x61] sm:$0xff] }
  0x58   : > { %v1048_v29 = vunpack.c.l.b16 %v471_v1  ;;  %v530_v52 = vpack.c.bf16 %v498_v47, %v498_v47  ;;  %v562_v9 = vld [vmem:[#allocation2 + $0xa] sm:$0xff]  ;;  %v1234_v16 = vunpack.c.l.b16 %v593_v44  ;;  %v1430_v19 = vunpack.c.l.b16 %v725_v30  ;;  %v563_v1 = vld [vmem:[#allocation2 + $0x1a] sm:$0xff] }
  0x59   : > { %v1049_v31 = vunpack.c.l.b16 %v472_v22  ;;  %v1089_v60 = vpack.c.b16 %v1073_v55, %v1072_v53  ;;  %v594_v15 = vpack.c.bf16 %v562_v9, %v562_v9  ;;  %v564_v22 = vld [vmem:[#allocation2 + $0x22] sm:$0xff]  ;;  %v3722_v39 = vld [vmem:[%s4610_s3 + $0x170] sm:$0xff]  ;;  %v595_v28 = vpack.c.bf16 %v563_v1, %v563_v1 }
  0x5a   : > { %v1139_v59 = vunpack.c.l.b16 %v530_v52  ;;  %v3746_v41 = vld [vmem:[%s4610_s3 + $0x230] sm:$0xff]  ;;  %2896 = vmatpush.bf16.msra.mxu1 %v3722_v39  ;;  %v597_v35 = vpack.c.bf16 %v565_v33, %v565_v33  ;;  %v598_v36 = vpack.c.bf16 %v566_v34, %v566_v34  ;;  %v727_v4 = vpack.c.bf16 %v695_v46, %v695_v46  ;;  %v508_v1 = vld [vmem:[#allocation2 + $0x81] sm:$0xff] }
  0x5b   : > { %v4166_v48 = vpack.c.b16 %v1049_v31, %v1048_v29  ;;  %3163 = vmatpush.bf16.msra.mxu0 %v3746_v41  ;;  %v1236_v29 = vunpack.c.l.b16 %v595_v28  ;;  %v696_v3 = vld [vmem:[#allocation2 + $0x69] sm:$0xff]  ;;  %v568_v52 = vld [vmem:[#allocation2 + $0x52] sm:$0xff]  ;;  %v729_v44 = vpack.c.bf16 %v3979_v14, %v3979_v14  ;;  %v571_v34 = vld [vmem:[#allocation2 + $0x7a] sm:$0xff] }
  0x5c   : > { %v1170_v5 = vpack.c.b16 %v1139_v59, %v1138_v57  ;;  %v1238_v38 = vunpack.c.l.b16 %v597_v35  ;;  %v1239_v43 = vunpack.c.l.b16 %v598_v36  ;;  %v728_v49 = vpack.c.bf16 %v696_v3, %v696_v3  ;;  %v567_v51 = vld [vmem:[#allocation2 + $0x4a] sm:$0xff]  ;;  %v631_v57 = vld [vmem:[#allocation2 + $0x60] sm:$0xff] }
  0x5d   : > { %2468 = vmatmul.bf16.gmra.mxu0 %v4142_v2  ;;  %v1432_v53 = vunpack.c.l.b16 %v727_v4  ;;  %v632_v59 = vld [vmem:[#allocation2 + $0x68] sm:$0xff]  ;;  %v600_v61 = vpack.c.bf16 %v568_v52, %v568_v52  ;;  %v663_v63 = vpack.c.bf16 %v631_v57, %v631_v57  ;;  %v3744_v4 = vld [vmem:[%s4610_s3 + $0x220] sm:$0xff] }
  0x5e   : > { %v1268_v47 = vpack.c.b16 %v1239_v43, %v1238_v38  ;;  %v1433_v55 = vunpack.c.l.b16 %v728_v49  ;;  %v664_v0 = vpack.c.bf16 %v632_v59, %v632_v59  ;;  %v572_v35 = vld [vmem:[#allocation2 + $0x82] sm:$0xff]  ;;  %v733_v59 = vpack.c.bf16 %v4069_v42, %v4069_v42 }
  0x5f   : > { %3164 = vmatpush.bf16.msra.mxu0 %v3745_v62  ;;  %v1241_v7 = vunpack.c.l.b16 %v600_v61  ;;  %v1336_v8 = vunpack.c.l.b16 %v663_v63  ;;  %v3728_v43 = vld [vmem:[%s4610_s3 + $0x1a0] sm:$0xff]  ;;  %v604_v3 = vpack.c.bf16 %v572_v35, %v572_v35  ;;  %v573_v62 = vld [vmem:[#allocation2 + $0x92] sm:$0xff] }
  0x60   : > { %v1337_v9 = vunpack.c.l.b16 %v664_v0  ;;  %v574_v63 = vld [vmem:[#allocation2 + $0x9a] sm:$0xff]  ;;  %v1438_v0 = vunpack.c.l.b16 %v733_v59 }
  0x63   : > { %2508 = vmatmul.bf16.gmra.mxu2 %v1084_v17  ;;  %v1235_v17 = vunpack.c.l.b16 %v594_v15  ;;  %v730_v15 = vpack.c.bf16 %v3986_v20, %v3986_v20  ;;  %v540_v20 = vpack.c.bf16 %v508_v1, %v508_v1  ;;  %3165 = vmatpush.bf16.msra.mxu0 %v3744_v4  ;;  %v575_v1 = vld [vmem:[#allocation2 + $0xaa] sm:$0xff] }
  0x65   : > { %2528 = vmatmul.bf16.gmra.mxu3 %v1088_v21  ;;  %v1266_v24 = vpack.c.b16 %v1235_v17, %v1234_v16  ;;  %v1431_v21 = vunpack.c.l.b16 %v726_v18  ;;  %v570_v16 = vld [vmem:[#allocation2 + $0x6a] sm:$0xff]  ;;  %v1434_v17 = vunpack.c.l.b16 %v729_v44  ;;  %v1149_v28 = vunpack.c.l.b16 %v540_v20  ;;  %v3735_v20 = vld [vmem:[%s4610_s3 + $0x1d8] sm:$0xff] }
  0x67   : > { %2493 = vmatmul.bf16.gmra.mxu1 %v4151_v23  ;;  %v1460_v26 = vpack.c.b16 %v1431_v21, %v1430_v19  ;;  %v602_v19 = vpack.c.bf16 %v570_v16, %v570_v16  ;;  %v507_v21 = vld [vmem:[#allocation2 + $0x79] sm:$0xff] }
  0x68   : > { %v539_v27 = vpack.c.bf16 %v507_v21, %v507_v21 }
  0x6a   : > { %v1148_v41 = vunpack.c.l.b16 %v539_v27  ;;  %v3727_v27 = vld [vmem:[%s4610_s3 + $0x198] sm:$0xff] }
  0x6d   : > { %2473 = vmatmul.bf16.gmra.mxu0 %v4166_v48 }
  0x73   : > { %2513 = vmatmul.bf16.gmra.mxu2 %v1085_v56  ;;  %v3737_v56 = vld [vmem:[%s4610_s3 + $0x1e8] sm:$0xff] }
  0x74   : > { %3075 = vmatpush.bf16.msra.mxu3 %v3737_v56 }
  0x75   : > { %2533 = vmatmul.bf16.gmra.mxu3 %v1089_v60  ;;  %v599_v60 = vpack.c.bf16 %v567_v51, %v567_v51 }
  0x77   : > { %2547 = vmatmul.bf16.vlgmr.msrb.gmra.mxu1 %v1170_v5  ;;  %v1461_v5 = vpack.c.b16 %v1433_v55, %v1432_v53  ;;  %v1240_v6 = vunpack.c.l.b16 %v599_v60  ;;  %v1245_v53 = vunpack.c.l.b16 %v604_v3  ;;  %v734_v60 = vpack.c.bf16 %v4078_v50, %v4078_v50 }
  0x79   : > { %v1269_v10 = vpack.c.b16 %v1241_v7, %v1240_v6  ;;  %v605_v7 = vpack.c.bf16 %v573_v62, %v573_v62 }
  0x7d   : > { %2814 = vmatmul.bf16.vlgmr.msrb.gmra.mxu0 %v1458_v45 }
  0x83   : > { %2636 = vmatmul.bf16.vlgmr.msrb.gmra.mxu2 %v1266_v24  ;;  %v1435_v24 = vunpack.c.l.b16 %v730_v15 }
  0x85   : > { %2725 = vmatmul.bf16.vlgmr.msrb.gmra.mxu3 %v4101_v12  ;;  %v596_v12 = vpack.c.bf16 %v564_v22, %v564_v22  ;;  %v1462_v22 = vpack.c.b16 %v1435_v24, %v1434_v17 }
  0x87   : > { %2552 = vmatmul.bf16.gmra.mxu1 %v1458_v45  ;;  %v1237_v31 = vunpack.c.l.b16 %v596_v12  ;;  %v569_v45 = vld [vmem:[#allocation2 + $0x62] sm:$0xff] }
  0x88   : > { %v601_v18 = vpack.c.bf16 %v569_v45, %v569_v45  ;;  %v704_v45 = vld [vmem:[#allocation2 + $0xc9] sm:$0xff] }
  0x89   : > { %v1267_v32 = vpack.c.b16 %v1237_v31, %v1236_v29  ;;  %v731_v29 = vpack.c.bf16 %v4035_v54, %v4035_v54  ;;  %v732_v31 = vpack.c.bf16 %v4038_v58, %v4038_v58  ;;  %v3736_v54 = vld [vmem:[%s4610_s3 + $0x1e0] sm:$0xff]  ;;  %v603_v58 = vpack.c.bf16 %v571_v34, %v571_v34 }
  0x8a   : > { %v1242_v14 = vunpack.c.l.b16 %v601_v18  ;;  %3076 = vmatpush.bf16.msra.mxu3 %v3736_v54  ;;  %v736_v18 = vpack.c.bf16 %v704_v45, %v704_v45  ;;  %v642_v45 = vld [vmem:[#allocation2 + $0xe0] sm:$0xff] }
  0x8b   : > { %v1436_v36 = vunpack.c.l.b16 %v731_v29  ;;  %v1437_v38 = vunpack.c.l.b16 %v732_v31  ;;  %v1244_v52 = vunpack.c.l.b16 %v603_v58  ;;  %v607_v29 = vpack.c.bf16 %v575_v1, %v575_v1 }
  0x8d   : > { %2819 = vmatmul.bf16.gmra.mxu0 %v1459_v13  ;;  %v1463_v49 = vpack.c.b16 %v1437_v38, %v1436_v36  ;;  %v1271_v56 = vpack.c.b16 %v1245_v53, %v1244_v52  ;;  %v3719_v36 = vld [vmem:[%s4610_s3 + $0x158] sm:$0xff]  ;;  %v1248_v54 = vunpack.c.l.b16 %v607_v29  ;;  %v706_v53 = vld [vmem:[#allocation2 + $0xe1] sm:$0xff] }
  0x8e   : > { %3077 = vmatpush.bf16.msra.mxu3 %v3735_v20  ;;  %v3743_v38 = vld [vmem:[%s4610_s3 + $0x218] sm:$0xff] }
  0x8f   : > { %3166 = vmatpush.bf16.msra.mxu0 %v3743_v38  ;;  %v705_v52 = vld [vmem:[#allocation2 + $0xd9] sm:$0xff] }
  0x90   : > { %v737_v62 = vpack.c.bf16 %v705_v52, %v705_v52 }
  0x93   : > { %2641 = vmatmul.bf16.gmra.mxu2 %v1267_v32  ;;  %v1175_v32 = vpack.c.b16 %v1149_v28, %v1148_v41  ;;  %v639_v41 = vld [vmem:[#allocation2 + $0xc0] sm:$0xff]  ;;  %v640_v28 = vld [vmem:[#allocation2 + $0xc8] sm:$0xff] }
  0x94   : > { %v672_v34 = vpack.c.bf16 %v640_v28, %v640_v28 }
  0x95   : > { %2730 = vmatmul.bf16.gmra.mxu3 %v4142_v2  ;;  %v3729_v2 = vld [vmem:[%s4610_s3 + $0x1a8] sm:$0xff] }
  0x96   : > { %2986 = vmatpush.bf16.msra.mxu2 %v3729_v2  ;;  %v1345_v4 = vunpack.c.l.b16 %v672_v34  ;;  %v707_v34 = vld [vmem:[#allocation2 + $0xf1] sm:$0xff] }
  0x97   : > { %2557 = vmatmul.bf16.gmra.mxu1 %v1459_v13  ;;  %v1365_v13 = vpack.c.b16 %v1337_v9, %v1336_v8  ;;  %v606_v8 = vpack.c.bf16 %v574_v63, %v574_v63  ;;  %v738_v63 = vpack.c.bf16 %v706_v53, %v706_v53  ;;  %v579_v53 = vld [vmem:[#allocation2 + $0xda] sm:$0xff] }
  0x9a   : > { %2987 = vmatpush.bf16.msra.mxu2 %v3728_v43 }
  0x9d   : > { %2824 = vmatmul.bf16.gmra.mxu0 %v1460_v26 }
  0x9e   : > { %2988 = vmatpush.bf16.msra.mxu2 %v3727_v27 }
  0xa3   : > { %2646 = vmatmul.bf16.gmra.mxu2 %v1268_v47 }
  0xa5   : > { %2735 = vmatmul.bf16.gmra.mxu3 %v4166_v48  ;;  %v3721_v48 = vld [vmem:[%s4610_s3 + $0x168] sm:$0xff] }
  0xa6   : > { %2897 = vmatpush.bf16.msra.mxu1 %v3721_v48 }
  0xa7   : > { %2562 = vmatmul.bf16.gmra.mxu1 %v1460_v26  ;;  %v1243_v26 = vunpack.c.l.b16 %v602_v19 }
  0xa8   : > { %v4208_v11 = vpop.f32.mrf.mxu1 }
  0xa9   : > { %v4214_v30 = vpop.f32.mrf.mxu0  ;;  %v1270_v39 = vpack.c.b16 %v1243_v26, %v1242_v14  ;;  %v1441_v26 = vunpack.c.l.b16 %v736_v18 }
  0xad   : > { %2829 = vmatmul.bf16.gmra.mxu0 %v1461_v5 }
  0xb0   : > { %v4216_v25 = vpop.f32.mrf.mxu1 }
  0xb1   : > { %v4218_v12 = vpop.f32.mrf.mxu0 }
  0xb3   : > { %2651 = vmatmul.bf16.gmra.mxu2 %v1269_v10  ;;  %v1246_v10 = vunpack.c.l.b16 %v605_v7  ;;  %v577_v7 = vld [vmem:[#allocation2 + $0xc2] sm:$0xff] }
  0xb5   : > { %2740 = vmatmul.bf16.gmra.mxu3 %v1365_v13  ;;  %v1247_v13 = vunpack.c.l.b16 %v606_v8  ;;  %v578_v8 = vld [vmem:[#allocation2 + $0xca] sm:$0xff] }
  0xb7   : > { %2567 = vmatmul.bf16.gmra.mxu1 %v1461_v5  ;;  %v1439_v5 = vunpack.c.l.b16 %v734_v60  ;;  %v1272_v16 = vpack.c.b16 %v1247_v13, %v1246_v10  ;;  %v1443_v10 = vunpack.c.l.b16 %v738_v63 }
  0xb9   : > { %v1464_v9 = vpack.c.b16 %v1439_v5, %v1438_v0 }
  0xbd   : > { %2834 = vmatmul.bf16.gmra.mxu0 %v1462_v22  ;;  %v576_v22 = vld [vmem:[#allocation2 + $0xb2] sm:$0xff] }
  0xbe   : > { %v608_v31 = vpack.c.bf16 %v576_v22, %v576_v22  ;;  %v674_v22 = vpack.c.bf16 %v642_v45, %v642_v45 }
  0xc0   : > { %v1249_v58 = vunpack.c.l.b16 %v608_v31  ;;  %v1347_v29 = vunpack.c.l.b16 %v674_v22 }
  0xc3   : > { %2656 = vmatmul.bf16.gmra.mxu2 %v1270_v39 }
  0xc4   : > { %v4224_v33 = vpop.f32.mrf.mxu1 }
  0xc5   : > { %2745 = vmatmul.bf16.gmra.mxu3 %v4061_v37  ;;  %v3720_v37 = vld [vmem:[%s4610_s3 + $0x160] sm:$0xff] }
  0xc6   : > { %v4233_v46 = vpop.f32.mrf.mxu2  ;;  %2898 = vmatpush.bf16.msra.mxu1 %v3720_v37 }
  0xc7   : > { %2572 = vmatmul.bf16.gmra.mxu1 %v1175_v32 }
  0xc8   : > { %v4235_v47 = vpop.f32.mrf.mxu3 }
  0xca   : > { %v4243_v51 = vpop.f32.mrf.mxu0  ;;  %2899 = vmatpush.bf16.msra.mxu1 %v3719_v36 }
  0xcc   : > { %v4245_v55 = vpop.f32.mrf.mxu1 }
  0xcd   : > { %2839 = vmatmul.bf16.gmra.mxu0 %v1463_v49 }
  0xce   : > { %v4247_v2 = vpop.f32.mrf.mxu2 }
  0xd0   : > { %v4249_v57 = vpop.f32.mrf.mxu3 }
  0xd2   : > { %v4255_v61 = vpop.f32.mrf.mxu0 }
  0xd3   : > { %2661 = vmatmul.bf16.gmra.mxu2 %v1271_v56  ;;  %v1273_v56 = vpack.c.b16 %v1249_v58, %v1248_v54  ;;  %v739_v58 = vpack.c.bf16 %v707_v34, %v707_v34 }
  0xd4   : > { %v4257_v48 = vpop.f32.mrf.mxu1 }
  0xd5   : > { %2750 = vmatmul.bf16.gmra.mxu3 %v4114_v40  ;;  %v703_v40 = vld [vmem:[#allocation2 + $0xc1] sm:$0xff] }
  0xd6   : > { %v4260_v6 = vpop.f32.mrf.mxu2  ;;  %v735_v24 = vpack.c.bf16 %v703_v40, %v703_v40  ;;  %v641_v40 = vld [vmem:[#allocation2 + $0xd8] sm:$0xff] }
  0xd7   : > { %2577 = vmatmul.bf16.gmra.mxu1 %v1463_v49  ;;  %v673_v1 = vpack.c.bf16 %v641_v40, %v641_v40  ;;  %v644_v40 = vld [vmem:[#allocation2 + $0xf8] sm:$0xff] }
  0xd8   : > { %v4262_v42 = vpop.f32.mrf.mxu3  ;;  %v1440_v14 = vunpack.c.l.b16 %v735_v24  ;;  %v610_v24 = vpack.c.bf16 %v578_v8, %v578_v8  ;;  %v3734_v8 = vld [vmem:[%s4610_s3 + $0x1d0] sm:$0xff] }
  0xd9   : > { %v1346_v28 = vunpack.c.l.b16 %v673_v1  ;;  %3078 = vmatpush.bf16.msra.mxu3 %v3734_v8  ;;  %v676_v1 = vpack.c.bf16 %v644_v40, %v644_v40  ;;  %v581_v40 = vld [vmem:[#allocation2 + $0xf2] sm:$0xff] }
  0xda   : > { %v4264_v50 = vpop.f32.mrf.mxu0  ;;  %v1465_v35 = vpack.c.b16 %v1441_v26, %v1440_v14  ;;  %v1251_v20 = vunpack.c.l.b16 %v610_v24 }
  0xdb   : > { %v1370_v54 = vpack.c.b16 %v1347_v29, %v1346_v28 }
  0xdc   : > { %v4266_v44 = vpop.f32.mrf.mxu1 }
  0xdd   : > { %2844 = vmatmul.bf16.gmra.mxu0 %v1464_v9 }
  0xde   : > { %v4268_v15 = vpop.f32.mrf.mxu2 }
  0xe0   : > { %v4270_v17 = vpop.f32.mrf.mxu3 }
  0xe2   : > { %v4272_v19 = vpop.f32.mrf.mxu0 }
  0xe3   : > { %2666 = vmatmul.bf16.gmra.mxu2 %v1272_v16  ;;  %v609_v16 = vpack.c.bf16 %v577_v7, %v577_v7  ;;  %v3726_v7 = vld [vmem:[%s4610_s3 + $0x190] sm:$0xff] }
  0xe4   : > { %v4274_v21 = vpop.f32.mrf.mxu1  ;;  %2989 = vmatpush.bf16.msra.mxu2 %v3726_v7 }
  0xe5   : > { %2755 = vmatmul.bf16.gmra.mxu3 %v4151_v23  ;;  %v671_v23 = vpack.c.bf16 %v639_v41, %v639_v41  ;;  %v1250_v27 = vunpack.c.l.b16 %v609_v16  ;;  %v611_v16 = vpack.c.bf16 %v579_v53, %v579_v53 }
  0xe6   : > { %v4283_v39 = vpop.f32.mrf.mxu2 }
  0xe7   : > { %2582 = vmatmul.bf16.gmra.mxu1 %v1464_v9  ;;  %v1344_v37 = vunpack.c.l.b16 %v671_v23  ;;  %v1442_v9 = vunpack.c.l.b16 %v737_v62  ;;  %v1274_v36 = vpack.c.b16 %v1251_v20, %v1250_v27  ;;  %v1444_v62 = vunpack.c.l.b16 %v739_v58  ;;  %v3718_v27 = vld [vmem:[%s4610_s3 + $0x150] sm:$0xff] }
  0xe8   : > { %v4285_v32 = vpop.f32.mrf.mxu3  ;;  %v3742_v20 = vld [vmem:[%s4610_s3 + $0x210] sm:$0xff]  ;;  %v1252_v28 = vunpack.c.l.b16 %v611_v16  ;;  %2900 = vmatpush.bf16.msra.mxu1 %v3718_v27 }
  0xe9   : > { %v1369_v60 = vpack.c.b16 %v1345_v4, %v1344_v37  ;;  %v1466_v14 = vpack.c.b16 %v1443_v10, %v1442_v9  ;;  %v643_v10 = vld [vmem:[#allocation2 + $0xf0] sm:$0xff]  ;;  %3167 = vmatpush.bf16.msra.mxu0 %v3742_v20 }
  0xea   : > { %v4293_v43 = vpop.f32.mrf.mxu0  ;;  %v675_v24 = vpack.c.bf16 %v643_v10, %v643_v10 }
  0xec   : > { %v4295_v3 = vpop.f32.mrf.mxu1 }
  0xed   : > { %2849 = vmatmul.bf16.gmra.mxu0 %v1465_v35 }
  0xee   : > { %v4297_v49 = vpop.f32.mrf.mxu2 }
  0xf0   : > { %v4299_v59 = vpop.f32.mrf.mxu3 }
  0xf2   : > { %v4301_v0 = vpop.f32.mrf.mxu0 }
  0xf3   : > { %2671 = vmatmul.bf16.gmra.mxu2 %v1273_v56  ;;  %v580_v56 = vld [vmem:[#allocation2 + $0xe2] sm:$0xff] }
  0xf4   : > { %v2548_v5 = vpop.f32.mrf.mxu1 }
  0xf5   : > { %2760 = vmatmul.bf16.gmra.mxu3 %v1369_v60  ;;  %v2549_v60 = vadd.f32 %v2548_v5, %v4214_v30  ;;  %v612_v30 = vpack.c.bf16 %v580_v56, %v580_v56 }
  0xf6   : > { %v4303_v13 = vpop.f32.mrf.mxu2 }
  0xf7   : > { %2587 = vmatmul.bf16.gmra.mxu1 %v1465_v35  ;;  %v708_v35 = vld [vmem:[#allocation2 + $0xf9] sm:$0xff] }
  0xf8   : > { %v4305_v18 = vpop.f32.mrf.mxu3  ;;  %v740_v37 = vpack.c.bf16 %v708_v35, %v708_v35  ;;  %v1348_v35 = vunpack.c.l.b16 %v675_v24 }
  0xfa   : > { %v2815_v26 = vpop.f32.mrf.mxu0  ;;  %v1445_v63 = vunpack.c.l.b16 %v740_v37  ;;  %v709_v37 = vld [vmem:[#allocation2 + $0x109] sm:$0xff] }
  0xfb   : > { %v741_v7 = vpack.c.bf16 %v709_v37, %v709_v37 }
  0xfc   : > { %v2550_v41 = vpop.f32.mrf.mxu1  ;;  %v1467_v22 = vpack.c.b16 %v1445_v63, %v1444_v62 }
  0xfd   : > { %2854 = vmatmul.bf16.gmra.mxu0 %v1466_v14  ;;  %v2551_v31 = vadd.f32 %v2550_v41, %v4218_v12  ;;  %v1446_v16 = vunpack.c.l.b16 %v741_v7 }
  0xfe   : > { %v4308_v23 = vpop.f32.mrf.mxu2 }
 0x100   : > { %v4310_v38 = vpop.f32.mrf.mxu3 }
 0x102   : > { %v2817_v4 = vpop.f32.mrf.mxu0 }
 0x103   : > { %2676 = vmatmul.bf16.gmra.mxu2 %v1274_v36  ;;  %v1349_v36 = vunpack.c.l.b16 %v676_v1  ;;  %v613_v1 = vpack.c.bf16 %v581_v40, %v581_v40 }
 0x104   : > { %v2553_v52 = vpop.f32.mrf.mxu1 }
 0x105   : > { %2765 = vmatmul.bf16.gmra.mxu3 %v1370_v54  ;;  %v2554_v12 = vadd.f32 %v2553_v52, %v4243_v51  ;;  %v710_v52 = vld [vmem:[#allocation2 + $0x111] sm:$0xff]  ;;  %v1371_v63 = vpack.c.b16 %v1349_v36, %v1348_v35  ;;  %v1254_v36 = vunpack.c.l.b16 %v613_v1  ;;  %v3733_v1 = vld [vmem:[%s4610_s3 + $0x1c8] sm:$0xff] }
 0x106   : > { %v2637_v9 = vpop.f32.mrf.mxu2  ;;  %v742_v8 = vpack.c.bf16 %v710_v52, %v710_v52  ;;  %3079 = vmatpush.bf16.msra.mxu3 %v3733_v1 }
 0x107   : > { %v2638_v45 = vadd.f32 %v2637_v9, %v2549_v60  ;;  %2592 = vmatmul.bf16.gmra.mxu1 %v1466_v14  ;;  %v1253_v14 = vunpack.c.l.b16 %v612_v30 }
 0x108   : > { %v2726_v5 = vpop.f32.mrf.mxu3  ;;  %v1447_v30 = vunpack.c.l.b16 %v742_v8 }
 0x109   : > { %v2727_v51 = vadd.f32 %v2726_v5, %v2638_v45  ;;  %v1275_v56 = vpack.c.b16 %v1253_v14, %v1252_v28  ;;  %v582_v45 = vld [vmem:[#allocation2 + $0xfa] sm:$0xff] }
 0x10a   : > { %v2820_v41 = vpop.f32.mrf.mxu0  ;;  %v614_v27 = vpack.c.bf16 %v582_v45, %v582_v45 }
 0x10b   : > { %v4326_v29 = vadd.f32 %v2815_v26, %v2727_v51  ;;  %v646_v51 = vld [vmem:[#allocation2 + $0x110] sm:$0xff] }
 0x10c   : > { %v2555_v34 = vpop.f32.mrf.mxu1 }
 0x10d   : > { %2859 = vmatmul.bf16.gmra.mxu0 %v1467_v22  ;;  %v2556_v54 = vadd.f32 %v2555_v34, %v4255_v61  ;;  %v1468_v34 = vpack.c.b16 %v1447_v30, %v1446_v16 }
 0x10e   : > { %v2639_v58 = vpop.f32.mrf.mxu2 }
 0x10f   : > { %v2640_v53 = vadd.f32 %v2639_v58, %v2551_v31  ;;  %v645_v31 = vld [vmem:[#allocation2 + $0x108] sm:$0xff]  ;;  %v1255_v58 = vunpack.c.l.b16 %v614_v27 }
 0x110   : > { %v2728_v60 = vpop.f32.mrf.mxu3  ;;  %v677_v14 = vpack.c.bf16 %v645_v31, %v645_v31  ;;  %v584_v31 = vld [vmem:[#allocation2 + $0x112] sm:$0xff] }
 0x111   : > { %v2729_v62 = vadd.f32 %v2728_v60, %v2640_v53  ;;  %v712_v60 = vld [vmem:[#allocation2 + $0x129] sm:$0xff] }
 0x112   : > { %v2822_v9 = vpop.f32.mrf.mxu0  ;;  %v1350_v52 = vunpack.c.l.b16 %v677_v14  ;;  %v744_v45 = vpack.c.bf16 %v712_v60, %v712_v60 }
 0x113   : > { %2681 = vmatmul.bf16.gmra.mxu2 %v1275_v56  ;;  %v4329_v26 = vadd.f32 %v2817_v4, %v2729_v62  ;;  %v678_v4 = vpack.c.bf16 %v646_v51, %v646_v51 }
 0x114   : > { %v2558_v10 = vpop.f32.mrf.mxu1 }
 0x115   : > { %2770 = vmatmul.bf16.gmra.mxu3 %v1371_v63  ;;  %v2559_v61 = vadd.f32 %v2558_v10, %v4264_v50  ;;  %v1351_v53 = vunpack.c.l.b16 %v678_v4  ;;  %v1276_v63 = vpack.c.b16 %v1255_v58, %v1254_v36  ;;  %v616_v4 = vpack.c.bf16 %v584_v31, %v584_v31 }
 0x116   : > { %v2642_v5 = vpop.f32.mrf.mxu2 }
 0x117   : > { %v2643_v24 = vadd.f32 %v2642_v5, %v2554_v12  ;;  %2597 = vmatmul.bf16.gmra.mxu1 %v1467_v22  ;;  %v711_v22 = vld [vmem:[#allocation2 + $0x121] sm:$0xff]  ;;  %v1372_v10 = vpack.c.b16 %v1351_v53, %v1350_v52  ;;  %v583_v5 = vld [vmem:[#allocation2 + $0x10a] sm:$0xff] }
 0x118   : > { %v2731_v20 = vpop.f32.mrf.mxu3  ;;  %v743_v40 = vpack.c.bf16 %v711_v22, %v711_v22  ;;  %v615_v14 = vpack.c.bf16 %v583_v5, %v583_v5  ;;  %v3717_v53 = vld [vmem:[%s4610_s3 + $0x148] sm:$0xff] }
 0x119   : > { %v2732_v28 = vadd.f32 %v2731_v20, %v2643_v24  ;;  %v1449_v24 = vunpack.c.l.b16 %v744_v45  ;;  %v647_v20 = vld [vmem:[#allocation2 + $0x120] sm:$0xff]  ;;  %2901 = vmatpush.bf16.msra.mxu1 %v3717_v53 }
 0x11a   : > { %v2825_v35 = vpop.f32.mrf.mxu0  ;;  %v1448_v51 = vunpack.c.l.b16 %v743_v40  ;;  %v679_v58 = vpack.c.bf16 %v647_v20, %v647_v20  ;;  %v713_v40 = vld [vmem:[#allocation2 + $0x139] sm:$0xff]  ;;  %v714_v45 = vld [vmem:[#allocation2 + $0x141] sm:$0xff] }
 0x11b   : > { %v4332_v37 = vadd.f32 %v2820_v41, %v2732_v28  ;;  %v746_v1 = vpack.c.bf16 %v714_v45, %v714_v45 }
 0x11c   : > { %v2560_v50 = vpop.f32.mrf.mxu1  ;;  %v1469_v52 = vpack.c.b16 %v1449_v24, %v1448_v51 }
 0x11d   : > { %2864 = vmatmul.bf16.gmra.mxu0 %v1468_v34  ;;  %v2561_v56 = vadd.f32 %v2560_v50, %v4272_v19 }
 0x11e   : > { %v2644_v12 = vpop.f32.mrf.mxu2 }
 0x11f   : > { %v2645_v62 = vadd.f32 %v2644_v12, %v2556_v54  ;;  %v3725_v54 = vld [vmem:[%s4610_s3 + $0x188] sm:$0xff] }
 0x120   : > { %v2733_v7 = vpop.f32.mrf.mxu3  ;;  %2990 = vmatpush.bf16.msra.mxu2 %v3725_v54  ;;  %v3741_v12 = vld [vmem:[%s4610_s3 + $0x208] sm:$0xff]  ;;  %v745_v54 = vpack.c.bf16 %v713_v40, %v713_v40 }
 0x121   : > { %v2734_v8 = vadd.f32 %v2733_v7, %v2645_v62  ;;  %3168 = vmatpush.bf16.msra.mxu0 %v3741_v12 }
 0x122   : > { %v2827_v16 = vpop.f32.mrf.mxu0 }
 0x123   : > { %2686 = vmatmul.bf16.gmra.mxu2 %v1276_v63  ;;  %v4335_v41 = vadd.f32 %v2822_v9, %v2734_v8  ;;  %v648_v9 = vld [vmem:[#allocation2 + $0x128] sm:$0xff]  ;;  %v1352_v63 = vunpack.c.l.b16 %v679_v58 }
 0x124   : > { %v2563_v30 = vpop.f32.mrf.mxu1  ;;  %v680_v50 = vpack.c.bf16 %v648_v9, %v648_v9  ;;  %v585_v9 = vld [vmem:[#allocation2 + $0x122] sm:$0xff] }
 0x125   : > { %2775 = vmatmul.bf16.gmra.mxu3 %v1372_v10  ;;  %v2564_v19 = vadd.f32 %v2563_v30, %v4293_v43  ;;  %v617_v58 = vpack.c.bf16 %v585_v9, %v585_v9 }
 0x126   : > { %v2647_v27 = vpop.f32.mrf.mxu2  ;;  %v1353_v7 = vunpack.c.l.b16 %v680_v50 }
 0x127   : > { %v2648_v28 = vadd.f32 %v2647_v27, %v2559_v61  ;;  %2602 = vmatmul.bf16.gmra.mxu1 %v1468_v34  ;;  %v1256_v61 = vunpack.c.l.b16 %v615_v14  ;;  %v1257_v34 = vunpack.c.l.b16 %v616_v4  ;;  %v1450_v14 = vunpack.c.l.b16 %v745_v54  ;;  %v255_v54 = vld [vmem:[%s3857_s29 + $0xf0] sm:$0xff] }
 0x128   : > { %v2736_v36 = vpop.f32.mrf.mxu3  ;;  %v1373_v24 = vpack.c.b16 %v1353_v7, %v1352_v63  ;;  %v1258_v63 = vunpack.c.l.b16 %v617_v58 }
 0x129   : > { %v2737_v43 = vadd.f32 %v2736_v36, %v2648_v28  ;;  %v1277_v5 = vpack.c.b16 %v1257_v34, %v1256_v61  ;;  %v586_v28 = vld [vmem:[#allocation2 + $0x12a] sm:$0xff]  ;;  %v649_v36 = vld [vmem:[#allocation2 + $0x138] sm:$0xff] }
 0x12a   : > { %v2830_v22 = vpop.f32.mrf.mxu0  ;;  %v618_v50 = vpack.c.bf16 %v586_v28, %v586_v28  ;;  %v681_v61 = vpack.c.bf16 %v649_v36, %v649_v36 }
 0x12b   : > { %v4350_v60 = vadd.f32 %v2825_v35, %v2737_v43  ;;  %v650_v43 = vld [vmem:[#allocation2 + $0x140] sm:$0xff] }
 0x12c   : > { %v2565_v62 = vpop.f32.mrf.mxu1  ;;  %v682_v34 = vpack.c.bf16 %v650_v43, %v650_v43  ;;  %v1259_v7 = vunpack.c.l.b16 %v618_v50  ;;  %v1354_v45 = vunpack.c.l.b16 %v681_v61  ;;  %v588_v50 = vld [vmem:[#allocation2 + $0x142] sm:$0xff] }
 0x12d   : > { %2869 = vmatmul.bf16.gmra.mxu0 %v1469_v52  ;;  %v2566_v8 = vadd.f32 %v2565_v62, %v4301_v0  ;;  %v1451_v0 = vunpack.c.l.b16 %v746_v1 }
 0x12e   : > { %v2649_v10 = vpop.f32.mrf.mxu2 }
 0x12f   : > { %v2650_v30 = vadd.f32 %v2649_v10, %v2561_v56 }
 0x130   : > { %v2738_v31 = vpop.f32.mrf.mxu3 }
 0x131   : > { %v2739_v51 = vadd.f32 %v2738_v31, %v2650_v30  ;;  %v1355_v30 = vunpack.c.l.b16 %v682_v34 }
 0x132   : > { %v2832_v27 = vpop.f32.mrf.mxu0 }
 0x133   : > { %2691 = vmatmul.bf16.gmra.mxu2 %v1277_v5  ;;  %v4353_v35 = vadd.f32 %v2827_v16, %v2739_v51  ;;  %v1470_v16 = vpack.c.b16 %v1451_v0, %v1450_v14  ;;  %v716_v5 = vld [vmem:[#allocation2 + $0x159] sm:$0xff]  ;;  %v1278_v51 = vpack.c.b16 %v1259_v7, %v1258_v63  ;;  %v1374_v9 = vpack.c.b16 %v1355_v30, %v1354_v45 }
 0x134   : > { %v2568_v20 = vpop.f32.mrf.mxu1  ;;  %v748_v14 = vpack.c.bf16 %v716_v5, %v716_v5  ;;  %v256_v0 = vld [vmem:[%s3857_s29 + $0xf8] sm:$0xff]  ;;  %v3724_v7 = vld [vmem:[%s4610_s3 + $0x180] sm:$0xff] }
 0x135   : > { %2780 = vmatmul.bf16.gmra.mxu3 %v1373_v24  ;;  %v2569_v61 = vadd.f32 %v2568_v20, %v4208_v11  ;;  %v620_v20 = vpack.c.bf16 %v588_v50, %v588_v50  ;;  %2991 = vmatpush.bf16.msra.mxu2 %v3724_v7 }
 0x136   : > { %v2652_v4 = vpop.f32.mrf.mxu2  ;;  %v1453_v63 = vunpack.c.l.b16 %v748_v14  ;;  %v3716_v14 = vld [vmem:[%s4610_s3 + $0x140] sm:$0xff] }
 0x137   : > { %v2653_v56 = vadd.f32 %v2652_v4, %v2564_v19  ;;  %2607 = vmatmul.bf16.gmra.mxu1 %v1469_v52  ;;  %v715_v52 = vld [vmem:[#allocation2 + $0x151] sm:$0xff] }
 0x138   : > { %v2741_v53 = vpop.f32.mrf.mxu3  ;;  %v747_v28 = vpack.c.bf16 %v715_v52, %v715_v52  ;;  %v652_v52 = vld [vmem:[#allocation2 + $0x158] sm:$0xff]  ;;  %2902 = vmatpush.bf16.msra.mxu1 %v3716_v14  ;;  %v653_v14 = vld [vmem:[#allocation2 + $0x168] sm:$0xff] }
 0x139   : > { %v2742_v12 = vadd.f32 %v2741_v53, %v2653_v56  ;;  %v3785_v53 = vld [vmem:[%s4609_s2] ss:$0 sm:$0xff] }
 0x13a   : > { %v4355_v62 = vpop.f32.mrf.mxu0  ;;  %v1452_v34 = vunpack.c.l.b16 %v747_v28 }
 0x13b   : > { %v4357_v10 = vadd.f32 %v2830_v22, %v2742_v12  ;;  %v3784_v22 = vld [vmem:[%s4608_s1] ss:$0 sm:$0xff] }
 0x13c   : > { %v2570_v40 = vpop.f32.mrf.mxu1  ;;  %v291_v36 = vmul.f32 %v3784_v22, %v255_v54  ;;  %v292_v43 = vmul.f32 %v3784_v22, %v256_v0  ;;  %v1471_v28 = vpack.c.b16 %v1453_v63, %v1452_v34  ;;  %v717_v34 = vld [vmem:[#allocation2 + $0x169] sm:$0xff]  ;;  %v718_v63 = vld [vmem:[#allocation2 + $0x171] sm:$0xff] }
 0x13d   : > { %2874 = vmatmul.bf16.gmra.mxu0 %v1470_v16  ;;  %v2571_v50 = vadd.f32 %v2570_v40, %v4216_v25  ;;  %v590_v25 = vld [vmem:[#allocation2 + $0x15a] sm:$0xff] }
 0x13e   : > { %v2654_v19 = vpop.f32.mrf.mxu2  ;;  %v327_v12 = vadd.f32 %v3785_v53, %v291_v36  ;;  %v328_v45 = vadd.f32 %v3785_v53, %v292_v43  ;;  %v1261_v36 = vunpack.c.l.b16 %v620_v20 }
 0x13f   : > { %v2655_v31 = vadd.f32 %v2654_v19, %v2566_v8  ;;  %v587_v8 = vld [vmem:[#allocation2 + $0x13a] sm:$0xff]  ;;  %v651_v19 = vld [vmem:[#allocation2 + $0x150] sm:$0xff] }
 0x140   : > { %v2743_v24 = vpop.f32.mrf.mxu3  ;;  %v4376_v5 = vmax.f32 %v327_v12, 0.0  ;;  %v619_v11 = vpack.c.bf16 %v587_v8, %v587_v8 }
 0x141   : > { %v2744_v1 = vadd.f32 %v2743_v24, %v2655_v31 }
 0x142   : > { %v2837_v4 = vpop.f32.mrf.mxu0  ;;  %431 = vst [vmem:[#allocation2 + $0x181] sm:$0xff] %v4376_v5  ;;  %v1260_v22 = vunpack.c.l.b16 %v619_v11 }
 0x143   : > { %2696 = vmatmul.bf16.gmra.mxu2 %v1278_v51  ;;  %v4364_v56 = vadd.f32 %v2832_v27, %v2744_v1  ;;  %v3732_v27 = vld [vmem:[%s4610_s3 + $0x1c0] sm:$0xff]  ;;  %v4378_v51 = vmax.f32 %v328_v45, 0.0  ;;  %v683_v1 = vpack.c.bf16 %v651_v19, %v651_v19 }
 0x144   : > { %v2573_v58 = vpop.f32.mrf.mxu1  ;;  %3080 = vmatpush.bf16.msra.mxu3 %v3732_v27  ;;  %v1279_v27 = vpack.c.b16 %v1261_v36, %v1260_v22 }
 0x145   : > { %2785 = vmatmul.bf16.gmra.mxu3 %v1374_v9  ;;  %v684_v9 = vpack.c.bf16 %v652_v52, %v652_v52  ;;  %432 = vst [vmem:[#allocation2 + $0x189] sm:$0xff] %v4378_v51  ;;  %v1356_v53 = vunpack.c.l.b16 %v683_v1  ;;  %v749_v52 = vpack.c.bf16 %v717_v34, %v717_v34  ;;  %v2574_v40 = vadd.f32 %v2573_v58, %v4224_v33 }
 0x146   : > { %v2657_v30 = vpop.f32.mrf.mxu2 }
 0x147   : > { %v2658_v31 = vadd.f32 %v2657_v30, %v2569_v61  ;;  %2612 = vmatmul.bf16.gmra.mxu1 %v1470_v16  ;;  %v3740_v16 = vld [vmem:[%s4610_s3 + $0x200] sm:$0xff]  ;;  %v1357_v12 = vunpack.c.l.b16 %v684_v9 }
 0x148   : > { %v2746_v24 = vpop.f32.mrf.mxu3  ;;  %3169 = vmatpush.bf16.msra.mxu0 %v3740_v16  ;;  %v654_v16 = vld [vmem:[#allocation2 + $0x170] sm:$0xff] }
 0x149   : > { %v2747_v54 = vadd.f32 %v2746_v24, %v2658_v31  ;;  %v1375_v19 = vpack.c.b16 %v1357_v12, %v1356_v53  ;;  %v750_v31 = vpack.c.bf16 %v718_v63, %v718_v63  ;;  %v589_v24 = vld [vmem:[#allocation2 + $0x152] sm:$0xff] }
 0x14a   : > { %v2840_v0 = vpop.f32.mrf.mxu0  ;;  %v621_v36 = vpack.c.bf16 %v589_v24, %v589_v24 }
 0x14b   : > { %v4389_v43 = vadd.f32 %v4355_v62, %v2747_v54  ;;  %v1454_v54 = vunpack.c.l.b16 %v749_v52  ;;  %v1455_v1 = vunpack.c.l.b16 %v750_v31 }
 0x14c   : > { %v2575_v8 = vpop.f32.mrf.mxu1 }
 0x14d   : > { %2879 = vmatmul.bf16.gmra.mxu0 %v1471_v28  ;;  %v1472_v34 = vpack.c.b16 %v1455_v1, %v1454_v54  ;;  %v2576_v58 = vadd.f32 %v2575_v8, %v4245_v55  ;;  %v751_v54 = vpack.c.bf16 %v4376_v5, %v4376_v5  ;;  %v752_v1 = vpack.c.bf16 %v4378_v51, %v4378_v51  ;;  %v592_v8 = vld [vmem:[#allocation2 + $0x172] sm:$0xff] }
 0x14e   : > { %v2659_v61 = vpop.f32.mrf.mxu2 }
 0x14f   : > { %v2660_v7 = vadd.f32 %v2659_v61, %v2571_v50  ;;  %v622_v50 = vpack.c.bf16 %v590_v25, %v590_v25  ;;  %v685_v61 = vpack.c.bf16 %v653_v14, %v653_v14 }
 0x150   : > { %v2748_v45 = vpop.f32.mrf.mxu3 }
 0x151   : > { %v2749_v30 = vadd.f32 %v2748_v45, %v2660_v7  ;;  %v1262_v7 = vunpack.c.l.b16 %v621_v36  ;;  %v1457_v36 = vunpack.c.l.b16 %v752_v1 }
 0x152   : > { %v2842_v11 = vpop.f32.mrf.mxu0 }
 0x153   : > { %2701 = vmatmul.bf16.gmra.mxu2 %v1279_v27  ;;  %v4392_v62 = vadd.f32 %v2837_v4, %v2749_v30  ;;  %v686_v4 = vpack.c.bf16 %v654_v16, %v654_v16  ;;  %v1263_v27 = vunpack.c.l.b16 %v622_v50  ;;  %v1358_v30 = vunpack.c.l.b16 %v685_v61  ;;  %v656_v61 = vld [vmem:[#allocation2 + $0x188] sm:$0xff] }
 0x154   : > { %v2578_v20 = vpop.f32.mrf.mxu1 }
 0x155   : > { %2790 = vmatmul.bf16.gmra.mxu3 %v1375_v19  ;;  %v1359_v19 = vunpack.c.l.b16 %v686_v4  ;;  %v1280_v31 = vpack.c.b16 %v1263_v27, %v1262_v7  ;;  %v2579_v16 = vadd.f32 %v2578_v20, %v4257_v48  ;;  %v624_v4 = vpack.c.bf16 %v592_v8, %v592_v8  ;;  %v753_v7 = vld [vmem:[#allocation2 + $0x1a] sm:$0xff]  ;;  %v754_v27 = vld [vmem:[#allocation2 + $0x22] sm:$0xff] }
 0x156   : > { %v2662_v9 = vpop.f32.mrf.mxu2  ;;  %v785_v20 = vpack.c.bf16 %v753_v7, %v753_v7  ;;  %v947_v8 = vld [vmem:[#allocation2 + $0x3a] sm:$0xff] }
 0x157   : > { %v2663_v22 = vadd.f32 %v2662_v9, %v2574_v40  ;;  %2617 = vmatmul.bf16.gmra.mxu1 %v1471_v28  ;;  %v1376_v40 = vpack.c.b16 %v1359_v19, %v1358_v30  ;;  %v591_v9 = vld [vmem:[#allocation2 + $0x16a] sm:$0xff]  ;;  %v688_v30 = vpack.c.bf16 %v656_v61, %v656_v61  ;;  %v1265_v48 = vunpack.c.l.b16 %v624_v4 }
 0x158   : > { %v2751_v53 = vpop.f32.mrf.mxu3  ;;  %v979_v4 = vpack.c.bf16 %v947_v8, %v947_v8 }
 0x159   : > { %v2752_v12 = vadd.f32 %v2751_v53, %v2663_v22  ;;  %v1456_v22 = vunpack.c.l.b16 %v751_v54  ;;  %v623_v53 = vpack.c.bf16 %v591_v9, %v591_v9  ;;  %v946_v9 = vld [vmem:[#allocation2 + $0x32] sm:$0xff] }
 0x15a   : > { %v2845_v63 = vpop.f32.mrf.mxu0 }
 0x15b   : > { %v4395_v45 = vadd.f32 %v2840_v0, %v2752_v12  ;;  %v655_v12 = vld [vmem:[#allocation2 + $0x180] sm:$0xff]  ;;  %v1473_v19 = vpack.c.b16 %v1457_v36, %v1456_v22 }
 0x15c   : > { %v2580_v33 = vpop.f32.mrf.mxu1 }
 0x15d   : > { %2884 = vmatmul.bf16.gmra.mxu0 %v1472_v34 }
 0x15e   : > { %v2664_v52 = vpop.f32.mrf.mxu2 }
 0x15f   : > { %v2665_v28 = vadd.f32 %v2664_v52, %v2576_v58 }
 0x160   : > { %v2753_v24 = vpop.f32.mrf.mxu3 }
 0x161   : > { %v2754_v25 = vadd.f32 %v2753_v24, %v2665_v28  ;;  %v1264_v28 = vunpack.c.l.b16 %v623_v53 }
 0x162   : > { %v2847_v0 = vpop.f32.mrf.mxu0 }
 0x163   : > { %2706 = vmatmul.bf16.gmra.mxu2 %v1280_v31  ;;  %v4402_v14 = vadd.f32 %v2842_v11, %v2754_v25  ;;  %v687_v11 = vpack.c.bf16 %v655_v12, %v655_v12  ;;  %v786_v31 = vpack.c.bf16 %v754_v27, %v754_v27  ;;  %v1522_v12 = vunpack.c.l.b16 %v785_v20  ;;  %v819_v27 = vld [vmem:[#allocation2 + $0x38] sm:$0xff] }
 0x164   : > { %v2583_v55 = vpop.f32.mrf.mxu1 }
 0x165   : > { %2795 = vmatmul.bf16.gmra.mxu3 %v1376_v40  ;;  %v2581_v40 = vadd.f32 %v2580_v33, %v4266_v44  ;;  %v1360_v54 = vunpack.c.l.b16 %v687_v11  ;;  %v1523_v22 = vunpack.c.l.b16 %v786_v31  ;;  %v818_v33 = vld [vmem:[#allocation2 + $0x30] sm:$0xff] }
 0x166   : > { %v2667_v50 = vpop.f32.mrf.mxu2  ;;  %v850_v31 = vpack.c.bf16 %v818_v33, %v818_v33 }
 0x167   : > { %v2668_v5 = vadd.f32 %v2667_v50, %v2579_v16  ;;  %2622 = vmatmul.bf16.gmra.mxu1 %v1472_v34  ;;  %v1361_v34 = vunpack.c.l.b16 %v688_v30  ;;  %v1281_v50 = vpack.c.b16 %v1265_v48, %v1264_v28  ;;  %v1811_v30 = vunpack.c.l.b16 %v979_v4  ;;  %v882_v28 = vld [vmem:[#allocation2 + $0x31] sm:$0xff]  ;;  %v883_v48 = vld [vmem:[#allocation2 + $0x39] sm:$0xff] }
 0x168   : > { %v2756_v51 = vpop.f32.mrf.mxu3 }
 0x169   : > { %v2757_v58 = vadd.f32 %v2756_v51, %v2668_v5  ;;  %v1377_v61 = vpack.c.b16 %v1361_v34, %v1360_v54  ;;  %v978_v5 = vpack.c.bf16 %v946_v9, %v946_v9  ;;  %v1554_v51 = vpack.c.b16 %v1523_v22, %v1522_v12 }
 0x16a   : > { %v2850_v52 = vpop.f32.mrf.mxu0 }
 0x16b   : > { %v4405_v24 = vadd.f32 %v2845_v63, %v2757_v58  ;;  %v2584_v58 = vadd.f32 %v2583_v55, %v4274_v21  ;;  %v1810_v11 = vunpack.c.l.b16 %v978_v5  ;;  %v949_v5 = vld [vmem:[#allocation2 + $0x52] sm:$0xff] }
 0x16c   : > { %v2585_v25 = vpop.f32.mrf.mxu1 }
 0x16d   : > { %2889 = vmatmul.bf16.gmra.mxu0 %v1473_v19  ;;  %v1842_v9 = vpack.c.b16 %v1811_v30, %v1810_v11  ;;  %v2586_v55 = vadd.f32 %v2585_v25, %v4295_v3  ;;  %v981_v30 = vpack.c.bf16 %v949_v5, %v949_v5  ;;  %v821_v3 = vld [vmem:[#allocation2 + $0x50] sm:$0xff] }
 0x16e   : > { %v2669_v1 = vpop.f32.mrf.mxu2 }
 0x16f   : > { %v2670_v16 = vadd.f32 %v2669_v1, %v2581_v40  ;;  %v851_v40 = vpack.c.bf16 %v819_v27, %v819_v27  ;;  %v914_v1 = vpack.c.bf16 %v882_v28, %v882_v28 }
 0x170   : > { %v2758_v36 = vpop.f32.mrf.mxu3 }
 0x171   : > { %v2759_v53 = vadd.f32 %v2758_v36, %v2670_v16  ;;  %v1618_v16 = vunpack.c.l.b16 %v850_v31  ;;  %v1714_v22 = vunpack.c.l.b16 %v914_v1  ;;  %v1813_v31 = vunpack.c.l.b16 %v981_v30 }
 0x172   : > { %v2852_v63 = vpop.f32.mrf.mxu0 }
 0x173   : > { %2711 = vmatmul.bf16.gmra.mxu2 %v1281_v50  ;;  %v4408_v7 = vadd.f32 %v2847_v0, %v2759_v53  ;;  %v915_v0 = vpack.c.bf16 %v883_v48, %v883_v48  ;;  %v1619_v50 = vunpack.c.l.b16 %v851_v40  ;;  %v820_v48 = vld [vmem:[#allocation2 + $0x48] sm:$0xff] }
 0x174   : > { %v2588_v44 = vpop.f32.mrf.mxu1 }
 0x175   : > { %2800 = vmatmul.bf16.gmra.mxu3 %v1377_v61  ;;  %v1715_v36 = vunpack.c.l.b16 %v915_v0  ;;  %v948_v61 = vld [vmem:[#allocation2 + $0x4a] sm:$0xff]  ;;  %v2589_v25 = vadd.f32 %v2588_v44, %v4233_v46  ;;  %v852_v0 = vpack.c.bf16 %v820_v48, %v820_v48 }
 0x176   : > { %v2672_v19 = vpop.f32.mrf.mxu2  ;;  %v980_v11 = vpack.c.bf16 %v948_v61, %v948_v61 }
 0x177   : > { %v2673_v20 = vadd.f32 %v2672_v19, %v2584_v58  ;;  %2903 = vmatmul.bf16.vlgmr.msra.gmra.mxu1 %v1554_v51  ;;  %v1650_v51 = vpack.c.b16 %v1619_v50, %v1618_v16  ;;  %v1746_v58 = vpack.c.b16 %v1715_v36, %v1714_v22  ;;  %v853_v16 = vpack.c.bf16 %v821_v3, %v821_v3 }
 0x178   : > { %v2761_v54 = vpop.f32.mrf.mxu3  ;;  %v1620_v61 = vunpack.c.l.b16 %v852_v0 }
 0x179   : > { %v2762_v34 = vadd.f32 %v2761_v54, %v2673_v20  ;;  %v1812_v20 = vunpack.c.l.b16 %v980_v11  ;;  %v884_v54 = vld [vmem:[#allocation2 + $0x49] sm:$0xff]  ;;  %v1621_v5 = vunpack.c.l.b16 %v853_v16 }
 0x17a   : > { %v2855_v8 = vpop.f32.mrf.mxu0  ;;  %v916_v22 = vpack.c.bf16 %v884_v54, %v884_v54 }
 0x17b   : > { %v4411_v12 = vadd.f32 %v2850_v52, %v2762_v34  ;;  %v885_v34 = vld [vmem:[#allocation2 + $0x51] sm:$0xff]  ;;  %v1843_v36 = vpack.c.b16 %v1813_v31, %v1812_v20  ;;  %v1651_v30 = vpack.c.b16 %v1621_v5, %v1620_v61 }
 0x17c   : > { %v2590_v21 = vpop.f32.mrf.mxu1 }
 0x17d   : > { %3170 = vmatmul.bf16.vlgmr.msra.gmra.mxu0 %v1842_v9  ;;  %v2591_v44 = vadd.f32 %v2590_v21, %v4247_v2  ;;  %v823_v2 = vld [vmem:[#allocation2 + $0x68] sm:$0xff] }
 0x17e   : > { %v2674_v53 = vpop.f32.mrf.mxu2  ;;  %v855_v61 = vpack.c.bf16 %v823_v2, %v823_v2 }
 0x17f   : > { %v2675_v4 = vadd.f32 %v2674_v53, %v2586_v55 }
 0x180   : > { %v2763_v33 = vpop.f32.mrf.mxu3 }
 0x181   : > { %v2764_v27 = vadd.f32 %v2763_v33, %v2675_v4 }
 0x182   : > { %v2857_v19 = vpop.f32.mrf.mxu0 }
 0x183   : > { %2992 = vmatmul.bf16.vlgmr.msra.gmra.mxu2 %v1650_v51  ;;  %v4414_v52 = vadd.f32 %v2852_v63, %v2764_v27  ;;  %v917_v63 = vpack.c.bf16 %v885_v34, %v885_v34  ;;  %v1716_v51 = vunpack.c.l.b16 %v916_v22  ;;  %v822_v34 = vld [vmem:[#allocation2 + $0x60] sm:$0xff] }
 0x184   : > { %v2593_v28 = vpop.f32.mrf.mxu1 }
 0x185   : > { %3081 = vmatmul.bf16.vlgmr.msra.gmra.mxu3 %v1746_v58  ;;  %v1717_v33 = vunpack.c.l.b16 %v917_v63  ;;  %v951_v58 = vld [vmem:[#allocation2 + $0x6a] sm:$0xff]  ;;  %v2594_v21 = vadd.f32 %v2593_v28, %v4260_v6  ;;  %v854_v63 = vpack.c.bf16 %v822_v34, %v822_v34 }
 0x186   : > { %v2677_v40 = vpop.f32.mrf.mxu2  ;;  %v983_v31 = vpack.c.bf16 %v951_v58, %v951_v58  ;;  %v1623_v58 = vunpack.c.l.b16 %v855_v61 }
 0x187   : > { %v2678_v1 = vadd.f32 %v2677_v40, %v2589_v25  ;;  %2908 = vmatmul.bf16.gmra.mxu1 %v1842_v9  ;;  %v950_v9 = vld [vmem:[#allocation2 + $0x62] sm:$0xff]  ;;  %v1747_v25 = vpack.c.b16 %v1717_v33, %v1716_v51 }
 0x188   : > { %v2766_v50 = vpop.f32.mrf.mxu3  ;;  %v982_v20 = vpack.c.bf16 %v950_v9, %v950_v9  ;;  %v1815_v0 = vunpack.c.l.b16 %v983_v31  ;;  %v1622_v9 = vunpack.c.l.b16 %v854_v63 }
 0x189   : > { %v2767_v55 = vadd.f32 %v2766_v50, %v2678_v1  ;;  %v886_v50 = vld [vmem:[#allocation2 + $0x61] sm:$0xff] }
 0x18a   : > { %v2860_v53 = vpop.f32.mrf.mxu0  ;;  %v1814_v1 = vunpack.c.l.b16 %v982_v20  ;;  %v918_v51 = vpack.c.bf16 %v886_v50, %v886_v50  ;;  %v1652_v31 = vpack.c.b16 %v1623_v58, %v1622_v9 }
 0x18b   : > { %v4417_v4 = vadd.f32 %v2855_v8, %v2767_v55  ;;  %v887_v55 = vld [vmem:[#allocation2 + $0x69] sm:$0xff] }
 0x18c   : > { %v2595_v46 = vpop.f32.mrf.mxu1  ;;  %v1844_v33 = vpack.c.b16 %v1815_v0, %v1814_v1 }
 0x18d   : > { %3175 = vmatmul.bf16.gmra.mxu0 %v1843_v36  ;;  %v2596_v28 = vadd.f32 %v2595_v46, %v4268_v15  ;;  %v825_v15 = vld [vmem:[#allocation2 + $0x80] sm:$0xff] }
 0x18e   : > { %v2679_v27 = vpop.f32.mrf.mxu2  ;;  %v857_v9 = vpack.c.bf16 %v825_v15, %v825_v15 }
 0x18f   : > { %v2680_v11 = vadd.f32 %v2679_v27, %v2591_v44 }
 0x190   : > { %v2768_v48 = vpop.f32.mrf.mxu3 }
 0x191   : > { %v2769_v3 = vadd.f32 %v2768_v48, %v2680_v11 }
 0x192   : > { %v2862_v40 = vpop.f32.mrf.mxu0 }
 0x193   : > { %2997 = vmatmul.bf16.gmra.mxu2 %v1651_v30  ;;  %v4420_v8 = vadd.f32 %v2857_v19, %v2769_v3  ;;  %v919_v19 = vpack.c.bf16 %v887_v55, %v887_v55  ;;  %v1718_v30 = vunpack.c.l.b16 %v918_v51  ;;  %v824_v55 = vld [vmem:[#allocation2 + $0x78] sm:$0xff] }
 0x194   : > { %v2598_v54 = vpop.f32.mrf.mxu1 }
 0x195   : > { %3086 = vmatmul.bf16.gmra.mxu3 %v1747_v25  ;;  %v1719_v48 = vunpack.c.l.b16 %v919_v19  ;;  %v953_v25 = vld [vmem:[#allocation2 + $0x82] sm:$0xff]  ;;  %v2599_v46 = vadd.f32 %v2598_v54, %v4283_v39  ;;  %v856_v19 = vpack.c.bf16 %v824_v55, %v824_v55 }
 0x196   : > { %v2682_v16 = vpop.f32.mrf.mxu2  ;;  %v985_v0 = vpack.c.bf16 %v953_v25, %v953_v25  ;;  %v1625_v25 = vunpack.c.l.b16 %v857_v9 }
 0x197   : > { %v2683_v22 = vadd.f32 %v2682_v16, %v2594_v21  ;;  %2913 = vmatmul.bf16.gmra.mxu1 %v1843_v36  ;;  %v952_v36 = vld [vmem:[#allocation2 + $0x7a] sm:$0xff]  ;;  %v1748_v21 = vpack.c.b16 %v1719_v48, %v1718_v30 }
 0x198   : > { %v2771_v5 = vpop.f32.mrf.mxu3  ;;  %v984_v1 = vpack.c.bf16 %v952_v36, %v952_v36  ;;  %v1817_v63 = vunpack.c.l.b16 %v985_v0  ;;  %v1624_v36 = vunpack.c.l.b16 %v856_v19 }
 0x199   : > { %v2772_v44 = vadd.f32 %v2771_v5, %v2683_v22  ;;  %v888_v5 = vld [vmem:[#allocation2 + $0x79] sm:$0xff] }
 0x19a   : > { %v2865_v27 = vpop.f32.mrf.mxu0  ;;  %v1816_v22 = vunpack.c.l.b16 %v984_v1  ;;  %v920_v30 = vpack.c.bf16 %v888_v5, %v888_v5  ;;  %v1653_v0 = vpack.c.b16 %v1625_v25, %v1624_v36 }
 0x19b   : > { %v4423_v11 = vadd.f32 %v2860_v53, %v2772_v44  ;;  %v889_v44 = vld [vmem:[#allocation2 + $0x81] sm:$0xff] }
 0x19c   : > { %v2600_v6 = vpop.f32.mrf.mxu1  ;;  %v1845_v48 = vpack.c.b16 %v1817_v63, %v1816_v22 }
 0x19d   : > { %3180 = vmatmul.bf16.gmra.mxu0 %v1844_v33  ;;  %v2601_v54 = vadd.f32 %v2600_v6, %v4297_v49  ;;  %v827_v49 = vld [vmem:[#allocation2 + $0x98] sm:$0xff] }
 0x19e   : > { %v2684_v3 = vpop.f32.mrf.mxu2  ;;  %v859_v36 = vpack.c.bf16 %v827_v49, %v827_v49 }
 0x19f   : > { %v2685_v20 = vadd.f32 %v2684_v3, %v2596_v28 }
 0x1a0   : > { %v2773_v34 = vpop.f32.mrf.mxu3 }
 0x1a1   : > { %v2774_v2 = vadd.f32 %v2773_v34, %v2685_v20 }
 0x1a2   : > { %v2867_v16 = vpop.f32.mrf.mxu0 }
 0x1a3   : > { %3002 = vmatmul.bf16.gmra.mxu2 %v1652_v31  ;;  %v4426_v53 = vadd.f32 %v2862_v40, %v2774_v2  ;;  %v921_v40 = vpack.c.bf16 %v889_v44, %v889_v44  ;;  %v1720_v31 = vunpack.c.l.b16 %v920_v30  ;;  %v826_v44 = vld [vmem:[#allocation2 + $0x90] sm:$0xff] }
 0x1a4   : > { %v2603_v50 = vpop.f32.mrf.mxu1 }
 0x1a5   : > { %3091 = vmatmul.bf16.gmra.mxu3 %v1748_v21  ;;  %v1721_v34 = vunpack.c.l.b16 %v921_v40  ;;  %v955_v21 = vld [vmem:[#allocation2 + $0x9a] sm:$0xff]  ;;  %v2604_v6 = vadd.f32 %v2603_v50, %v4303_v13  ;;  %v858_v40 = vpack.c.bf16 %v826_v44, %v826_v44 }
 0x1a6   : > { %v2687_v61 = vpop.f32.mrf.mxu2  ;;  %v987_v63 = vpack.c.bf16 %v955_v21, %v955_v21  ;;  %v1627_v21 = vunpack.c.l.b16 %v859_v36 }
 0x1a7   : > { %v2688_v51 = vadd.f32 %v2687_v61, %v2599_v46  ;;  %2918 = vmatmul.bf16.gmra.mxu1 %v1844_v33  ;;  %v954_v33 = vld [vmem:[#allocation2 + $0x92] sm:$0xff]  ;;  %v1749_v46 = vpack.c.b16 %v1721_v34, %v1720_v31 }
 0x1a8   : > { %v2776_v58 = vpop.f32.mrf.mxu3  ;;  %v986_v22 = vpack.c.bf16 %v954_v33, %v954_v33  ;;  %v1819_v19 = vunpack.c.l.b16 %v987_v63  ;;  %v1626_v33 = vunpack.c.l.b16 %v858_v40 }
 0x1a9   : > { %v2777_v28 = vadd.f32 %v2776_v58, %v2688_v51  ;;  %v890_v58 = vld [vmem:[#allocation2 + $0x91] sm:$0xff] }
 0x1aa   : > { %v2870_v3 = vpop.f32.mrf.mxu0  ;;  %v1818_v51 = vunpack.c.l.b16 %v986_v22  ;;  %v922_v31 = vpack.c.bf16 %v890_v58, %v890_v58  ;;  %v1654_v63 = vpack.c.b16 %v1627_v21, %v1626_v33 }
 0x1ab   : > { %v4429_v20 = vadd.f32 %v2865_v27, %v2777_v28  ;;  %v891_v28 = vld [vmem:[#allocation2 + $0x99] sm:$0xff] }
 0x1ac   : > { %v2605_v39 = vpop.f32.mrf.mxu1  ;;  %v1846_v34 = vpack.c.b16 %v1819_v19, %v1818_v51 }
 0x1ad   : > { %3185 = vmatmul.bf16.gmra.mxu0 %v1845_v48  ;;  %v2606_v50 = vadd.f32 %v2605_v39, %v4308_v23  ;;  %v829_v23 = vld [vmem:[#allocation2 + $0xb0] sm:$0xff] }
 0x1ae   : > { %v2689_v2 = vpop.f32.mrf.mxu2  ;;  %v861_v33 = vpack.c.bf16 %v829_v23, %v829_v23 }
 0x1af   : > { %v2690_v1 = vadd.f32 %v2689_v2, %v2601_v54 }
 0x1b0   : > { %v2778_v55 = vpop.f32.mrf.mxu3 }
 0x1b1   : > { %v2779_v15 = vadd.f32 %v2778_v55, %v2690_v1 }
 0x1b2   : > { %v2872_v61 = vpop.f32.mrf.mxu0 }
 0x1b3   : > { %3007 = vmatmul.bf16.gmra.mxu2 %v1653_v0  ;;  %v4432_v27 = vadd.f32 %v2867_v16, %v2779_v15  ;;  %v923_v16 = vpack.c.bf16 %v891_v28, %v891_v28  ;;  %v1722_v0 = vunpack.c.l.b16 %v922_v31  ;;  %v828_v28 = vld [vmem:[#allocation2 + $0xa8] sm:$0xff] }
 0x1b4   : > { %v2608_v5 = vpop.f32.mrf.mxu1 }
 0x1b5   : > { %3096 = vmatmul.bf16.gmra.mxu3 %v1749_v46  ;;  %v1723_v55 = vunpack.c.l.b16 %v923_v16  ;;  %v957_v46 = vld [vmem:[#allocation2 + $0xb2] sm:$0xff]  ;;  %v2609_v39 = vadd.f32 %v2608_v5, %v4235_v47  ;;  %v860_v16 = vpack.c.bf16 %v828_v28, %v828_v28 }
 0x1b6   : > { %v2692_v9 = vpop.f32.mrf.mxu2  ;;  %v989_v19 = vpack.c.bf16 %v957_v46, %v957_v46  ;;  %v1629_v46 = vunpack.c.l.b16 %v861_v33 }
 0x1b7   : > { %v2693_v30 = vadd.f32 %v2692_v9, %v2604_v6  ;;  %2923 = vmatmul.bf16.gmra.mxu1 %v1845_v48  ;;  %v956_v48 = vld [vmem:[#allocation2 + $0xaa] sm:$0xff]  ;;  %v1750_v6 = vpack.c.b16 %v1723_v55, %v1722_v0 }
 0x1b8   : > { %v2781_v25 = vpop.f32.mrf.mxu3  ;;  %v988_v51 = vpack.c.bf16 %v956_v48, %v956_v48  ;;  %v1821_v40 = vunpack.c.l.b16 %v989_v19  ;;  %v1628_v48 = vunpack.c.l.b16 %v860_v16 }
 0x1b9   : > { %v2782_v54 = vadd.f32 %v2781_v25, %v2693_v30  ;;  %v892_v25 = vld [vmem:[#allocation2 + $0xa9] sm:$0xff] }
 0x1ba   : > { %v2875_v2 = vpop.f32.mrf.mxu0  ;;  %v1820_v30 = vunpack.c.l.b16 %v988_v51  ;;  %v924_v0 = vpack.c.bf16 %v892_v25, %v892_v25  ;;  %v1655_v19 = vpack.c.b16 %v1629_v46, %v1628_v48 }
 0x1bb   : > { %v4435_v1 = vadd.f32 %v2870_v3, %v2782_v54  ;;  %v893_v54 = vld [vmem:[#allocation2 + $0xb1] sm:$0xff] }
 0x1bc   : > { %v2610_v13 = vpop.f32.mrf.mxu1  ;;  %v1847_v55 = vpack.c.b16 %v1821_v40, %v1820_v30 }
 0x1bd   : > { %3190 = vmatmul.bf16.gmra.mxu0 %v1846_v34  ;;  %v2611_v5 = vadd.f32 %v2610_v13, %v4249_v57  ;;  %v831_v57 = vld [vmem:[#allocation2 + $0xc8] sm:$0xff] }
 0x1be   : > { %v2694_v15 = vpop.f32.mrf.mxu2  ;;  %v863_v48 = vpack.c.bf16 %v831_v57, %v831_v57 }
 0x1bf   : > { %v2695_v22 = vadd.f32 %v2694_v15, %v2606_v50 }
 0x1c0   : > { %v2783_v44 = vpop.f32.mrf.mxu3 }
 0x1c1   : > { %v2784_v49 = vadd.f32 %v2783_v44, %v2695_v22 }
 0x1c2   : > { %v2877_v9 = vpop.f32.mrf.mxu0 }
 0x1c3   : > { %3012 = vmatmul.bf16.gmra.mxu2 %v1654_v63  ;;  %v4438_v3 = vadd.f32 %v2872_v61, %v2784_v49  ;;  %v925_v61 = vpack.c.bf16 %v893_v54, %v893_v54  ;;  %v1724_v63 = vunpack.c.l.b16 %v924_v0  ;;  %v830_v54 = vld [vmem:[#allocation2 + $0xc0] sm:$0xff] }
 0x1c4   : > { %v2613_v58 = vpop.f32.mrf.mxu1 }
 0x1c5   : > { %3101 = vmatmul.bf16.gmra.mxu3 %v1750_v6  ;;  %v1725_v44 = vunpack.c.l.b16 %v925_v61  ;;  %v959_v6 = vld [vmem:[#allocation2 + $0xca] sm:$0xff]  ;;  %v2614_v13 = vadd.f32 %v2613_v58, %v4262_v42  ;;  %v862_v61 = vpack.c.bf16 %v830_v54, %v830_v54 }
 0x1c6   : > { %v2697_v36 = vpop.f32.mrf.mxu2  ;;  %v991_v40 = vpack.c.bf16 %v959_v6, %v959_v6  ;;  %v1631_v6 = vunpack.c.l.b16 %v863_v48 }
 0x1c7   : > { %v2698_v31 = vadd.f32 %v2697_v36, %v2609_v39  ;;  %2928 = vmatmul.bf16.gmra.mxu1 %v1846_v34  ;;  %v958_v34 = vld [vmem:[#allocation2 + $0xc2] sm:$0xff]  ;;  %v1751_v39 = vpack.c.b16 %v1725_v44, %v1724_v63 }
 0x1c8   : > { %v2786_v21 = vpop.f32.mrf.mxu3  ;;  %v990_v30 = vpack.c.bf16 %v958_v34, %v958_v34  ;;  %v1823_v16 = vunpack.c.l.b16 %v991_v40  ;;  %v1630_v34 = vunpack.c.l.b16 %v862_v61 }
 0x1c9   : > { %v2787_v50 = vadd.f32 %v2786_v21, %v2698_v31  ;;  %v894_v21 = vld [vmem:[#allocation2 + $0xc1] sm:$0xff] }
 0x1ca   : > { %v2880_v15 = vpop.f32.mrf.mxu0  ;;  %v1822_v31 = vunpack.c.l.b16 %v990_v30  ;;  %v926_v63 = vpack.c.bf16 %v894_v21, %v894_v21  ;;  %v1656_v40 = vpack.c.b16 %v1631_v6, %v1630_v34 }
 0x1cb   : > { %v4441_v22 = vadd.f32 %v2875_v2, %v2787_v50  ;;  %v895_v50 = vld [vmem:[#allocation2 + $0xc9] sm:$0xff] }
 0x1cc   : > { %v2615_v47 = vpop.f32.mrf.mxu1  ;;  %v1848_v44 = vpack.c.b16 %v1823_v16, %v1822_v31 }
 0x1cd   : > { %3195 = vmatmul.bf16.gmra.mxu0 %v1847_v55  ;;  %v2616_v58 = vadd.f32 %v2615_v47, %v4270_v17  ;;  %v833_v17 = vld [vmem:[#allocation2 + $0xe0] sm:$0xff] }
 0x1ce   : > { %v2699_v49 = vpop.f32.mrf.mxu2  ;;  %v865_v34 = vpack.c.bf16 %v833_v17, %v833_v17 }
 0x1cf   : > { %v2700_v51 = vadd.f32 %v2699_v49, %v2611_v5 }
 0x1d0   : > { %v2788_v28 = vpop.f32.mrf.mxu3 }
 0x1d1   : > { %v2789_v23 = vadd.f32 %v2788_v28, %v2700_v51 }
 0x1d2   : > { %v2882_v36 = vpop.f32.mrf.mxu0 }
 0x1d3   : > { %3017 = vmatmul.bf16.gmra.mxu2 %v1655_v19  ;;  %v4444_v2 = vadd.f32 %v2877_v9, %v2789_v23  ;;  %v927_v9 = vpack.c.bf16 %v895_v50, %v895_v50  ;;  %v1726_v19 = vunpack.c.l.b16 %v926_v63  ;;  %v832_v50 = vld [vmem:[#allocation2 + $0xd8] sm:$0xff] }
 0x1d4   : > { %v2618_v25 = vpop.f32.mrf.mxu1 }
 0x1d5   : > { %3106 = vmatmul.bf16.gmra.mxu3 %v1751_v39  ;;  %v1727_v28 = vunpack.c.l.b16 %v927_v9  ;;  %v961_v39 = vld [vmem:[#allocation2 + $0xe2] sm:$0xff]  ;;  %v2619_v47 = vadd.f32 %v2618_v25, %v4285_v32  ;;  %v864_v9 = vpack.c.bf16 %v832_v50, %v832_v50 }
 0x1d6   : > { %v2702_v33 = vpop.f32.mrf.mxu2  ;;  %v993_v16 = vpack.c.bf16 %v961_v39, %v961_v39  ;;  %v1633_v39 = vunpack.c.l.b16 %v865_v34 }
 0x1d7   : > { %v2703_v0 = vadd.f32 %v2702_v33, %v2614_v13  ;;  %2933 = vmatmul.bf16.gmra.mxu1 %v1847_v55  ;;  %v960_v55 = vld [vmem:[#allocation2 + $0xda] sm:$0xff]  ;;  %v1752_v13 = vpack.c.b16 %v1727_v28, %v1726_v19 }
 0x1d8   : > { %v2791_v46 = vpop.f32.mrf.mxu3  ;;  %v992_v31 = vpack.c.bf16 %v960_v55, %v960_v55  ;;  %v1825_v61 = vunpack.c.l.b16 %v993_v16  ;;  %v1632_v55 = vunpack.c.l.b16 %v864_v9 }
 0x1d9   : > { %v2792_v5 = vadd.f32 %v2791_v46, %v2703_v0  ;;  %v896_v46 = vld [vmem:[#allocation2 + $0xd9] sm:$0xff] }
 0x1da   : > { %v2885_v49 = vpop.f32.mrf.mxu0  ;;  %v1824_v0 = vunpack.c.l.b16 %v992_v31  ;;  %v928_v19 = vpack.c.bf16 %v896_v46, %v896_v46  ;;  %v1657_v16 = vpack.c.b16 %v1633_v39, %v1632_v55 }
 0x1db   : > { %v4447_v51 = vadd.f32 %v2880_v15, %v2792_v5  ;;  %v897_v5 = vld [vmem:[#allocation2 + $0xe1] sm:$0xff] }
 0x1dc   : > { %v2620_v42 = vpop.f32.mrf.mxu1  ;;  %v1849_v28 = vpack.c.b16 %v1825_v61, %v1824_v0 }
 0x1dd   : > { %3200 = vmatmul.bf16.gmra.mxu0 %v1848_v44  ;;  %v2621_v25 = vadd.f32 %v2620_v42, %v4299_v59  ;;  %v835_v59 = vld [vmem:[#allocation2 + $0xf8] sm:$0xff] }
 0x1de   : > { %v2704_v23 = vpop.f32.mrf.mxu2  ;;  %v867_v55 = vpack.c.bf16 %v835_v59, %v835_v59 }
 0x1df   : > { %v2705_v30 = vadd.f32 %v2704_v23, %v2616_v58 }
 0x1e0   : > { %v2793_v54 = vpop.f32.mrf.mxu3 }
 0x1e1   : > { %v2794_v57 = vadd.f32 %v2793_v54, %v2705_v30 }
 0x1e2   : > { %v2887_v33 = vpop.f32.mrf.mxu0 }
 0x1e3   : > { %3022 = vmatmul.bf16.gmra.mxu2 %v1656_v40  ;;  %v4450_v15 = vadd.f32 %v2882_v36, %v2794_v57  ;;  %v929_v36 = vpack.c.bf16 %v897_v5, %v897_v5  ;;  %v1728_v40 = vunpack.c.l.b16 %v928_v19  ;;  %v834_v5 = vld [vmem:[#allocation2 + $0xf0] sm:$0xff] }
 0x1e4   : > { %v2623_v21 = vpop.f32.mrf.mxu1 }
 0x1e5   : > { %3111 = vmatmul.bf16.gmra.mxu3 %v1752_v13  ;;  %v1729_v54 = vunpack.c.l.b16 %v929_v36  ;;  %v963_v13 = vld [vmem:[#allocation2 + $0xfa] sm:$0xff]  ;;  %v2624_v42 = vadd.f32 %v2623_v21, %v4305_v18  ;;  %v866_v36 = vpack.c.bf16 %v834_v5, %v834_v5 }
 0x1e6   : > { %v2707_v48 = vpop.f32.mrf.mxu2  ;;  %v995_v61 = vpack.c.bf16 %v963_v13, %v963_v13  ;;  %v1635_v13 = vunpack.c.l.b16 %v867_v55 }
 0x1e7   : > { %v2708_v63 = vadd.f32 %v2707_v48, %v2619_v47  ;;  %2938 = vmatmul.bf16.gmra.mxu1 %v1848_v44  ;;  %v962_v44 = vld [vmem:[#allocation2 + $0xf2] sm:$0xff]  ;;  %v1753_v47 = vpack.c.b16 %v1729_v54, %v1728_v40 }
 0x1e8   : > { %v2796_v6 = vpop.f32.mrf.mxu3  ;;  %v994_v0 = vpack.c.bf16 %v962_v44, %v962_v44  ;;  %v1827_v9 = vunpack.c.l.b16 %v995_v61  ;;  %v1634_v44 = vunpack.c.l.b16 %v866_v36 }
 0x1e9   : > { %v2797_v58 = vadd.f32 %v2796_v6, %v2708_v63  ;;  %v898_v6 = vld [vmem:[#allocation2 + $0xf1] sm:$0xff] }
 0x1ea   : > { %v2890_v23 = vpop.f32.mrf.mxu0  ;;  %v1826_v63 = vunpack.c.l.b16 %v994_v0  ;;  %v930_v40 = vpack.c.bf16 %v898_v6, %v898_v6  ;;  %v1658_v61 = vpack.c.b16 %v1635_v13, %v1634_v44 }
 0x1eb   : > { %v4453_v30 = vadd.f32 %v2885_v49, %v2797_v58  ;;  %v899_v58 = vld [vmem:[#allocation2 + $0xf9] sm:$0xff] }
 0x1ec   : > { %v2625_v32 = vpop.f32.mrf.mxu1  ;;  %v1850_v54 = vpack.c.b16 %v1827_v9, %v1826_v63 }
 0x1ed   : > { %3205 = vmatmul.bf16.gmra.mxu0 %v1849_v28  ;;  %v2626_v21 = vadd.f32 %v2625_v32, %v4310_v38  ;;  %v837_v38 = vld [vmem:[#allocation2 + $0x110] sm:$0xff] }
 0x1ee   : > { %v2709_v57 = vpop.f32.mrf.mxu2  ;;  %v869_v44 = vpack.c.bf16 %v837_v38, %v837_v38 }
 0x1ef   : > { %v2710_v31 = vadd.f32 %v2709_v57, %v2621_v25 }
 0x1f0   : > { %v2798_v50 = vpop.f32.mrf.mxu3 }
 0x1f1   : > { %v2799_v17 = vadd.f32 %v2798_v50, %v2710_v31 }
 0x1f2   : > { %v2892_v48 = vpop.f32.mrf.mxu0 }
 0x1f3   : > { %3027 = vmatmul.bf16.gmra.mxu2 %v1657_v16  ;;  %v4456_v49 = vadd.f32 %v2887_v33, %v2799_v17  ;;  %v931_v33 = vpack.c.bf16 %v899_v58, %v899_v58  ;;  %v1730_v16 = vunpack.c.l.b16 %v930_v40  ;;  %v836_v58 = vld [vmem:[#allocation2 + $0x108] sm:$0xff] }
 0x1f4   : > { %v2904_v46 = vpop.f32.mrf.mxu1 }
 0x1f5   : > { %3116 = vmatmul.bf16.gmra.mxu3 %v1753_v47  ;;  %v1731_v50 = vunpack.c.l.b16 %v931_v33  ;;  %v965_v47 = vld [vmem:[#allocation2 + $0x112] sm:$0xff]  ;;  %v2905_v32 = vadd.f32 %v2904_v46, %v4326_v29  ;;  %v868_v33 = vpack.c.bf16 %v836_v58, %v836_v58 }
 0x1f6   : > { %v2712_v34 = vpop.f32.mrf.mxu2  ;;  %v997_v9 = vpack.c.bf16 %v965_v47, %v965_v47  ;;  %v1637_v47 = vunpack.c.l.b16 %v869_v44 }
 0x1f7   : > { %v2713_v19 = vadd.f32 %v2712_v34, %v2624_v42  ;;  %2943 = vmatmul.bf16.gmra.mxu1 %v1849_v28  ;;  %v964_v28 = vld [vmem:[#allocation2 + $0x10a] sm:$0xff]  ;;  %v1754_v42 = vpack.c.b16 %v1731_v50, %v1730_v16 }
 0x1f8   : > { %v2801_v39 = vpop.f32.mrf.mxu3  ;;  %v996_v63 = vpack.c.bf16 %v964_v28, %v964_v28  ;;  %v1829_v36 = vunpack.c.l.b16 %v997_v9  ;;  %v1636_v28 = vunpack.c.l.b16 %v868_v33 }
 0x1f9   : > { %v2802_v25 = vadd.f32 %v2801_v39, %v2713_v19  ;;  %v900_v39 = vld [vmem:[#allocation2 + $0x109] sm:$0xff] }
 0x1fa   : > { %v3171_v57 = vpop.f32.mrf.mxu0  ;;  %v1828_v19 = vunpack.c.l.b16 %v996_v63  ;;  %v932_v16 = vpack.c.bf16 %v900_v39, %v900_v39  ;;  %v967_v63 = vld [vmem:[#allocation2 + $0x12a] sm:$0xff]  ;;  %v1659_v58 = vpack.c.b16 %v1637_v47, %v1636_v28 }
 0x1fb   : > { %v4459_v31 = vadd.f32 %v2890_v23, %v2802_v25  ;;  %v901_v25 = vld [vmem:[#allocation2 + $0x111] sm:$0xff] }
 0x1fc   : > { %v2906_v18 = vpop.f32.mrf.mxu1  ;;  %v933_v29 = vpack.c.bf16 %v901_v25, %v901_v25  ;;  %v1851_v46 = vpack.c.b16 %v1829_v36, %v1828_v19 }
 0x1fd   : > { %3210 = vmatmul.bf16.gmra.mxu0 %v1850_v54 }
 0x1fe   : > { %v2714_v17 = vpop.f32.mrf.mxu2 }
 0x1ff   : > { %v2715_v0 = vadd.f32 %v2714_v17, %v2626_v21 }
 0x200   : > { %v2803_v5 = vpop.f32.mrf.mxu3 }
 0x201   : > { %v2804_v59 = vadd.f32 %v2803_v5, %v2715_v0  ;;  %v1732_v5 = vunpack.c.l.b16 %v932_v16 }
 0x202   : > { %v3173_v34 = vpop.f32.mrf.mxu0 }
 0x203   : > { %3032 = vmatmul.bf16.gmra.mxu2 %v1658_v61  ;;  %v4462_v23 = vadd.f32 %v2892_v48, %v2804_v59  ;;  %v4468_v48 = vld [vmem:[%s4611_s4] ss:$0 sm:$0xff]  ;;  %v2907_v61 = vadd.f32 %v2906_v18, %v4329_v26  ;;  %v1733_v59 = vunpack.c.l.b16 %v933_v29  ;;  %v902_v29 = vld [vmem:[#allocation2 + $0x121] sm:$0xff] }
 0x204   : > { %v2909_v6 = vpop.f32.mrf.mxu1  ;;  %v838_v18 = vld [vmem:[#allocation2 + $0x120] sm:$0xff] }
 0x205   : > { %3121 = vmatmul.bf16.gmra.mxu3 %v1754_v42  ;;  %v1755_v19 = vpack.c.b16 %v1733_v59, %v1732_v5  ;;  %v2910_v44 = vadd.f32 %v2909_v6, %v4332_v37  ;;  %v870_v47 = vpack.c.bf16 %v838_v18, %v838_v18  ;;  %v934_v5 = vpack.c.bf16 %v902_v29, %v902_v29  ;;  %v841_v29 = vld [vmem:[#allocation2 + $0x140] sm:$0xff] }
 0x206   : > { %v2993_v55 = vpop.f32.mrf.mxu2 }
 0x207   : > { %v2994_v40 = vadd.f32 %v2993_v55, %v2905_v32  ;;  %2948 = vmatmul.bf16.gmra.mxu1 %v1850_v54  ;;  %v999_v55 = vpack.c.bf16 %v967_v63, %v967_v63  ;;  %v1638_v6 = vunpack.c.l.b16 %v870_v47 }
 0x208   : > { %v3082_v13 = vpop.f32.mrf.mxu3 }
 0x209   : > { %v3083_v21 = vadd.f32 %v3082_v13, %v2994_v40  ;;  %v839_v40 = vld [vmem:[#allocation2 + $0x128] sm:$0xff] }
 0x20a   : > { %v3176_v50 = vpop.f32.mrf.mxu0 }
 0x20b   : > { %v3172_v17 = vadd.f32 %v3171_v57, %v3083_v21  ;;  %v966_v57 = vld [vmem:[#allocation2 + $0x122] sm:$0xff]  ;;  %v1831_v21 = vunpack.c.l.b16 %v999_v55 }
 0x20c   : > { %v2911_v54 = vpop.f32.mrf.mxu1  ;;  %v998_v36 = vpack.c.bf16 %v966_v57, %v966_v57  ;;  %v969_v55 = vld [vmem:[#allocation2 + $0x142] sm:$0xff] }
 0x20d   : > { %v3255_v0 = vadd.f32 %v4468_v48, %v3172_v17  ;;  %3215 = vmatmul.bf16.gmra.mxu0 %v1851_v46  ;;  %v903_v17 = vld [vmem:[#allocation2 + $0x129] sm:$0xff] }
 0x20e   : > { %v2995_v42 = vpop.f32.mrf.mxu2  ;;  %v1830_v13 = vunpack.c.l.b16 %v998_v36  ;;  %v935_v59 = vpack.c.bf16 %v903_v17, %v903_v17  ;;  %v968_v36 = vld [vmem:[#allocation2 + $0x13a] sm:$0xff] }
 0x20f   : > { %3288 = vst.msk [vmem:[%s4475_s7] sm:$0xff] %vm3287_vm0, %v3255_v0  ;;  %v2996_v9 = vadd.f32 %v2995_v42, %v2907_v61 }
 0x210   : > { %v3084_v38 = vpop.f32.mrf.mxu3  ;;  %v1852_v42 = vpack.c.b16 %v1831_v21, %v1830_v13  ;;  %v1001_v13 = vpack.c.bf16 %v969_v55, %v969_v55 }
 0x211   : > { %v3085_v32 = vadd.f32 %v3084_v38, %v2996_v9  ;;  %v2912_v38 = vadd.f32 %v2911_v54, %v4335_v41  ;;  %v840_v54 = vld [vmem:[#allocation2 + $0x138] sm:$0xff] }
 0x212   : > { %v3178_v39 = vpop.f32.mrf.mxu0 }
 0x213   : > { %v3174_v25 = vadd.f32 %v3173_v34, %v3085_v32  ;;  %3037 = vmatmul.bf16.gmra.mxu2 %v1659_v58  ;;  %v871_v34 = vpack.c.bf16 %v839_v40, %v839_v40  ;;  %v1734_v32 = vunpack.c.l.b16 %v934_v5  ;;  %v905_v5 = vld [vmem:[#allocation2 + $0x141] sm:$0xff] }
 0x214   : > { %v2914_v26 = vpop.f32.mrf.mxu1 }
 0x215   : > { %v3256_v33 = vadd.f32 %v4468_v48, %v3174_v25  ;;  %3126 = vmatmul.bf16.gmra.mxu3 %v1755_v19  ;;  %v1639_v63 = vunpack.c.l.b16 %v871_v34  ;;  %v1735_v19 = vunpack.c.l.b16 %v935_v59  ;;  %v1833_v34 = vunpack.c.l.b16 %v1001_v13 }
 0x216   : > { %v2998_v16 = vpop.f32.mrf.mxu2 }
 0x217   : > { %3289 = vst.msk [vmem:[%s4475_s7 + $0x8] sm:$0xff] %vm3287_vm0, %v3256_v33  ;;  %v2999_v28 = vadd.f32 %v2998_v16, %v2910_v44  ;;  %2953 = vmatmul.bf16.gmra.mxu1 %v1851_v46  ;;  %v1660_v18 = vpack.c.b16 %v1639_v63, %v1638_v6  ;;  %v1000_v44 = vpack.c.bf16 %v968_v36, %v968_v36 }
 0x218   : > { %v3087_v0 = vpop.f32.mrf.mxu3 }
 0x219   : > { %v3088_v61 = vadd.f32 %v3087_v0, %v2999_v28  ;;  %v2915_v28 = vadd.f32 %v2914_v26, %v4350_v60  ;;  %v1832_v47 = vunpack.c.l.b16 %v1000_v44 }
 0x21a   : > { %v3181_v57 = vpop.f32.mrf.mxu0 }
 0x21b   : > { %v3177_v37 = vadd.f32 %v3176_v50, %v3088_v61  ;;  %v1756_v50 = vpack.c.b16 %v1735_v19, %v1734_v32  ;;  %v904_v61 = vld [vmem:[#allocation2 + $0x139] sm:$0xff]  ;;  %v1853_v32 = vpack.c.b16 %v1833_v34, %v1832_v47 }
 0x21c   : > { %v2916_v9 = vpop.f32.mrf.mxu1  ;;  %v843_v34 = vld [vmem:[#allocation2 + $0x158] sm:$0xff] }
 0x21d   : > { %v3257_v58 = vadd.f32 %v4468_v48, %v3177_v37  ;;  %3220 = vmatmul.bf16.gmra.mxu0 %v1852_v42  ;;  %v872_v37 = vpack.c.bf16 %v840_v54, %v840_v54 }
 0x21e   : > { %v3000_v46 = vpop.f32.mrf.mxu2 }
 0x21f   : > { %3290 = vst.msk [vmem:[%s4475_s7 + $0x10] sm:$0xff] %vm3287_vm0, %v3257_v58  ;;  %v3001_v25 = vadd.f32 %v3000_v46, %v2912_v38  ;;  %v936_v58 = vpack.c.bf16 %v904_v61, %v904_v61  ;;  %v937_v38 = vpack.c.bf16 %v905_v5, %v905_v5  ;;  %v1640_v26 = vunpack.c.l.b16 %v872_v37 }
 0x220   : > { %v3089_v40 = vpop.f32.mrf.mxu3 }
 0x221   : > { %v3090_v33 = vadd.f32 %v3089_v40, %v3001_v25  ;;  %v2917_v25 = vadd.f32 %v2916_v9, %v4353_v35  ;;  %v1737_v40 = vunpack.c.l.b16 %v937_v38  ;;  %v842_v9 = vld [vmem:[#allocation2 + $0x150] sm:$0xff] }
 0x222   : > { %v3183_v21 = vpop.f32.mrf.mxu0 }
 0x223   : > { %v3179_v16 = vadd.f32 %v3178_v39, %v3090_v33  ;;  %3042 = vmatmul.bf16.gmra.mxu2 %v1660_v18  ;;  %v873_v39 = vpack.c.bf16 %v841_v29, %v841_v29  ;;  %v1736_v18 = vunpack.c.l.b16 %v936_v58  ;;  %v970_v33 = vld [vmem:[#allocation2 + $0x152] sm:$0xff]  ;;  %v874_v58 = vpack.c.bf16 %v842_v9, %v842_v9 }
 0x224   : > { %v2919_v41 = vpop.f32.mrf.mxu1  ;;  %v1002_v29 = vpack.c.bf16 %v970_v33, %v970_v33 }
 0x225   : > { %v3258_v17 = vadd.f32 %v4468_v48, %v3179_v16  ;;  %3131 = vmatmul.bf16.gmra.mxu3 %v1756_v50  ;;  %v1641_v46 = vunpack.c.l.b16 %v873_v39  ;;  %v971_v50 = vld [vmem:[#allocation2 + $0x15a] sm:$0xff]  ;;  %v2920_v61 = vadd.f32 %v2919_v41, %v4357_v10  ;;  %v906_v39 = vld [vmem:[#allocation2 + $0x151] sm:$0xff]  ;;  %v1642_v41 = vunpack.c.l.b16 %v874_v58 }
 0x226   : > { %v3003_v0 = vpop.f32.mrf.mxu2  ;;  %v1834_v5 = vunpack.c.l.b16 %v1002_v29  ;;  %v909_v58 = vld [vmem:[#allocation2 + $0x171] sm:$0xff] }
 0x227   : > { %3291 = vst.msk [vmem:[%s4475_s7 + $0x18] sm:$0xff] %vm3287_vm0, %v3258_v17  ;;  %v3004_v59 = vadd.f32 %v3003_v0, %v2915_v28  ;;  %2958 = vmatmul.bf16.gmra.mxu1 %v1852_v42  ;;  %v1661_v13 = vpack.c.b16 %v1641_v46, %v1640_v26  ;;  %v1003_v17 = vpack.c.bf16 %v971_v50, %v971_v50 }
 0x228   : > { %v3092_v6 = vpop.f32.mrf.mxu3  ;;  %v938_v26 = vpack.c.bf16 %v906_v39, %v906_v39 }
 0x229   : > { %v3093_v63 = vadd.f32 %v3092_v6, %v3004_v59  ;;  %v1835_v59 = vunpack.c.l.b16 %v1003_v17  ;;  %v907_v6 = vld [vmem:[#allocation2 + $0x159] sm:$0xff] }
 0x22a   : > { %v3186_v19 = vpop.f32.mrf.mxu0  ;;  %v939_v46 = vpack.c.bf16 %v907_v6, %v907_v6  ;;  %v1738_v50 = vunpack.c.l.b16 %v938_v26 }
 0x22b   : > { %v3182_v60 = vadd.f32 %v3181_v57, %v3093_v63  ;;  %v1757_v57 = vpack.c.b16 %v1737_v40, %v1736_v18 }
 0x22c   : > { %v2921_v36 = vpop.f32.mrf.mxu1 }
 0x22d   : > { %v3259_v55 = vadd.f32 %v4468_v48, %v3182_v60  ;;  %3225 = vmatmul.bf16.gmra.mxu0 %v1853_v32  ;;  %v2922_v33 = vadd.f32 %v2921_v36, %v4364_v56  ;;  %v844_v36 = vld [vmem:[#allocation2 + $0x168] sm:$0xff] }
 0x22e   : > { %v3005_v42 = vpop.f32.mrf.mxu2 }
 0x22f   : > { %3292 = vst.msk [vmem:[%s4475_s7 + $0x20] sm:$0xff] %vm3287_vm0, %v3259_v55  ;;  %v3006_v44 = vadd.f32 %v3005_v42, %v2917_v25  ;;  %v1854_v55 = vpack.c.b16 %v1835_v59, %v1834_v5 }
 0x230   : > { %v3094_v16 = vpop.f32.mrf.mxu3 }
 0x231   : > { %v3095_v54 = vadd.f32 %v3094_v16, %v3006_v44  ;;  %v1739_v44 = vunpack.c.l.b16 %v939_v46  ;;  %v973_v16 = vld [vmem:[#allocation2 + $0x172] sm:$0xff] }
 0x232   : > { %v3188_v28 = vpop.f32.mrf.mxu0  ;;  %v1005_v9 = vpack.c.bf16 %v973_v16, %v973_v16  ;;  %v974_v16 = vld [vmem:[#allocation2 + $0x182] sm:$0xff] }
 0x233   : > { %v3184_v47 = vadd.f32 %v3183_v21, %v3095_v54  ;;  %3047 = vmatmul.bf16.gmra.mxu2 %v1661_v13  ;;  %v875_v21 = vpack.c.bf16 %v843_v34, %v843_v34  ;;  %v972_v13 = vld [vmem:[#allocation2 + $0x16a] sm:$0xff] }
 0x234   : > { %v2924_v35 = vpop.f32.mrf.mxu1  ;;  %v1837_v39 = vunpack.c.l.b16 %v1005_v9 }
 0x235   : > { %v3260_v0 = vadd.f32 %v4468_v48, %v3184_v47  ;;  %3136 = vmatmul.bf16.gmra.mxu3 %v1757_v57  ;;  %v1643_v18 = vunpack.c.l.b16 %v875_v21  ;;  %v1004_v47 = vpack.c.bf16 %v972_v13, %v972_v13  ;;  %v2925_v59 = vadd.f32 %v2924_v35, %v4389_v43 }
 0x236   : > { %v3008_v37 = vpop.f32.mrf.mxu2 }
 0x237   : > { %3293 = vst.msk [vmem:[%s4475_s7 + $0x28] sm:$0xff] %vm3287_vm0, %v3260_v0  ;;  %v3009_v63 = vadd.f32 %v3008_v37, %v2920_v61  ;;  %2963 = vmatmul.bf16.gmra.mxu1 %v1853_v32  ;;  %v1662_v57 = vpack.c.b16 %v1643_v18, %v1642_v41  ;;  %v845_v61 = vld [vmem:[#allocation2 + $0x170] sm:$0xff]  ;;  %v1836_v37 = vunpack.c.l.b16 %v1004_v47  ;;  %v1006_v47 = vpack.c.bf16 %v974_v16, %v974_v16  ;;  %v977_v16 = vld [vmem:[#allocation2 + $0x1a2] sm:$0xff] }
 0x238   : > { %v3097_v38 = vpop.f32.mrf.mxu3 }
 0x239   : > { %v3098_v60 = vadd.f32 %v3097_v38, %v3009_v63  ;;  %v908_v63 = vld [vmem:[#allocation2 + $0x169] sm:$0xff]  ;;  %v876_v38 = vpack.c.bf16 %v844_v36, %v844_v36  ;;  %v1855_v41 = vpack.c.b16 %v1837_v39, %v1836_v37  ;;  %v1838_v37 = vunpack.c.l.b16 %v1006_v47 }
 0x23a   : > { %v3191_v25 = vpop.f32.mrf.mxu0  ;;  %v940_v46 = vpack.c.bf16 %v908_v63, %v908_v63  ;;  %v910_v63 = vld [vmem:[#allocation2 + $0x181] sm:$0xff] }
 0x23b   : > { %v3187_v10 = vadd.f32 %v3186_v19, %v3098_v60  ;;  %v1758_v19 = vpack.c.b16 %v1739_v44, %v1738_v50  ;;  %v1644_v35 = vunpack.c.l.b16 %v876_v38 }
 0x23c   : > { %v2926_v40 = vpop.f32.mrf.mxu1 }
 0x23d   : > { %v3261_v42 = vadd.f32 %v4468_v48, %v3187_v10  ;;  %3230 = vmatmul.bf16.gmra.mxu0 %v1854_v55  ;;  %v941_v10 = vpack.c.bf16 %v909_v58, %v909_v58  ;;  %v2927_v44 = vadd.f32 %v2926_v40, %v4392_v62  ;;  %v846_v40 = vld [vmem:[#allocation2 + $0x180] sm:$0xff]  ;;  %v911_v58 = vld [vmem:[#allocation2 + $0x189] sm:$0xff] }
 0x23e   : > { %v3010_v32 = vpop.f32.mrf.mxu2  ;;  %v878_v38 = vpack.c.bf16 %v846_v40, %v846_v40 }
 0x23f   : > { %3294 = vst.msk [vmem:[%s4475_s7 + $0x30] sm:$0xff] %vm3287_vm0, %v3261_v42  ;;  %v3011_v54 = vadd.f32 %v3010_v32, %v2922_v33  ;;  %v1740_v32 = vunpack.c.l.b16 %v940_v46  ;;  %v1741_v13 = vunpack.c.l.b16 %v941_v10  ;;  %v943_v46 = vpack.c.bf16 %v911_v58, %v911_v58 }
 0x240   : > { %v3099_v29 = vpop.f32.mrf.mxu3 }
 0x241   : > { %v3100_v17 = vadd.f32 %v3099_v29, %v3011_v54  ;;  %v975_v54 = vld [vmem:[#allocation2 + $0x18a] sm:$0xff] }
 0x242   : > { %v3193_v34 = vpop.f32.mrf.mxu0  ;;  %v1007_v9 = vpack.c.bf16 %v975_v54, %v975_v54 }
 0x243   : > { %v3189_v0 = vadd.f32 %v3188_v28, %v3100_v17  ;;  %3052 = vmatmul.bf16.gmra.mxu2 %v1662_v57  ;;  %v877_v28 = vpack.c.bf16 %v845_v61, %v845_v61  ;;  %v847_v61 = vld [vmem:[#allocation2 + $0x188] sm:$0xff] }
 0x244   : > { %v2929_v56 = vpop.f32.mrf.mxu1  ;;  %v1839_v39 = vunpack.c.l.b16 %v1007_v9 }
 0x245   : > { %v3262_v5 = vadd.f32 %v4468_v48, %v3189_v0  ;;  %3141 = vmatmul.bf16.gmra.mxu3 %v1758_v19  ;;  %v1645_v42 = vunpack.c.l.b16 %v877_v28 }
 0x246   : > { %v3013_v6 = vpop.f32.mrf.mxu2  ;;  %v1856_v10 = vpack.c.b16 %v1839_v39, %v1838_v37  ;;  %v913_v37 = vld [vmem:[#allocation2 + $0x1a1] sm:$0xff] }
 0x247   : > { %3295 = vst.msk [vmem:[%s4475_s7 + $0x38] sm:$0xff] %vm3287_vm0, %v3262_v5  ;;  %v3014_v21 = vadd.f32 %v3013_v6, %v2925_v59  ;;  %2968 = vmatmul.bf16.gmra.mxu1 %v1854_v55  ;;  %v1663_v29 = vpack.c.b16 %v1645_v42, %v1644_v35  ;;  %v2930_v59 = vadd.f32 %v2929_v56, %v4395_v45  ;;  %v1646_v56 = vunpack.c.l.b16 %v878_v38 }
 0x248   : > { %v3102_v60 = vpop.f32.mrf.mxu3  ;;  %v945_v38 = vpack.c.bf16 %v913_v37, %v913_v37 }
 0x249   : > { %v3103_v26 = vadd.f32 %v3102_v60, %v3014_v21 }
 0x24a   : > { %v3196_v18 = vpop.f32.mrf.mxu0 }
 0x24b   : > { %v3192_v43 = vadd.f32 %v3191_v25, %v3103_v26  ;;  %v1759_v25 = vpack.c.b16 %v1741_v13, %v1740_v32  ;;  %v942_v26 = vpack.c.bf16 %v910_v63, %v910_v63  ;;  %v1743_v13 = vunpack.c.l.b16 %v943_v46 }
 0x24c   : > { %v2931_v33 = vpop.f32.mrf.mxu1 }
 0x24d   : > { %v3263_v50 = vadd.f32 %v4468_v48, %v3192_v43  ;;  %3235 = vmatmul.bf16.gmra.mxu0 %v1855_v41  ;;  %v1742_v32 = vunpack.c.l.b16 %v942_v26 }
 0x24e   : > { %v3015_v55 = vpop.f32.mrf.mxu2 }
 0x24f   : > { %3296 = vst.msk [vmem:[%s4475_s7 + $0x40] sm:$0xff] %vm3287_vm0, %v3263_v50  ;;  %v3016_v57 = vadd.f32 %v3015_v55, %v2927_v44  ;;  %v2932_v44 = vadd.f32 %v2931_v33, %v4402_v14  ;;  %v976_v55 = vld [vmem:[#allocation2 + $0x19a] sm:$0xff] }
 0x250   : > { %v3104_v17 = vpop.f32.mrf.mxu3 }
 0x251   : > { %v3105_v19 = vadd.f32 %v3104_v17, %v3016_v57 }
 0x252   : > { %v3198_v0 = vpop.f32.mrf.mxu0 }
 0x253   : > { %v3194_v36 = vadd.f32 %v3193_v34, %v3105_v19  ;;  %3057 = vmatmul.bf16.gmra.mxu2 %v1663_v29  ;;  %v879_v34 = vpack.c.bf16 %v847_v61, %v847_v61  ;;  %v1008_v19 = vpack.c.bf16 %v976_v55, %v976_v55 }
 0x254   : > { %v2934_v62 = vpop.f32.mrf.mxu1 }
 0x255   : > { %v3264_v5 = vadd.f32 %v4468_v48, %v3194_v36  ;;  %3146 = vmatmul.bf16.gmra.mxu3 %v1759_v25  ;;  %v1647_v35 = vunpack.c.l.b16 %v879_v34  ;;  %v1009_v25 = vpack.c.bf16 %v977_v16, %v977_v16  ;;  %v2935_v36 = vadd.f32 %v2934_v62, %v4405_v24 }
 0x256   : > { %v3018_v6 = vpop.f32.mrf.mxu2  ;;  %v1840_v40 = vunpack.c.l.b16 %v1008_v19 }
 0x257   : > { %3297 = vst.msk [vmem:[%s4475_s7 + $0x48] sm:$0xff] %vm3287_vm0, %v3264_v5  ;;  %v3019_v21 = vadd.f32 %v3018_v6, %v2930_v59  ;;  %2973 = vmatmul.bf16.gmra.mxu1 %v1855_v41  ;;  %v1664_v57 = vpack.c.b16 %v1647_v35, %v1646_v56  ;;  %v1841_v61 = vunpack.c.l.b16 %v1009_v25  ;;  %v912_v59 = vld [vmem:[#allocation2 + $0x199] sm:$0xff]  ;;  %v1745_v56 = vunpack.c.l.b16 %v945_v38 }
 0x258   : > { %v3107_v28 = vpop.f32.mrf.mxu3  ;;  %v3786_v6 = vld [vmem:[#allocation2] sm:$0xff] }
 0x259   : > { %v3108_v60 = vadd.f32 %v3107_v28, %v3019_v21  ;;  %v880_v63 = vpack.c.bf16 %v3786_v6, %v3786_v6  ;;  %v944_v21 = vpack.c.bf16 %v912_v59, %v912_v59  ;;  %v1857_v34 = vpack.c.b16 %v1841_v61, %v1840_v40 }
 0x25a   : > { %v3201_v43 = vpop.f32.mrf.mxu0 }
 0x25b   : > { %v3197_v45 = vadd.f32 %v3196_v18, %v3108_v60  ;;  %v1760_v18 = vpack.c.b16 %v1743_v13, %v1742_v32  ;;  %v1648_v62 = vunpack.c.l.b16 %v880_v63 }
 0x25c   : > { %v2936_v42 = vpop.f32.mrf.mxu1 }
 0x25d   : > { %v3265_v50 = vadd.f32 %v4468_v48, %v3197_v45  ;;  %3240 = vmatmul.bf16.gmra.mxu0 %v1856_v10  ;;  %v2937_v46 = vadd.f32 %v2936_v42, %v4408_v7  ;;  %v1744_v45 = vunpack.c.l.b16 %v944_v21 }
 0x25e   : > { %v3020_v41 = vpop.f32.mrf.mxu2 }
 0x25f   : > { %3298 = vst.msk [vmem:[%s4475_s7 + $0x50] sm:$0xff] %vm3287_vm0, %v3265_v50  ;;  %v3021_v54 = vadd.f32 %v3020_v41, %v2932_v44  ;;  %v1665_v50 = vpack.c.b16 %v1648_v62, %v1648_v62  ;;  %v1761_v13 = vpack.c.b16 %v1745_v56, %v1744_v45 }
 0x260   : > { %v3109_v29 = vpop.f32.mrf.mxu3 }
 0x261   : > { %v3110_v17 = vadd.f32 %v3109_v29, %v3021_v54 }
 0x262   : > { %v3203_v47 = vpop.f32.mrf.mxu0 }
 0x263   : > { %v3199_v9 = vadd.f32 %v3198_v0, %v3110_v17  ;;  %3062 = vmatmul.bf16.gmra.mxu2 %v1664_v57 }
 0x264   : > { %v2939_v14 = vpop.f32.mrf.mxu1 }
 0x265   : > { %v3266_v33 = vadd.f32 %v4468_v48, %v3199_v9  ;;  %3151 = vmatmul.bf16.gmra.mxu3 %v1760_v18  ;;  %v2940_v7 = vadd.f32 %v2939_v14, %v4411_v12 }
 0x266   : > { %v3023_v5 = vpop.f32.mrf.mxu2 }
 0x267   : > { %3299 = vst.msk [vmem:[%s4475_s7 + $0x58] sm:$0xff] %vm3287_vm0, %v3266_v33  ;;  %v3024_v39 = vadd.f32 %v3023_v5, %v2935_v36  ;;  %2978 = vmatmul.bf16.gmra.mxu1 %v1856_v10 }
 0x268   : > { %v3112_v0 = vpop.f32.mrf.mxu3 }
 0x269   : > { %v3113_v58 = vadd.f32 %v3112_v0, %v3024_v39 }
 0x26a   : > { %v3206_v28 = vpop.f32.mrf.mxu0 }
 0x26b   : > { %v3202_v24 = vadd.f32 %v3201_v43, %v3113_v58 }
 0x26c   : > { %v2941_v60 = vpop.f32.mrf.mxu1 }
 0x26d   : > { %v3267_v26 = vadd.f32 %v4468_v48, %v3202_v24  ;;  %3245 = vmatmul.bf16.gmra.mxu0 %v1857_v34 }
 0x26e   : > { %v3025_v10 = vpop.f32.mrf.mxu2 }
 0x26f   : > { %3300 = vst.msk [vmem:[%s4475_s7 + $0x60] sm:$0xff] %vm3287_vm0, %v3267_v26  ;;  %v3026_v35 = vadd.f32 %v3025_v10, %v2937_v46 }
 0x270   : > { %v3114_v44 = vpop.f32.mrf.mxu3 }
 0x271   : > { %v3115_v32 = vadd.f32 %v3114_v44, %v3026_v35 }
 0x272   : > { %v3208_v41 = vpop.f32.mrf.mxu0 }
 0x273   : > { %v3204_v43 = vadd.f32 %v3203_v47, %v3115_v32  ;;  %3067 = vmatmul.bf16.gmra.mxu2 %v1665_v50  ;;  %v2942_v47 = vadd.f32 %v2941_v60, %v4414_v52 }
 0x274   : > { %v2944_v55 = vpop.f32.mrf.mxu1 }
 0x275   : > { %v3268_v16 = vadd.f32 %v4468_v48, %v3204_v43  ;;  %3156 = vmatmul.bf16.gmra.mxu3 %v1761_v13  ;;  %v2945_v59 = vadd.f32 %v2944_v55, %v4417_v4 }
 0x276   : > { %v3028_v42 = vpop.f32.mrf.mxu2 }
 0x277   : > { %3301 = vst.msk [vmem:[%s4475_s7 + $0x68] sm:$0xff] %vm3287_vm0, %v3268_v16  ;;  %v3029_v54 = vadd.f32 %v3028_v42, %v2940_v7 }
 0x278   : > { %v3117_v57 = vpop.f32.mrf.mxu3 }
 0x279   : > { %v3118_v29 = vadd.f32 %v3117_v57, %v3029_v54 }
 0x27a   : > { %v3211_v17 = vpop.f32.mrf.mxu0 }
 0x27b   : > { %v3207_v18 = vadd.f32 %v3206_v28, %v3118_v29 }
 0x27c   : > { %v2946_v19 = vpop.f32.mrf.mxu1 }
 0x27d   : > { %v3269_v25 = vadd.f32 %v4468_v48, %v3207_v18  ;;  %v2947_v38 = vadd.f32 %v2946_v19, %v4420_v8 }
 0x27e   : > { %v3030_v9 = vpop.f32.mrf.mxu2 }
 0x27f   : > { %3302 = vst.msk [vmem:[%s4475_s7 + $0x70] sm:$0xff] %vm3287_vm0, %v3269_v25  ;;  %v3031_v33 = vadd.f32 %v3030_v9, %v2942_v47 }
 0x280   : > { %v3119_v12 = vpop.f32.mrf.mxu3 }
 0x281   : > { %v3120_v14 = vadd.f32 %v3119_v12, %v3031_v33 }
 0x282   : > { %v3213_v36 = vpop.f32.mrf.mxu0 }
 0x283   : > { %v3209_v40 = vadd.f32 %v3208_v41, %v3120_v14 }
 0x284   : > { %v2949_v61 = vpop.f32.mrf.mxu1 }
 0x285   : > { %v3270_v5 = vadd.f32 %v4468_v48, %v3209_v40  ;;  %v2950_v45 = vadd.f32 %v2949_v61, %v4423_v11 }
 0x286   : > { %v3033_v37 = vpop.f32.mrf.mxu2 }
 0x287   : > { %3303 = vst.msk [vmem:[%s4475_s7 + $0x78] sm:$0xff] %vm3287_vm0, %v3270_v5  ;;  %v3034_v39 = vadd.f32 %v3033_v37, %v2945_v59 }
 0x288   : > { %v3122_v6 = vpop.f32.mrf.mxu3 }
 0x289   : > { %v3123_v52 = vadd.f32 %v3122_v6, %v3034_v39 }
 0x28a   : > { %v3216_v63 = vpop.f32.mrf.mxu0 }
 0x28b   : > { %v3212_v0 = vadd.f32 %v3211_v17, %v3123_v52 }
 0x28c   : > { %v2951_v58 = vpop.f32.mrf.mxu1 }
 0x28d   : > { %v3271_v21 = vadd.f32 %v4468_v48, %v3212_v0  ;;  %v2952_v41 = vadd.f32 %v2951_v58, %v4426_v53 }
 0x28e   : > { %v3035_v34 = vpop.f32.mrf.mxu2 }
 0x28f   : > { %3304 = vst.msk [vmem:[%s4475_s7 + $0x80] sm:$0xff] %vm3287_vm0, %v3271_v21  ;;  %v3036_v28 = vadd.f32 %v3035_v34, %v2947_v38 }
 0x290   : > { %v3124_v24 = vpop.f32.mrf.mxu3 }
 0x291   : > { %v3125_v4 = vadd.f32 %v3124_v24, %v3036_v28 }
 0x292   : > { %v3218_v62 = vpop.f32.mrf.mxu0 }
 0x293   : > { %v3214_v60 = vadd.f32 %v3213_v36, %v3125_v4 }
 0x294   : > { %v2954_v26 = vpop.f32.mrf.mxu1 }
 0x295   : > { %v3272_v46 = vadd.f32 %v4468_v48, %v3214_v60  ;;  %v2955_v29 = vadd.f32 %v2954_v26, %v4429_v20 }
 0x296   : > { %v3038_v56 = vpop.f32.mrf.mxu2 }
 0x297   : > { %3305 = vst.msk [vmem:[%s4475_s7 + $0x88] sm:$0xff] %vm3287_vm0, %v3272_v46  ;;  %v3039_v10 = vadd.f32 %v3038_v56, %v2950_v45 }
 0x298   : > { %v3127_v35 = vpop.f32.mrf.mxu3 }
 0x299   : > { %v3128_v8 = vadd.f32 %v3127_v35, %v3039_v10 }
 0x29a   : > { %v3221_v50 = vpop.f32.mrf.mxu0 }
 0x29b   : > { %v3217_v44 = vadd.f32 %v3216_v63, %v3128_v8 }
 0x29c   : > { %v2956_v32 = vpop.f32.mrf.mxu1 }
 0x29d   : > { %v3273_v13 = vadd.f32 %v4468_v48, %v3217_v44  ;;  %v2957_v12 = vadd.f32 %v2956_v32, %v4432_v27 }
 0x29e   : > { %v3040_v43 = vpop.f32.mrf.mxu2 }
 0x29f   : > { %3306 = vst.msk [vmem:[%s4475_s7 + $0x90] sm:$0xff] %vm3287_vm0, %v3273_v13  ;;  %v3041_v55 = vadd.f32 %v3040_v43, %v2952_v41 }
 0x2a0   : > { %v3129_v16 = vpop.f32.mrf.mxu3 }
 0x2a1   : > { %v3130_v11 = vadd.f32 %v3129_v16, %v3041_v55 }
 0x2a2   : > { %v3223_v7 = vpop.f32.mrf.mxu0 }
 0x2a3   : > { %v3219_v42 = vadd.f32 %v3218_v62, %v3130_v11 }
 0x2a4   : > { %v2959_v54 = vpop.f32.mrf.mxu1 }
 0x2a5   : > { %v3274_v57 = vadd.f32 %v4468_v48, %v3219_v42  ;;  %v2960_v39 = vadd.f32 %v2959_v54, %v4435_v1 }
 0x2a6   : > { %v3043_v17 = vpop.f32.mrf.mxu2 }
 0x2a7   : > { %3307 = vst.msk [vmem:[%s4475_s7 + $0x98] sm:$0xff] %vm3287_vm0, %v3274_v57  ;;  %v3044_v18 = vadd.f32 %v3043_v17, %v2955_v29 }
 0x2a8   : > { %v3132_v19 = vpop.f32.mrf.mxu3 }
 0x2a9   : > { %v3133_v53 = vadd.f32 %v3132_v19, %v3044_v18 }
 0x2aa   : > { %v3226_v25 = vpop.f32.mrf.mxu0 }
 0x2ab   : > { %v3222_v47 = vadd.f32 %v3221_v50, %v3133_v53 }
 0x2ac   : > { %v2961_v9 = vpop.f32.mrf.mxu1 }
 0x2ad   : > { %v3275_v33 = vadd.f32 %v4468_v48, %v3222_v47  ;;  %v2962_v38 = vadd.f32 %v2961_v9, %v4438_v3 }
 0x2ae   : > { %v3045_v14 = vpop.f32.mrf.mxu2 }
 0x2af   : > { %3308 = vst.msk [vmem:[%s4475_s7 + $0xa0] sm:$0xff] %vm3287_vm0, %v3275_v33  ;;  %v3046_v36 = vadd.f32 %v3045_v14, %v2957_v12 }
 0x2b0   : > { %v3134_v40 = vpop.f32.mrf.mxu3 }
 0x2b1   : > { %v3135_v20 = vadd.f32 %v3134_v40, %v3046_v36 }
 0x2b2   : > { %v3228_v61 = vpop.f32.mrf.mxu0 }
 0x2b3   : > { %v3224_v5 = vadd.f32 %v3223_v7, %v3135_v20 }
 0x2b4   : > { %v2964_v59 = vpop.f32.mrf.mxu1 }
 0x2b5   : > { %v3276_v37 = vadd.f32 %v4468_v48, %v3224_v5  ;;  %v2965_v26 = vadd.f32 %v2964_v59, %v4441_v22 }
 0x2b6   : > { %v3048_v6 = vpop.f32.mrf.mxu2 }
 0x2b7   : > { %3309 = vst.msk [vmem:[%s4475_s7 + $0xa8] sm:$0xff] %vm3287_vm0, %v3276_v37  ;;  %v3049_v52 = vadd.f32 %v3048_v6, %v2960_v39 }
 0x2b8   : > { %v3137_v63 = vpop.f32.mrf.mxu3 }
 0x2b9   : > { %v3138_v27 = vadd.f32 %v3137_v63, %v3049_v52 }
 0x2ba   : > { %v3231_v58 = vpop.f32.mrf.mxu0 }
 0x2bb   : > { %v3227_v0 = vadd.f32 %v3226_v25, %v3138_v27 }
 0x2bc   : > { %v2966_v28 = vpop.f32.mrf.mxu1 }
 0x2bd   : > { %v3277_v21 = vadd.f32 %v4468_v48, %v3227_v0  ;;  %v2967_v44 = vadd.f32 %v2966_v28, %v4444_v2 }
 0x2be   : > { %v3050_v34 = vpop.f32.mrf.mxu2 }
 0x2bf   : > { %3310 = vst.msk [vmem:[%s4475_s7 + $0xb0] sm:$0xff] %vm3287_vm0, %v3277_v21  ;;  %v3051_v24 = vadd.f32 %v3050_v34, %v2962_v38 }
 0x2c0   : > { %v3139_v4 = vpop.f32.mrf.mxu3 }
 0x2c1   : > { %v3140_v1 = vadd.f32 %v3139_v4, %v3051_v24 }
 0x2c2   : > { %v3233_v45 = vpop.f32.mrf.mxu0 }
 0x2c3   : > { %v3229_v62 = vadd.f32 %v3228_v61, %v3140_v1 }
 0x2c4   : > { %v2969_v3 = vpop.f32.mrf.mxu1 }
 0x2c5   : > { %v3278_v60 = vadd.f32 %v4468_v48, %v3229_v62  ;;  %v2970_v7 = vadd.f32 %v2969_v3, %v4447_v51 }
 0x2c6   : > { %v3053_v46 = vpop.f32.mrf.mxu2 }
 0x2c7   : > { %3311 = vst.msk [vmem:[%s4475_s7 + $0xb8] sm:$0xff] %vm3287_vm0, %v3278_v60  ;;  %v3054_v56 = vadd.f32 %v3053_v46, %v2965_v26 }
 0x2c8   : > { %v3142_v10 = vpop.f32.mrf.mxu3 }
 0x2c9   : > { %v3143_v35 = vadd.f32 %v3142_v10, %v3054_v56 }
 0x2ca   : > { %v3236_v22 = vpop.f32.mrf.mxu0 }
 0x2cb   : > { %v3232_v8 = vadd.f32 %v3231_v58, %v3143_v35 }
 0x2cc   : > { %v2971_v55 = vpop.f32.mrf.mxu1 }
 0x2cd   : > { %v3279_v50 = vadd.f32 %v4468_v48, %v3232_v8  ;;  %v2972_v53 = vadd.f32 %v2971_v55, %v4450_v15 }
 0x2ce   : > { %v3055_v32 = vpop.f32.mrf.mxu2 }
 0x2cf   : > { %3312 = vst.msk [vmem:[%s4475_s7 + $0xc0] sm:$0xff] %vm3287_vm0, %v3279_v50  ;;  %v3056_v13 = vadd.f32 %v3055_v32, %v2967_v44 }
 0x2d0   : > { %v3144_v41 = vpop.f32.mrf.mxu3 }
 0x2d1   : > { %v3145_v43 = vadd.f32 %v3144_v41, %v3056_v13 }
 0x2d2   : > { %v3238_v29 = vpop.f32.mrf.mxu0 }
 0x2d3   : > { %v3234_v16 = vadd.f32 %v3233_v45, %v3145_v43 }
 0x2d4   : > { %v2974_v18 = vpop.f32.mrf.mxu1 }
 0x2d5   : > { %v3280_v11 = vadd.f32 %v4468_v48, %v3234_v16  ;;  %v2975_v36 = vadd.f32 %v2974_v18, %v4453_v30 }
 0x2d6   : > { %v3058_v42 = vpop.f32.mrf.mxu2 }
 0x2d7   : > { %3313 = vst.msk [vmem:[%s4475_s7 + $0xc8] sm:$0xff] %vm3287_vm0, %v3280_v11  ;;  %v3059_v54 = vadd.f32 %v3058_v42, %v2970_v7 }
 0x2d8   : > { %v3147_v57 = vpop.f32.mrf.mxu3 }
 0x2d9   : > { %v3148_v2 = vadd.f32 %v3147_v57, %v3059_v54 }
 0x2da   : > { %v3241_v12 = vpop.f32.mrf.mxu0 }
 0x2db   : > { %v3237_v17 = vadd.f32 %v3236_v22, %v3148_v2 }
 0x2dc   : > { %v2976_v20 = vpop.f32.mrf.mxu1 }
 0x2dd   : > { %v3281_v19 = vadd.f32 %v4468_v48, %v3237_v17  ;;  %v2977_v39 = vadd.f32 %v2976_v20, %v4456_v49 }
 0x2de   : > { %v3060_v25 = vpop.f32.mrf.mxu2 }
 0x2df   : > { %3314 = vst.msk [vmem:[%s4475_s7 + $0xd0] sm:$0xff] %vm3287_vm0, %v3281_v19  ;;  %v3061_v47 = vadd.f32 %v3060_v25, %v2972_v53 }
 0x2e0   : > { %v3149_v9 = vpop.f32.mrf.mxu3 }
 0x2e1   : > { %v3150_v51 = vadd.f32 %v3149_v9, %v3061_v47 }
 0x2e2   : > { %v3243_v6 = vpop.f32.mrf.mxu0 }
 0x2e3   : > { %v3239_v33 = vadd.f32 %v3238_v29, %v3150_v51 }
 0x2e4   : > { %v2979_v30 = vpop.f32.mrf.mxu1 }
 0x2e5   : > { %v3282_v14 = vadd.f32 %v4468_v48, %v3239_v33  ;;  %v2980_v38 = vadd.f32 %v2979_v30, %v4459_v31 }
 0x2e6   : > { %v3063_v40 = vpop.f32.mrf.mxu2 }
 0x2e7   : > { %3315 = vst.msk [vmem:[%s4475_s7 + $0xd8] sm:$0xff] %vm3287_vm0, %v3282_v14  ;;  %v3064_v61 = vadd.f32 %v3063_v40, %v2975_v36 }
 0x2e8   : > { %v3152_v5 = vpop.f32.mrf.mxu3 }
 0x2e9   : > { %v3153_v15 = vadd.f32 %v3152_v5, %v3064_v61 }
 0x2ea   : > { %v3246_v49 = vpop.f32.mrf.mxu0 }
 0x2eb   : > { %v3242_v59 = vadd.f32 %v3241_v12, %v3153_v15 }
 0x2ec   : > { %v2981_v1 = vpop.f32.mrf.mxu1 }
 0x2ed   : > { %v3283_v37 = vadd.f32 %v4468_v48, %v3242_v59  ;;  %v2982_v26 = vadd.f32 %v2981_v1, %v4462_v23 }
 0x2ee   : > { %v3065_v52 = vpop.f32.mrf.mxu2 }
 0x2ef   : > { %3316 = vst.msk [vmem:[%s4475_s7 + $0xe0] sm:$0xff] %vm3287_vm0, %v3283_v37  ;;  %v3066_v63 = vadd.f32 %v3065_v52, %v2977_v39 }
 0x2f0   : > { %v3154_v27 = vpop.f32.mrf.mxu3 }
 0x2f1   : > { %v3155_v0 = vadd.f32 %v3154_v27, %v3066_v63 }
 0x2f2   : > { %v3248_v10 = vpop.f32.mrf.mxu0 }
 0x2f3   : > { %v3244_v58 = vadd.f32 %v3243_v6, %v3155_v0 }
 0x2f5   : > { %v3284_v21 = vadd.f32 %v4468_v48, %v3244_v58 }
 0x2f6   : > { %v3068_v34 = vpop.f32.mrf.mxu2 }
 0x2f7   : > { %3317 = vst.msk [vmem:[%s4475_s7 + $0xe8] sm:$0xff] %vm3287_vm0, %v3284_v21  ;;  %v3069_v28 = vadd.f32 %v3068_v34, %v2980_v38 }
 0x2f8   : > { %v3157_v24 = vpop.f32.mrf.mxu3 }
 0x2f9   : > { %v3158_v4 = vadd.f32 %v3157_v24, %v3069_v28 }
 0x2fb   : > { %v3247_v62 = vadd.f32 %v3246_v49, %v3158_v4 }
 0x2fd   : > { %v3285_v60 = vadd.f32 %v4468_v48, %v3247_v62 }
 0x2fe   : > { %v3070_v46 = vpop.f32.mrf.mxu2 }
 0x2ff   : > { %3318 = vst.msk [vmem:[%s4475_s7 + $0xf0] sm:$0xff] %vm3287_vm0, %v3285_v60  ;;  %v3071_v45 = vadd.f32 %v3070_v46, %v2982_v26 }
 0x300   : > { %v3159_v56 = vpop.f32.mrf.mxu3 }
 0x301   : > { %v3160_v31 = vadd.f32 %v3159_v56, %v3071_v45 }
 0x303   : > { %v3249_v3 = vadd.f32 %v3248_v10, %v3160_v31 }
 0x305   : > { %v3286_v35 = vadd.f32 %v4468_v48, %v3249_v3 }
 0x307   : > { %3319 = vst.msk [vmem:[%s4475_s7 + $0xf8] sm:$0xff] %vm3287_vm0, %v3286_v35 }
 0x308 PF: > { %s15_s18 = sadd.s32 1, %s3793_s18  }
 0x309   : > { %p12_p4 = scmp.ge.s32.totalorder %s15_s18, 4  }
 0x30b   :  { %14 = sbr.rel (!%p12_p4) target bundleno = 1 (0x1), region = 73 }

</bundles_post_ra>
